<compile_context>
chip_gen: v7x
topology: tpu7x:2x2x1
jax: 0.10.0
libtpu: 0.0.40
codegen_flags: <defaults>
</compile_context>

<pallas_src>
import functools

import jax
import jax.numpy as jnp
from jax.experimental import pallas as pl
from jax.experimental.pallas import tpu as pltpu

EPS = 1e-5
GROUPS = 16


# ------------------------------ in-kernel helpers ------------------------------

def _group_masks(C, groups):
    """One-hot group-membership masks, built in-kernel (no extra DMA inputs)."""
    cg = C // groups
    c_idx = jax.lax.broadcasted_iota(jnp.int32, (C, groups), 0)
    g_idx = jax.lax.broadcasted_iota(jnp.int32, (C, groups), 1)
    lo = g_idx * cg
    mask_cg = ((c_idx >= lo) & (c_idx < lo + cg)).astype(jnp.float32)      # (C, G)
    c_idx2 = jax.lax.broadcasted_iota(jnp.int32, (groups, C), 1)
    g_idx2 = jax.lax.broadcasted_iota(jnp.int32, (groups, C), 0)
    lo2 = g_idx2 * cg
    mask_gc = ((c_idx2 >= lo2) & (c_idx2 < lo2 + cg)).astype(jnp.float32)  # (G, C)
    return mask_cg, mask_gc


def _group_norm(y, gamma, beta, mask_cg, mask_gc, inv_count):
    """GroupNorm over one sample. y: (HW, C) f32; stats stay in f32.

    Per-group sums of [sum, sum_of_squares] use one stacked (2,C)x(C,G) MXU dot;
    the group mean / inv-std are projected back to channels with one (2,G)x(G,C)
    dot (2 tiny matmuls total instead of 4)."""
    s = jnp.sum(y, axis=0, keepdims=True)                                  # (1, C)
    ss = jnp.sum(y * y, axis=0, keepdims=True)                             # (1, C)
    stats = jnp.concatenate([s, ss], axis=0)                               # (2, C)
    g = jnp.dot(stats, mask_cg, preferred_element_type=jnp.float32) * inv_count  # (2, G)
    gmean = g[0:1]
    gvar = g[1:2] - gmean * gmean
    ginv = jax.lax.rsqrt(gvar + EPS)
    proj = jnp.dot(jnp.concatenate([gmean, ginv], axis=0), mask_gc,
                   preferred_element_type=jnp.float32)                     # (2, C)
    return (y - proj[0:1]) * proj[1:2] * gamma + beta


# ------------------------------ fused bottleneck kernel ------------------------------

def bottleneck_kernel(*refs, H, W, groups, has_downsample):
    if has_downsample:
        (x_ref, w1_ref, w2_ref, w3_ref, wd_ref,
         g1_ref, b1_ref, g2_ref, b2_ref, g3_ref, b3_ref, gd_ref, bd_ref,
         o_ref, h1pad_ref) = refs
    else:
        (x_ref, id_ref, w1_ref, w2_ref, w3_ref,
         g1_ref, b1_ref, g2_ref, b2_ref, g3_ref, b3_ref,
         o_ref, h1pad_ref) = refs

    HW = H * W
    C1 = w1_ref.shape[1]
    C4 = w3_ref.shape[1]
    # group masks hoisted (built once per grid step, reused by all GN calls)
    m1_cg, m1_gc = _group_masks(C1, groups)
    m4_cg, m4_gc = _group_masks(C4, groups)
    inv1 = 1.0 / float(HW * (C1 // groups))
    inv4 = 1.0 / float(HW * (C4 // groups))

    x = x_ref[0]                                                    # (HW, Cin) bf16

    # conv1 (1x1) + GN1 + ReLU  (bf16 MXU operands, f32 accumulation / stats)
    y1 = jnp.dot(x, w1_ref[...], preferred_element_type=jnp.float32)
    h1 = jnp.maximum(
        _group_norm(y1, g1_ref[...], b1_ref[...], m1_cg, m1_gc, inv1), 0.0)

    # Zero-padded copy of h1 kept in VMEM for the 3x3 conv (no im2col through HBM).
    h1pad_ref[...] = jnp.zeros_like(h1pad_ref)
    h1pad_ref[pl.ds(1, H), pl.ds(1, W), :] = h1.reshape(H, W, C1)

    # conv2 (3x3, pad=1, stride=1) as 9 accumulating MXU dots on shifted windows.
    acc = jnp.zeros((HW, C1), jnp.float32)
    for kh in range(3):
        for kw in range(3):
            win = h1pad_ref[pl.ds(kh, H), pl.ds(kw, W), :]          # (H, W, C1) f32
            acc = acc + jnp.dot(win.reshape(HW, C1).astype(jnp.bfloat16),
                                w2_ref[kh * 3 + kw],
                                preferred_element_type=jnp.float32)
    h2 = jnp.maximum(
        _group_norm(acc, g2_ref[...], b2_ref[...], m1_cg, m1_gc, inv1), 0.0)

    # conv3 (1x1) + GN3
    y3 = jnp.dot(h2.astype(jnp.bfloat16), w3_ref[...],
                 preferred_element_type=jnp.float32)
    y3 = _group_norm(y3, g3_ref[...], b3_ref[...], m4_cg, m4_gc, inv4)

    # Residual branch: downsample conv1x1 + GN, or the f32 identity.
    if has_downsample:
        yd = jnp.dot(x, wd_ref[...], preferred_element_type=jnp.float32)
        idn = _group_norm(yd, gd_ref[...], bd_ref[...], m4_cg, m4_gc, inv4)
    else:
        idn = id_ref[0]                                             # (HW, C4) f32

    o_ref[0] = jnp.maximum(y3 + idn, 0.0).astype(o_ref.dtype)


# ------------------------------ pallas_call wrapper ------------------------------

def bottleneck_forward(x_nchw, p, stride=1):
    """Semantically matches Bottleneck.forward for stride=1 (NCHW in/out, float32)."""
    # TODO(synk): stride>1 (strided conv2 + strided downsample) is not implemented
    # in the fused kernel; the PyTorch Bottleneck default (stride=1) is covered.
    assert stride == 1, "fused Pallas bottleneck only supports stride=1"

    x = jnp.transpose(x_nchw, (0, 2, 3, 1)).astype(jnp.float32)     # NHWC
    N, H, W, Cin = x.shape
    C1 = p["w1"].shape[1]
    C4 = p["w3"].shape[1]
    HW = H * W
    x_flat = x.reshape(N, HW, Cin)
    x_bf16 = x_flat.astype(jnp.bfloat16)
    has_downsample = (stride != 1) or (Cin != C4)

    bf = lambda a: a.astype(jnp.bfloat16)
    kern = functools.partial(bottleneck_kernel, H=H, W=W, groups=GROUPS,
                             has_downsample=has_downsample)

    if has_downsample:
        args = (x_bf16, bf(p["w1"]), bf(p["w2"]), bf(p["w3"]), bf(p["wd"]),
                p["g1"], p["b1"], p["g2"], p["b2"], p["g3"], p["b3"],
                p["gd"], p["bd"])
        in_specs = [
            pl.BlockSpec((1, HW, Cin), lambda n: (n, 0, 0)),
            pl.BlockSpec((Cin, C1), lambda n: (0, 0)),
            pl.BlockSpec((9, C1, C1), lambda n: (0, 0, 0)),
            pl.BlockSpec((C1, C4), lambda n: (0, 0)),
            pl.BlockSpec((Cin, C4), lambda n: (0, 0)),
            pl.BlockSpec((1, C1), lambda n: (0, 0)),
            pl.BlockSpec((1, C1), lambda n: (0, 0)),
            pl.BlockSpec((1, C1), lambda n: (0, 0)),
            pl.BlockSpec((1, C1), lambda n: (0, 0)),
            pl.BlockSpec((1, C4), lambda n: (0, 0)),
            pl.BlockSpec((1, C4), lambda n: (0, 0)),
            pl.BlockSpec((1, C4), lambda n: (0, 0)),
            pl.BlockSpec((1, C4), lambda n: (0, 0)),
        ]
    else:
        # identity residual is passed separately in f32 so the add stays exact
        args = (x_bf16, x_flat, bf(p["w1"]), bf(p["w2"]), bf(p["w3"]),
                p["g1"], p["b1"], p["g2"], p["b2"], p["g3"], p["b3"])
        in_specs = [
            pl.BlockSpec((1, HW, Cin), lambda n: (n, 0, 0)),
            pl.BlockSpec((1, HW, Cin), lambda n: (n, 0, 0)),
            pl.BlockSpec((Cin, C1), lambda n: (0, 0)),
            pl.BlockSpec((9, C1, C1), lambda n: (0, 0, 0)),
            pl.BlockSpec((C1, C4), lambda n: (0, 0)),
            pl.BlockSpec((1, C1), lambda n: (0, 0)),
            pl.BlockSpec((1, C1), lambda n: (0, 0)),
            pl.BlockSpec((1, C1), lambda n: (0, 0)),
            pl.BlockSpec((1, C1), lambda n: (0, 0)),
            pl.BlockSpec((1, C4), lambda n: (0, 0)),
            pl.BlockSpec((1, C4), lambda n: (0, 0)),
        ]

    out = pl.pallas_call(
        kern,
        out_shape=jax.ShapeDtypeStruct((N, HW, C4), jnp.float32),
        grid=(N,),
        in_specs=in_specs,
        out_specs=pl.BlockSpec((1, HW, C4), lambda n: (n, 0, 0)),
        scratch_shapes=[pltpu.VMEM((H + 2, W + 2, C1), jnp.float32)],
        compiler_params=pltpu.CompilerParams(
            dimension_semantics=("parallel",)),
    )(*args)

    return jnp.transpose(out.reshape(N, H, W, C4), (0, 3, 1, 2))


# ------------------------------ params & pure-JAX reference ------------------------------

def init_params(key, inplanes, planes):
    C4 = planes * 4
    ks = jax.random.split(key, 12)

    def nrm(k, shape, scale=0.1):
        return scale * jax.random.normal(k, shape, jnp.float32)

    # Parameters created in PyTorch conv-weight layout (Cout, Cin, kh, kw), then
    # converted to the matmul layouts used by the kernel.
    w1_t = nrm(ks[0], (planes, inplanes, 1, 1))
    w2_t = nrm(ks[1], (planes, planes, 3, 3))
    w3_t = nrm(ks[2], (C4, planes, 1, 1))
    wd_t = nrm(ks[3], (C4, inplanes, 1, 1))
    return dict(
        w1=w1_t[:, :, 0, 0].T,                                            # (Cin, C1)
        w2=jnp.transpose(w2_t, (2, 3, 1, 0)).reshape(9, planes, planes),  # (9, C1, C1)
        w3=w3_t[:, :, 0, 0].T,                                            # (C1, C4)
        wd=wd_t[:, :, 0, 0].T,                                            # (Cin, C4)
        g1=1.0 + nrm(ks[4], (1, planes)), b1=nrm(ks[5], (1, planes)),
        g2=1.0 + nrm(ks[6], (1, planes)), b2=nrm(ks[7], (1, planes)),
        g3=1.0 + nrm(ks[8], (1, C4)), b3=nrm(ks[9], (1, C4)),
        gd=1.0 + nrm(ks[10], (1, C4)), bd=nrm(ks[11], (1, C4)),
    )


def im2col3x3(x_nhwc, stride):
    """Reference-only im2col (padding=1, kernel 3x3)."""
    N, H, W, C = x_nhwc.shape
    Ho = (H + 2 - 3) // stride + 1
    Wo = (W + 2 - 3) // stride + 1
    xp = jnp.pad(x_nhwc, ((0, 0), (1, 1), (1, 1), (0, 0)))
    cols = []
    for kh in range(3):
        for kw in range(3):
            cols.append(xp[:, kh:kh + stride * (Ho - 1) + 1:stride,
                           kw:kw + stride * (Wo - 1) + 1:stride, :])
    patches = jnp.concatenate(cols, axis=-1)
    return patches.reshape(N, Ho * Wo, 9 * C), Ho, Wo


def _ref_gn(y, gamma, beta):
    N, HW, C = y.shape
    yg = y.reshape(N, HW, GROUPS, C // GROUPS)
    mean = yg.mean(axis=(1, 3), keepdims=True)
    var = yg.var(axis=(1, 3), keepdims=True)
    yn = ((yg - mean) / jnp.sqrt(var + EPS)).reshape(N, HW, C)
    return yn * gamma + beta


def _bdot(a, b):
    # matches the kernel's choice of bf16 MXU operands with f32 accumulation
    return jnp.matmul(a.astype(jnp.bfloat16), b.astype(jnp.bfloat16),
                      preferred_element_type=jnp.float32)


def ref_forward(x_nchw, p, stride=1):
    x = jnp.transpose(x_nchw, (0, 2, 3, 1)).astype(jnp.float32)
    N, H, W, Cin = x.shape
    C1 = p["w1"].shape[1]
    C4 = p["w3"].shape[1]
    xf = x.reshape(N, H * W, Cin)
    h1 = jax.nn.relu(_ref_gn(_bdot(xf, p["w1"]), p["g1"], p["b1"]))
    patches, Ho, Wo = im2col3x3(h1.reshape(N, H, W, C1), stride)
    h2 = jax.nn.relu(_ref_gn(_bdot(patches, p["w2"].reshape(9 * C1, C1)),
                             p["g2"], p["b2"]))
    y3 = _ref_gn(_bdot(h2, p["w3"]), p["g3"], p["b3"])
    if stride != 1 or Cin != C4:
        xd = x[:, ::stride, ::stride, :].reshape(N, Ho * Wo, Cin)
        idn = _ref_gn(_bdot(xd, p["wd"]), p["gd"], p["bd"])
    else:
        idn = xf
    out = jax.nn.relu(y3 + idn)
    return jnp.transpose(out.reshape(N, Ho, Wo, C4), (0, 3, 1, 2))


# ------------------------------ main ------------------------------

if __name__ == "__main__":
    # Small GroupNorm(16)-compatible Bottleneck: inplanes=64, planes=32
    # (expansion 4 -> C4=128, a multiple of 128 like all real ResNet bottlenecks,
    # so the output store is lane-dense), batch=2, spatial=16x16, stride=1
    # (downsample branch active since 64 != 128).
    N, inplanes, planes, H, W, stride = 2, 64, 32, 16, 16, 1

    key = jax.random.PRNGKey(0)
    kx, kp = jax.random.split(key)
    x = jax.random.normal(kx, (N, inplanes, H, W), jnp.float32)   # NCHW, like PyTorch
    params = init_params(kp, inplanes, planes)

    out = jax.block_until_ready(bottleneck_forward(x, params, stride=stride))

    ref = ref_forward(x, params, stride=stride)
    assert out.shape == (N, planes * 4, H, W)
    assert bool(jnp.allclose(out, ref, atol=3e-3, rtol=3e-3)), "mismatch vs reference"

    print("KERNEL_OK")
</pallas_src>

<mosaic_0001>
module attributes {stable_mosaic.version = 11 : i64} {
  func.func @bottleneck_kernel(%arg0: i32, %arg1: memref<1x256x64xbf16, #tpu.memory_space<vmem>>, %arg2: memref<64x32xbf16, #tpu.memory_space<vmem>>, %arg3: memref<9x32x32xbf16, #tpu.memory_space<vmem>>, %arg4: memref<32x128xbf16, #tpu.memory_space<vmem>>, %arg5: memref<64x128xbf16, #tpu.memory_space<vmem>>, %arg6: memref<1x32xf32, #tpu.memory_space<vmem>>, %arg7: memref<1x32xf32, #tpu.memory_space<vmem>>, %arg8: memref<1x32xf32, #tpu.memory_space<vmem>>, %arg9: memref<1x32xf32, #tpu.memory_space<vmem>>, %arg10: memref<1x128xf32, #tpu.memory_space<vmem>>, %arg11: memref<1x128xf32, #tpu.memory_space<vmem>>, %arg12: memref<1x128xf32, #tpu.memory_space<vmem>>, %arg13: memref<1x128xf32, #tpu.memory_space<vmem>>, %arg14: memref<1x256x128xf32, #tpu.memory_space<vmem>>, %arg15: memref<18x18x32xf32, #tpu.memory_space<vmem>>) attributes {dimension_semantics = [#tpu.dimension_semantics<parallel>], iteration_bounds = array<i64: 2>, scalar_prefetch = 0 : i64, scratch_operands = 1 : i64, tpu.core_type = #tpu.core_type<tc>, window_params = [{transform_indices = @transform_0, window_bounds = array<i64: 1, 256, 64>}, {pipeline_mode = #tpu.pipeline_mode<synchronous>, transform_indices = @transform_1, window_bounds = array<i64: 64, 32>}, {pipeline_mode = #tpu.pipeline_mode<synchronous>, transform_indices = @transform_2, window_bounds = array<i64: 9, 32, 32>}, {pipeline_mode = #tpu.pipeline_mode<synchronous>, transform_indices = @transform_3, window_bounds = array<i64: 32, 128>}, {pipeline_mode = #tpu.pipeline_mode<synchronous>, transform_indices = @transform_4, window_bounds = array<i64: 64, 128>}, {pipeline_mode = #tpu.pipeline_mode<synchronous>, transform_indices = @transform_5, window_bounds = array<i64: 1, 32>}, {pipeline_mode = #tpu.pipeline_mode<synchronous>, transform_indices = @transform_6, window_bounds = array<i64: 1, 32>}, {pipeline_mode = #tpu.pipeline_mode<synchronous>, transform_indices = @transform_7, window_bounds = array<i64: 1, 32>}, {pipeline_mode = #tpu.pipeline_mode<synchronous>, transform_indices = @transform_8, window_bounds = array<i64: 1, 32>}, {pipeline_mode = #tpu.pipeline_mode<synchronous>, transform_indices = @transform_9, window_bounds = array<i64: 1, 128>}, {pipeline_mode = #tpu.pipeline_mode<synchronous>, transform_indices = @transform_10, window_bounds = array<i64: 1, 128>}, {pipeline_mode = #tpu.pipeline_mode<synchronous>, transform_indices = @transform_11, window_bounds = array<i64: 1, 128>}, {pipeline_mode = #tpu.pipeline_mode<synchronous>, transform_indices = @transform_12, window_bounds = array<i64: 1, 128>}, {transform_indices = @transform_13, window_bounds = array<i64: 1, 256, 128>}]} {
    %0 = tpu.iota {dimensions = array<i32: 0>} : vector<32x16xi32>
    %1 = tpu.iota {dimensions = array<i32: 1>} : vector<32x16xi32>
    %c2_i32 = arith.constant 2 : i32
    %2 = vector.broadcast %c2_i32 : i32 to vector<32x16xi32>
    %3 = arith.muli %1, %2 : vector<32x16xi32>
    %4 = arith.cmpi sge, %0, %3 : vector<32x16xi32>
    %c2_i32_0 = arith.constant 2 : i32
    %5 = vector.broadcast %c2_i32_0 : i32 to vector<32x16xi32>
    %6 = arith.addi %3, %5 : vector<32x16xi32>
    %7 = arith.cmpi slt, %0, %6 : vector<32x16xi32>
    %8 = arith.andi %4, %7 : vector<32x16xi1>
    %9 = arith.extui %8 : vector<32x16xi1> to vector<32x16xi32>
    %10 = arith.sitofp %9 : vector<32x16xi32> to vector<32x16xf32>
    %11 = tpu.iota {dimensions = array<i32: 1>} : vector<16x32xi32>
    %12 = tpu.iota {dimensions = array<i32: 0>} : vector<16x32xi32>
    %c2_i32_1 = arith.constant 2 : i32
    %13 = vector.broadcast %c2_i32_1 : i32 to vector<16x32xi32>
    %14 = arith.muli %12, %13 : vector<16x32xi32>
    %15 = arith.cmpi sge, %11, %14 : vector<16x32xi32>
    %c2_i32_2 = arith.constant 2 : i32
    %16 = vector.broadcast %c2_i32_2 : i32 to vector<16x32xi32>
    %17 = arith.addi %14, %16 : vector<16x32xi32>
    %18 = arith.cmpi slt, %11, %17 : vector<16x32xi32>
    %19 = arith.andi %15, %18 : vector<16x32xi1>
    %20 = arith.extui %19 : vector<16x32xi1> to vector<16x32xi32>
    %21 = arith.sitofp %20 : vector<16x32xi32> to vector<16x32xf32>
    %22 = tpu.iota {dimensions = array<i32: 0>} : vector<128x16xi32>
    %23 = tpu.iota {dimensions = array<i32: 1>} : vector<128x16xi32>
    %c8_i32 = arith.constant 8 : i32
    %24 = vector.broadcast %c8_i32 : i32 to vector<128x16xi32>
    %25 = arith.muli %23, %24 : vector<128x16xi32>
    %26 = arith.cmpi sge, %22, %25 : vector<128x16xi32>
    %c8_i32_3 = arith.constant 8 : i32
    %27 = vector.broadcast %c8_i32_3 : i32 to vector<128x16xi32>
    %28 = arith.addi %25, %27 : vector<128x16xi32>
    %29 = arith.cmpi slt, %22, %28 : vector<128x16xi32>
    %30 = arith.andi %26, %29 : vector<128x16xi1>
    %31 = arith.extui %30 : vector<128x16xi1> to vector<128x16xi32>
    %32 = arith.sitofp %31 : vector<128x16xi32> to vector<128x16xf32>
    %33 = tpu.iota {dimensions = array<i32: 1>} : vector<16x128xi32>
    %34 = tpu.iota {dimensions = array<i32: 0>} : vector<16x128xi32>
    %c8_i32_4 = arith.constant 8 : i32
    %35 = vector.broadcast %c8_i32_4 : i32 to vector<16x128xi32>
    %36 = arith.muli %34, %35 : vector<16x128xi32>
    %37 = arith.cmpi sge, %33, %36 : vector<16x128xi32>
    %c8_i32_5 = arith.constant 8 : i32
    %38 = vector.broadcast %c8_i32_5 : i32 to vector<16x128xi32>
    %39 = arith.addi %36, %38 : vector<16x128xi32>
    %40 = arith.cmpi slt, %33, %39 : vector<16x128xi32>
    %41 = arith.andi %37, %40 : vector<16x128xi1>
    %42 = arith.extui %41 : vector<16x128xi1> to vector<16x128xi32>
    %43 = arith.sitofp %42 : vector<16x128xi32> to vector<16x128xf32>
    %c0 = arith.constant 0 : index
    %c0_6 = arith.constant 0 : index
    %c0_7 = arith.constant 0 : index
    %44 = vector.load %arg1[%c0, %c0_6, %c0_7] : memref<1x256x64xbf16, #tpu.memory_space<vmem>>, vector<1x256x64xbf16>
    %45 = vector.shape_cast %44 : vector<1x256x64xbf16> to vector<256x64xbf16>
    %c0_8 = arith.constant 0 : index
    %c0_9 = arith.constant 0 : index
    %46 = vector.load %arg2[%c0_8, %c0_9] : memref<64x32xbf16, #tpu.memory_space<vmem>>, vector<64x32xbf16>
    %cst = arith.constant dense<0.000000e+00> : vector<256x32xf32>
    %47 = tpu.matmul %45, %46, %cst {dimension_numbers = #tpu.dot_dimension_numbers<[1], [0], [0], [1], [0, 0, 1, 1], [], []>} : vector<256x64xbf16>, vector<64x32xbf16>, vector<256x32xf32> -> vector<256x32xf32>
    %c0_10 = arith.constant 0 : index
    %c0_11 = arith.constant 0 : index
    %48 = vector.load %arg6[%c0_10, %c0_11] : memref<1x32xf32, #tpu.memory_space<vmem>>, vector<1x32xf32>
    %c0_12 = arith.constant 0 : index
    %c0_13 = arith.constant 0 : index
    %49 = vector.load %arg7[%c0_12, %c0_13] : memref<1x32xf32, #tpu.memory_space<vmem>>, vector<1x32xf32>
    %cst_14 = arith.constant dense<0.000000e+00> : vector<32xf32>
    %50 = vector.multi_reduction <add>, %47, %cst_14 [0] : vector<256x32xf32> to vector<32xf32>
    %51 = vector.shape_cast %50 : vector<32xf32> to vector<1x32xf32>
    %52 = arith.mulf %47, %47 : vector<256x32xf32>
    %cst_15 = arith.constant dense<0.000000e+00> : vector<32xf32>
    %53 = vector.multi_reduction <add>, %52, %cst_15 [0] : vector<256x32xf32> to vector<32xf32>
    %54 = vector.shape_cast %53 : vector<32xf32> to vector<1x32xf32>
    %55 = tpu.concatenate %51, %54 in 0 : vector<1x32xf32>, vector<1x32xf32> -> vector<2x32xf32>
    %cst_16 = arith.constant dense<0.000000e+00> : vector<2x16xf32>
    %56 = tpu.matmul %55, %10, %cst_16 {dimension_numbers = #tpu.dot_dimension_numbers<[1], [0], [0], [1], [0, 0, 1, 1], [], []>} : vector<2x32xf32>, vector<32x16xf32>, vector<2x16xf32> -> vector<2x16xf32>
    %cst_17 = arith.constant 0.001953125 : f32
    %57 = vector.broadcast %cst_17 : f32 to vector<2x16xf32>
    %58 = arith.mulf %56, %57 : vector<2x16xf32>
    %59 = vector.extract_strided_slice %58 {offsets = [0, 0], sizes = [1, 16], strides = [1, 1]} : vector<2x16xf32> to vector<1x16xf32>
    %60 = vector.extract_strided_slice %58 {offsets = [1, 0], sizes = [1, 16], strides = [1, 1]} : vector<2x16xf32> to vector<1x16xf32>
    %61 = arith.mulf %59, %59 : vector<1x16xf32>
    %62 = arith.subf %60, %61 : vector<1x16xf32>
    %cst_18 = arith.constant 9.99999974E-6 : f32
    %63 = vector.broadcast %cst_18 : f32 to vector<1x16xf32>
    %64 = arith.addf %62, %63 : vector<1x16xf32>
    %65 = math.rsqrt %64 : vector<1x16xf32>
    %66 = tpu.concatenate %59, %65 in 0 : vector<1x16xf32>, vector<1x16xf32> -> vector<2x16xf32>
    %cst_19 = arith.constant dense<0.000000e+00> : vector<2x32xf32>
    %67 = tpu.matmul %66, %21, %cst_19 {dimension_numbers = #tpu.dot_dimension_numbers<[1], [0], [0], [1], [0, 0, 1, 1], [], []>} : vector<2x16xf32>, vector<16x32xf32>, vector<2x32xf32> -> vector<2x32xf32>
    %68 = vector.extract_strided_slice %67 {offsets = [0, 0], sizes = [1, 32], strides = [1, 1]} : vector<2x32xf32> to vector<1x32xf32>
    %69 = vector.broadcast %68 : vector<1x32xf32> to vector<256x32xf32>
    %70 = arith.subf %47, %69 : vector<256x32xf32>
    %71 = vector.extract_strided_slice %67 {offsets = [1, 0], sizes = [1, 32], strides = [1, 1]} : vector<2x32xf32> to vector<1x32xf32>
    %72 = vector.broadcast %71 : vector<1x32xf32> to vector<256x32xf32>
    %73 = arith.mulf %70, %72 : vector<256x32xf32>
    %74 = vector.broadcast %48 : vector<1x32xf32> to vector<256x32xf32>
    %75 = arith.mulf %73, %74 : vector<256x32xf32>
    %76 = vector.broadcast %49 : vector<1x32xf32> to vector<256x32xf32>
    %77 = arith.addf %75, %76 : vector<256x32xf32>
    %cst_20 = arith.constant 0.000000e+00 : f32
    %78 = vector.broadcast %cst_20 : f32 to vector<256x32xf32>
    %79 = arith.maximumf %77, %78 : vector<256x32xf32>
    %cst_21 = arith.constant 0.000000e+00 : f32
    %80 = vector.broadcast %cst_21 : f32 to vector<18x18x32xf32>
    %c0_22 = arith.constant 0 : index
    %c0_23 = arith.constant 0 : index
    %c0_24 = arith.constant 0 : index
    %81 = vector.load %arg15[%c0_22, %c0_23, %c0_24] : memref<18x18x32xf32, #tpu.memory_space<vmem>>, vector<18x18x32xf32>
    tpu.vector_store %arg15[%c0_22, %c0_23, %c0_24], %80 {strides = array<i32>} : memref<18x18x32xf32, #tpu.memory_space<vmem>>, vector<18x18x32xf32>,
    %82 = vector.shape_cast %79 : vector<256x32xf32> to vector<16x16x32xf32>
    %c1 = arith.constant 1 : index
    %c1_25 = arith.constant 1 : index
    %c0_26 = arith.constant 0 : index
    %83 = vector.load %arg15[%c1, %c1_25, %c0_26] : memref<18x18x32xf32, #tpu.memory_space<vmem>>, vector<16x16x32xf32>
    tpu.vector_store %arg15[%c1, %c1_25, %c0_26], %82 {strides = array<i32>} : memref<18x18x32xf32, #tpu.memory_space<vmem>>, vector<16x16x32xf32>,
    %cst_27 = arith.constant 0.000000e+00 : f32
    %84 = vector.broadcast %cst_27 : f32 to vector<256x32xf32>
    %c0_28 = arith.constant 0 : index
    %c0_29 = arith.constant 0 : index
    %c0_30 = arith.constant 0 : index
    %85 = vector.load %arg15[%c0_28, %c0_29, %c0_30] : memref<18x18x32xf32, #tpu.memory_space<vmem>>, vector<16x16x32xf32>
    %86 = vector.shape_cast %85 : vector<16x16x32xf32> to vector<256x32xf32>
    %87 = arith.truncf %86 : vector<256x32xf32> to vector<256x32xbf16>
    %c0_31 = arith.constant 0 : index
    %c0_32 = arith.constant 0 : index
    %c0_33 = arith.constant 0 : index
    %88 = vector.load %arg3[%c0_31, %c0_32, %c0_33] : memref<9x32x32xbf16, #tpu.memory_space<vmem>>, vector<1x32x32xbf16>
    %89 = vector.shape_cast %88 : vector<1x32x32xbf16> to vector<32x32xbf16>
    %cst_34 = arith.constant dense<0.000000e+00> : vector<256x32xf32>
    %90 = tpu.matmul %87, %89, %cst_34 {dimension_numbers = #tpu.dot_dimension_numbers<[1], [0], [0], [1], [0, 0, 1, 1], [], []>} : vector<256x32xbf16>, vector<32x32xbf16>, vector<256x32xf32> -> vector<256x32xf32>
    %91 = arith.addf %84, %90 : vector<256x32xf32>
    %c0_35 = arith.constant 0 : index
    %c1_36 = arith.constant 1 : index
    %c0_37 = arith.constant 0 : index
    %92 = vector.load %arg15[%c0_35, %c1_36, %c0_37] : memref<18x18x32xf32, #tpu.memory_space<vmem>>, vector<16x16x32xf32>
    %93 = vector.shape_cast %92 : vector<16x16x32xf32> to vector<256x32xf32>
    %94 = arith.truncf %93 : vector<256x32xf32> to vector<256x32xbf16>
    %c1_38 = arith.constant 1 : index
    %c0_39 = arith.constant 0 : index
    %c0_40 = arith.constant 0 : index
    %95 = vector.load %arg3[%c1_38, %c0_39, %c0_40] : memref<9x32x32xbf16, #tpu.memory_space<vmem>>, vector<1x32x32xbf16>
    %96 = vector.shape_cast %95 : vector<1x32x32xbf16> to vector<32x32xbf16>
    %cst_41 = arith.constant dense<0.000000e+00> : vector<256x32xf32>
    %97 = tpu.matmul %94, %96, %cst_41 {dimension_numbers = #tpu.dot_dimension_numbers<[1], [0], [0], [1], [0, 0, 1, 1], [], []>} : vector<256x32xbf16>, vector<32x32xbf16>, vector<256x32xf32> -> vector<256x32xf32>
    %98 = arith.addf %91, %97 : vector<256x32xf32>
    %c0_42 = arith.constant 0 : index
    %c2 = arith.constant 2 : index
    %c0_43 = arith.constant 0 : index
    %99 = vector.load %arg15[%c0_42, %c2, %c0_43] : memref<18x18x32xf32, #tpu.memory_space<vmem>>, vector<16x16x32xf32>
    %100 = vector.shape_cast %99 : vector<16x16x32xf32> to vector<256x32xf32>
    %101 = arith.truncf %100 : vector<256x32xf32> to vector<256x32xbf16>
    %c2_44 = arith.constant 2 : index
    %c0_45 = arith.constant 0 : index
    %c0_46 = arith.constant 0 : index
    %102 = vector.load %arg3[%c2_44, %c0_45, %c0_46] : memref<9x32x32xbf16, #tpu.memory_space<vmem>>, vector<1x32x32xbf16>
    %103 = vector.shape_cast %102 : vector<1x32x32xbf16> to vector<32x32xbf16>
    %cst_47 = arith.constant dense<0.000000e+00> : vector<256x32xf32>
    %104 = tpu.matmul %101, %103, %cst_47 {dimension_numbers = #tpu.dot_dimension_numbers<[1], [0], [0], [1], [0, 0, 1, 1], [], []>} : vector<256x32xbf16>, vector<32x32xbf16>, vector<256x32xf32> -> vector<256x32xf32>
    %105 = arith.addf %98, %104 : vector<256x32xf32>
    %c1_48 = arith.constant 1 : index
    %c0_49 = arith.constant 0 : index
    %c0_50 = arith.constant 0 : index
    %106 = vector.load %arg15[%c1_48, %c0_49, %c0_50] : memref<18x18x32xf32, #tpu.memory_space<vmem>>, vector<16x16x32xf32>
    %107 = vector.shape_cast %106 : vector<16x16x32xf32> to vector<256x32xf32>
    %108 = arith.truncf %107 : vector<256x32xf32> to vector<256x32xbf16>
    %c3 = arith.constant 3 : index
    %c0_51 = arith.constant 0 : index
    %c0_52 = arith.constant 0 : index
    %109 = vector.load %arg3[%c3, %c0_51, %c0_52] : memref<9x32x32xbf16, #tpu.memory_space<vmem>>, vector<1x32x32xbf16>
    %110 = vector.shape_cast %109 : vector<1x32x32xbf16> to vector<32x32xbf16>
    %cst_53 = arith.constant dense<0.000000e+00> : vector<256x32xf32>
    %111 = tpu.matmul %108, %110, %cst_53 {dimension_numbers = #tpu.dot_dimension_numbers<[1], [0], [0], [1], [0, 0, 1, 1], [], []>} : vector<256x32xbf16>, vector<32x32xbf16>, vector<256x32xf32> -> vector<256x32xf32>
    %112 = arith.addf %105, %111 : vector<256x32xf32>
    %c1_54 = arith.constant 1 : index
    %c1_55 = arith.constant 1 : index
    %c0_56 = arith.constant 0 : index
    %113 = vector.load %arg15[%c1_54, %c1_55, %c0_56] : memref<18x18x32xf32, #tpu.memory_space<vmem>>, vector<16x16x32xf32>
    %114 = vector.shape_cast %113 : vector<16x16x32xf32> to vector<256x32xf32>
    %115 = arith.truncf %114 : vector<256x32xf32> to vector<256x32xbf16>
    %c4 = arith.constant 4 : index
    %c0_57 = arith.constant 0 : index
    %c0_58 = arith.constant 0 : index
    %116 = vector.load %arg3[%c4, %c0_57, %c0_58] : memref<9x32x32xbf16, #tpu.memory_space<vmem>>, vector<1x32x32xbf16>
    %117 = vector.shape_cast %116 : vector<1x32x32xbf16> to vector<32x32xbf16>
    %cst_59 = arith.constant dense<0.000000e+00> : vector<256x32xf32>
    %118 = tpu.matmul %115, %117, %cst_59 {dimension_numbers = #tpu.dot_dimension_numbers<[1], [0], [0], [1], [0, 0, 1, 1], [], []>} : vector<256x32xbf16>, vector<32x32xbf16>, vector<256x32xf32> -> vector<256x32xf32>
    %119 = arith.addf %112, %118 : vector<256x32xf32>
    %c1_60 = arith.constant 1 : index
    %c2_61 = arith.constant 2 : index
    %c0_62 = arith.constant 0 : index
    %120 = vector.load %arg15[%c1_60, %c2_61, %c0_62] : memref<18x18x32xf32, #tpu.memory_space<vmem>>, vector<16x16x32xf32>
    %121 = vector.shape_cast %120 : vector<16x16x32xf32> to vector<256x32xf32>
    %122 = arith.truncf %121 : vector<256x32xf32> to vector<256x32xbf16>
    %c5 = arith.constant 5 : index
    %c0_63 = arith.constant 0 : index
    %c0_64 = arith.constant 0 : index
    %123 = vector.load %arg3[%c5, %c0_63, %c0_64] : memref<9x32x32xbf16, #tpu.memory_space<vmem>>, vector<1x32x32xbf16>
    %124 = vector.shape_cast %123 : vector<1x32x32xbf16> to vector<32x32xbf16>
    %cst_65 = arith.constant dense<0.000000e+00> : vector<256x32xf32>
    %125 = tpu.matmul %122, %124, %cst_65 {dimension_numbers = #tpu.dot_dimension_numbers<[1], [0], [0], [1], [0, 0, 1, 1], [], []>} : vector<256x32xbf16>, vector<32x32xbf16>, vector<256x32xf32> -> vector<256x32xf32>
    %126 = arith.addf %119, %125 : vector<256x32xf32>
    %c2_66 = arith.constant 2 : index
    %c0_67 = arith.constant 0 : index
    %c0_68 = arith.constant 0 : index
    %127 = vector.load %arg15[%c2_66, %c0_67, %c0_68] : memref<18x18x32xf32, #tpu.memory_space<vmem>>, vector<16x16x32xf32>
    %128 = vector.shape_cast %127 : vector<16x16x32xf32> to vector<256x32xf32>
    %129 = arith.truncf %128 : vector<256x32xf32> to vector<256x32xbf16>
    %c6 = arith.constant 6 : index
    %c0_69 = arith.constant 0 : index
    %c0_70 = arith.constant 0 : index
    %130 = vector.load %arg3[%c6, %c0_69, %c0_70] : memref<9x32x32xbf16, #tpu.memory_space<vmem>>, vector<1x32x32xbf16>
    %131 = vector.shape_cast %130 : vector<1x32x32xbf16> to vector<32x32xbf16>
    %cst_71 = arith.constant dense<0.000000e+00> : vector<256x32xf32>
    %132 = tpu.matmul %129, %131, %cst_71 {dimension_numbers = #tpu.dot_dimension_numbers<[1], [0], [0], [1], [0, 0, 1, 1], [], []>} : vector<256x32xbf16>, vector<32x32xbf16>, vector<256x32xf32> -> vector<256x32xf32>
    %133 = arith.addf %126, %132 : vector<256x32xf32>
    %c2_72 = arith.constant 2 : index
    %c1_73 = arith.constant 1 : index
    %c0_74 = arith.constant 0 : index
    %134 = vector.load %arg15[%c2_72, %c1_73, %c0_74] : memref<18x18x32xf32, #tpu.memory_space<vmem>>, vector<16x16x32xf32>
    %135 = vector.shape_cast %134 : vector<16x16x32xf32> to vector<256x32xf32>
    %136 = arith.truncf %135 : vector<256x32xf32> to vector<256x32xbf16>
    %c7 = arith.constant 7 : index
    %c0_75 = arith.constant 0 : index
    %c0_76 = arith.constant 0 : index
    %137 = vector.load %arg3[%c7, %c0_75, %c0_76] : memref<9x32x32xbf16, #tpu.memory_space<vmem>>, vector<1x32x32xbf16>
    %138 = vector.shape_cast %137 : vector<1x32x32xbf16> to vector<32x32xbf16>
    %cst_77 = arith.constant dense<0.000000e+00> : vector<256x32xf32>
    %139 = tpu.matmul %136, %138, %cst_77 {dimension_numbers = #tpu.dot_dimension_numbers<[1], [0], [0], [1], [0, 0, 1, 1], [], []>} : vector<256x32xbf16>, vector<32x32xbf16>, vector<256x32xf32> -> vector<256x32xf32>
    %140 = arith.addf %133, %139 : vector<256x32xf32>
    %c2_78 = arith.constant 2 : index
    %c2_79 = arith.constant 2 : index
    %c0_80 = arith.constant 0 : index
    %141 = vector.load %arg15[%c2_78, %c2_79, %c0_80] : memref<18x18x32xf32, #tpu.memory_space<vmem>>, vector<16x16x32xf32>
    %142 = vector.shape_cast %141 : vector<16x16x32xf32> to vector<256x32xf32>
    %143 = arith.truncf %142 : vector<256x32xf32> to vector<256x32xbf16>
    %c8 = arith.constant 8 : index
    %c0_81 = arith.constant 0 : index
    %c0_82 = arith.constant 0 : index
    %144 = vector.load %arg3[%c8, %c0_81, %c0_82] : memref<9x32x32xbf16, #tpu.memory_space<vmem>>, vector<1x32x32xbf16>
    %145 = vector.shape_cast %144 : vector<1x32x32xbf16> to vector<32x32xbf16>
    %cst_83 = arith.constant dense<0.000000e+00> : vector<256x32xf32>
    %146 = tpu.matmul %143, %145, %cst_83 {dimension_numbers = #tpu.dot_dimension_numbers<[1], [0], [0], [1], [0, 0, 1, 1], [], []>} : vector<256x32xbf16>, vector<32x32xbf16>, vector<256x32xf32> -> vector<256x32xf32>
    %147 = arith.addf %140, %146 : vector<256x32xf32>
    %c0_84 = arith.constant 0 : index
    %c0_85 = arith.constant 0 : index
    %148 = vector.load %arg8[%c0_84, %c0_85] : memref<1x32xf32, #tpu.memory_space<vmem>>, vector<1x32xf32>
    %c0_86 = arith.constant 0 : index
    %c0_87 = arith.constant 0 : index
    %149 = vector.load %arg9[%c0_86, %c0_87] : memref<1x32xf32, #tpu.memory_space<vmem>>, vector<1x32xf32>
    %cst_88 = arith.constant dense<0.000000e+00> : vector<32xf32>
    %150 = vector.multi_reduction <add>, %147, %cst_88 [0] : vector<256x32xf32> to vector<32xf32>
    %151 = vector.shape_cast %150 : vector<32xf32> to vector<1x32xf32>
    %152 = arith.mulf %147, %147 : vector<256x32xf32>
    %cst_89 = arith.constant dense<0.000000e+00> : vector<32xf32>
    %153 = vector.multi_reduction <add>, %152, %cst_89 [0] : vector<256x32xf32> to vector<32xf32>
    %154 = vector.shape_cast %153 : vector<32xf32> to vector<1x32xf32>
    %155 = tpu.concatenate %151, %154 in 0 : vector<1x32xf32>, vector<1x32xf32> -> vector<2x32xf32>
    %cst_90 = arith.constant dense<0.000000e+00> : vector<2x16xf32>
    %156 = tpu.matmul %155, %10, %cst_90 {dimension_numbers = #tpu.dot_dimension_numbers<[1], [0], [0], [1], [0, 0, 1, 1], [], []>} : vector<2x32xf32>, vector<32x16xf32>, vector<2x16xf32> -> vector<2x16xf32>
    %cst_91 = arith.constant 0.001953125 : f32
    %157 = vector.broadcast %cst_91 : f32 to vector<2x16xf32>
    %158 = arith.mulf %156, %157 : vector<2x16xf32>
    %159 = vector.extract_strided_slice %158 {offsets = [0, 0], sizes = [1, 16], strides = [1, 1]} : vector<2x16xf32> to vector<1x16xf32>
    %160 = vector.extract_strided_slice %158 {offsets = [1, 0], sizes = [1, 16], strides = [1, 1]} : vector<2x16xf32> to vector<1x16xf32>
    %161 = arith.mulf %159, %159 : vector<1x16xf32>
    %162 = arith.subf %160, %161 : vector<1x16xf32>
    %cst_92 = arith.constant 9.99999974E-6 : f32
    %163 = vector.broadcast %cst_92 : f32 to vector<1x16xf32>
    %164 = arith.addf %162, %163 : vector<1x16xf32>
    %165 = math.rsqrt %164 : vector<1x16xf32>
    %166 = tpu.concatenate %159, %165 in 0 : vector<1x16xf32>, vector<1x16xf32> -> vector<2x16xf32>
    %cst_93 = arith.constant dense<0.000000e+00> : vector<2x32xf32>
    %167 = tpu.matmul %166, %21, %cst_93 {dimension_numbers = #tpu.dot_dimension_numbers<[1], [0], [0], [1], [0, 0, 1, 1], [], []>} : vector<2x16xf32>, vector<16x32xf32>, vector<2x32xf32> -> vector<2x32xf32>
    %168 = vector.extract_strided_slice %167 {offsets = [0, 0], sizes = [1, 32], strides = [1, 1]} : vector<2x32xf32> to vector<1x32xf32>
    %169 = vector.broadcast %168 : vector<1x32xf32> to vector<256x32xf32>
    %170 = arith.subf %147, %169 : vector<256x32xf32>
    %171 = vector.extract_strided_slice %167 {offsets = [1, 0], sizes = [1, 32], strides = [1, 1]} : vector<2x32xf32> to vector<1x32xf32>
    %172 = vector.broadcast %171 : vector<1x32xf32> to vector<256x32xf32>
    %173 = arith.mulf %170, %172 : vector<256x32xf32>
    %174 = vector.broadcast %148 : vector<1x32xf32> to vector<256x32xf32>
    %175 = arith.mulf %173, %174 : vector<256x32xf32>
    %176 = vector.broadcast %149 : vector<1x32xf32> to vector<256x32xf32>
    %177 = arith.addf %175, %176 : vector<256x32xf32>
    %cst_94 = arith.constant 0.000000e+00 : f32
    %178 = vector.broadcast %cst_94 : f32 to vector<256x32xf32>
    %179 = arith.maximumf %177, %178 : vector<256x32xf32>
    %180 = arith.truncf %179 : vector<256x32xf32> to vector<256x32xbf16>
    %c0_95 = arith.constant 0 : index
    %c0_96 = arith.constant 0 : index
    %181 = vector.load %arg4[%c0_95, %c0_96] : memref<32x128xbf16, #tpu.memory_space<vmem>>, vector<32x128xbf16>
    %cst_97 = arith.constant dense<0.000000e+00> : vector<256x128xf32>
    %182 = tpu.matmul %180, %181, %cst_97 {dimension_numbers = #tpu.dot_dimension_numbers<[1], [0], [0], [1], [0, 0, 1, 1], [], []>} : vector<256x32xbf16>, vector<32x128xbf16>, vector<256x128xf32> -> vector<256x128xf32>
    %c0_98 = arith.constant 0 : index
    %c0_99 = arith.constant 0 : index
    %183 = vector.load %arg10[%c0_98, %c0_99] : memref<1x128xf32, #tpu.memory_space<vmem>>, vector<1x128xf32>
    %c0_100 = arith.constant 0 : index
    %c0_101 = arith.constant 0 : index
    %184 = vector.load %arg11[%c0_100, %c0_101] : memref<1x128xf32, #tpu.memory_space<vmem>>, vector<1x128xf32>
    %cst_102 = arith.constant dense<0.000000e+00> : vector<128xf32>
    %185 = vector.multi_reduction <add>, %182, %cst_102 [0] : vector<256x128xf32> to vector<128xf32>
    %186 = vector.shape_cast %185 : vector<128xf32> to vector<1x128xf32>
    %187 = arith.mulf %182, %182 : vector<256x128xf32>
    %cst_103 = arith.constant dense<0.000000e+00> : vector<128xf32>
    %188 = vector.multi_reduction <add>, %187, %cst_103 [0] : vector<256x128xf32> to vector<128xf32>
    %189 = vector.shape_cast %188 : vector<128xf32> to vector<1x128xf32>
    %190 = tpu.concatenate %186, %189 in 0 : vector<1x128xf32>, vector<1x128xf32> -> vector<2x128xf32>
    %cst_104 = arith.constant dense<0.000000e+00> : vector<2x16xf32>
    %191 = tpu.matmul %190, %32, %cst_104 {dimension_numbers = #tpu.dot_dimension_numbers<[1], [0], [0], [1], [0, 0, 1, 1], [], []>} : vector<2x128xf32>, vector<128x16xf32>, vector<2x16xf32> -> vector<2x16xf32>
    %cst_105 = arith.constant 4.8828125E-4 : f32
    %192 = vector.broadcast %cst_105 : f32 to vector<2x16xf32>
    %193 = arith.mulf %191, %192 : vector<2x16xf32>
    %194 = vector.extract_strided_slice %193 {offsets = [0, 0], sizes = [1, 16], strides = [1, 1]} : vector<2x16xf32> to vector<1x16xf32>
    %195 = vector.extract_strided_slice %193 {offsets = [1, 0], sizes = [1, 16], strides = [1, 1]} : vector<2x16xf32> to vector<1x16xf32>
    %196 = arith.mulf %194, %194 : vector<1x16xf32>
    %197 = arith.subf %195, %196 : vector<1x16xf32>
    %cst_106 = arith.constant 9.99999974E-6 : f32
    %198 = vector.broadcast %cst_106 : f32 to vector<1x16xf32>
    %199 = arith.addf %197, %198 : vector<1x16xf32>
    %200 = math.rsqrt %199 : vector<1x16xf32>
    %201 = tpu.concatenate %194, %200 in 0 : vector<1x16xf32>, vector<1x16xf32> -> vector<2x16xf32>
    %cst_107 = arith.constant dense<0.000000e+00> : vector<2x128xf32>
    %202 = tpu.matmul %201, %43, %cst_107 {dimension_numbers = #tpu.dot_dimension_numbers<[1], [0], [0], [1], [0, 0, 1, 1], [], []>} : vector<2x16xf32>, vector<16x128xf32>, vector<2x128xf32> -> vector<2x128xf32>
    %203 = vector.extract_strided_slice %202 {offsets = [0, 0], sizes = [1, 128], strides = [1, 1]} : vector<2x128xf32> to vector<1x128xf32>
    %204 = vector.broadcast %203 : vector<1x128xf32> to vector<256x128xf32>
    %205 = arith.subf %182, %204 : vector<256x128xf32>
    %206 = vector.extract_strided_slice %202 {offsets = [1, 0], sizes = [1, 128], strides = [1, 1]} : vector<2x128xf32> to vector<1x128xf32>
    %207 = vector.broadcast %206 : vector<1x128xf32> to vector<256x128xf32>
    %208 = arith.mulf %205, %207 : vector<256x128xf32>
    %209 = vector.broadcast %183 : vector<1x128xf32> to vector<256x128xf32>
    %210 = arith.mulf %208, %209 : vector<256x128xf32>
    %211 = vector.broadcast %184 : vector<1x128xf32> to vector<256x128xf32>
    %212 = arith.addf %210, %211 : vector<256x128xf32>
    %c0_108 = arith.constant 0 : index
    %c0_109 = arith.constant 0 : index
    %213 = vector.load %arg5[%c0_108, %c0_109] : memref<64x128xbf16, #tpu.memory_space<vmem>>, vector<64x128xbf16>
    %cst_110 = arith.constant dense<0.000000e+00> : vector<256x128xf32>
    %214 = tpu.matmul %45, %213, %cst_110 {dimension_numbers = #tpu.dot_dimension_numbers<[1], [0], [0], [1], [0, 0, 1, 1], [], []>} : vector<256x64xbf16>, vector<64x128xbf16>, vector<256x128xf32> -> vector<256x128xf32>
    %c0_111 = arith.constant 0 : index
    %c0_112 = arith.constant 0 : index
    %215 = vector.load %arg12[%c0_111, %c0_112] : memref<1x128xf32, #tpu.memory_space<vmem>>, vector<1x128xf32>
    %c0_113 = arith.constant 0 : index
    %c0_114 = arith.constant 0 : index
    %216 = vector.load %arg13[%c0_113, %c0_114] : memref<1x128xf32, #tpu.memory_space<vmem>>, vector<1x128xf32>
    %cst_115 = arith.constant dense<0.000000e+00> : vector<128xf32>
    %217 = vector.multi_reduction <add>, %214, %cst_115 [0] : vector<256x128xf32> to vector<128xf32>
    %218 = vector.shape_cast %217 : vector<128xf32> to vector<1x128xf32>
    %219 = arith.mulf %214, %214 : vector<256x128xf32>
    %cst_116 = arith.constant dense<0.000000e+00> : vector<128xf32>
    %220 = vector.multi_reduction <add>, %219, %cst_116 [0] : vector<256x128xf32> to vector<128xf32>
    %221 = vector.shape_cast %220 : vector<128xf32> to vector<1x128xf32>
    %222 = tpu.concatenate %218, %221 in 0 : vector<1x128xf32>, vector<1x128xf32> -> vector<2x128xf32>
    %cst_117 = arith.constant dense<0.000000e+00> : vector<2x16xf32>
    %223 = tpu.matmul %222, %32, %cst_117 {dimension_numbers = #tpu.dot_dimension_numbers<[1], [0], [0], [1], [0, 0, 1, 1], [], []>} : vector<2x128xf32>, vector<128x16xf32>, vector<2x16xf32> -> vector<2x16xf32>
    %cst_118 = arith.constant 4.8828125E-4 : f32
    %224 = vector.broadcast %cst_118 : f32 to vector<2x16xf32>
    %225 = arith.mulf %223, %224 : vector<2x16xf32>
    %226 = vector.extract_strided_slice %225 {offsets = [0, 0], sizes = [1, 16], strides = [1, 1]} : vector<2x16xf32> to vector<1x16xf32>
    %227 = vector.extract_strided_slice %225 {offsets = [1, 0], sizes = [1, 16], strides = [1, 1]} : vector<2x16xf32> to vector<1x16xf32>
    %228 = arith.mulf %226, %226 : vector<1x16xf32>
    %229 = arith.subf %227, %228 : vector<1x16xf32>
    %cst_119 = arith.constant 9.99999974E-6 : f32
    %230 = vector.broadcast %cst_119 : f32 to vector<1x16xf32>
    %231 = arith.addf %229, %230 : vector<1x16xf32>
    %232 = math.rsqrt %231 : vector<1x16xf32>
    %233 = tpu.concatenate %226, %232 in 0 : vector<1x16xf32>, vector<1x16xf32> -> vector<2x16xf32>
    %cst_120 = arith.constant dense<0.000000e+00> : vector<2x128xf32>
    %234 = tpu.matmul %233, %43, %cst_120 {dimension_numbers = #tpu.dot_dimension_numbers<[1], [0], [0], [1], [0, 0, 1, 1], [], []>} : vector<2x16xf32>, vector<16x128xf32>, vector<2x128xf32> -> vector<2x128xf32>
    %235 = vector.extract_strided_slice %234 {offsets = [0, 0], sizes = [1, 128], strides = [1, 1]} : vector<2x128xf32> to vector<1x128xf32>
    %236 = vector.broadcast %235 : vector<1x128xf32> to vector<256x128xf32>
    %237 = arith.subf %214, %236 : vector<256x128xf32>
    %238 = vector.extract_strided_slice %234 {offsets = [1, 0], sizes = [1, 128], strides = [1, 1]} : vector<2x128xf32> to vector<1x128xf32>
    %239 = vector.broadcast %238 : vector<1x128xf32> to vector<256x128xf32>
    %240 = arith.mulf %237, %239 : vector<256x128xf32>
    %241 = vector.broadcast %215 : vector<1x128xf32> to vector<256x128xf32>
    %242 = arith.mulf %240, %241 : vector<256x128xf32>
    %243 = vector.broadcast %216 : vector<1x128xf32> to vector<256x128xf32>
    %244 = arith.addf %242, %243 : vector<256x128xf32>
    %245 = arith.addf %212, %244 : vector<256x128xf32>
    %cst_121 = arith.constant 0.000000e+00 : f32
    %246 = vector.broadcast %cst_121 : f32 to vector<256x128xf32>
    %247 = arith.maximumf %245, %246 : vector<256x128xf32>
    %c0_122 = arith.constant 0 : index
    %c0_123 = arith.constant 0 : index
    %c0_124 = arith.constant 0 : index
    %248 = vector.load %arg14[%c0_122, %c0_123, %c0_124] : memref<1x256x128xf32, #tpu.memory_space<vmem>>, vector<1x256x128xf32>
    %249 = vector.shape_cast %248 : vector<1x256x128xf32> to vector<256x128xf32>
    %250 = vector.shape_cast %247 : vector<256x128xf32> to vector<1x256x128xf32>
    tpu.vector_store %arg14[%c0_122, %c0_123, %c0_124], %250 {strides = array<i32>} : memref<1x256x128xf32, #tpu.memory_space<vmem>>, vector<1x256x128xf32>,
    return
  }
  func.func @transform_0(%arg0: i32) -> (i32, i32, i32) {
    %c0_i32 = arith.constant 0 : i32
    %c0_i32_0 = arith.constant 0 : i32
    %c0_i32_1 = arith.constant 0 : i32
    return %arg0, %c0_i32, %c0_i32_0 : i32, i32, i32
  }
  func.func @transform_1(%arg0: i32) -> (i32, i32) {
    %c0_i32 = arith.constant 0 : i32
    %c0_i32_0 = arith.constant 0 : i32
    %c0_i32_1 = arith.constant 0 : i32
    return %c0_i32, %c0_i32_0 : i32, i32
  }
  func.func @transform_2(%arg0: i32) -> (i32, i32, i32) {
    %c0_i32 = arith.constant 0 : i32
    %c0_i32_0 = arith.constant 0 : i32
    %c0_i32_1 = arith.constant 0 : i32
    %c0_i32_2 = arith.constant 0 : i32
    return %c0_i32, %c0_i32_0, %c0_i32_1 : i32, i32, i32
  }
  func.func @transform_3(%arg0: i32) -> (i32, i32) {
    %c0_i32 = arith.constant 0 : i32
    %c0_i32_0 = arith.constant 0 : i32
    %c0_i32_1 = arith.constant 0 : i32
    return %c0_i32, %c0_i32_0 : i32, i32
  }
  func.func @transform_4(%arg0: i32) -> (i32, i32) {
    %c0_i32 = arith.constant 0 : i32
    %c0_i32_0 = arith.constant 0 : i32
    %c0_i32_1 = arith.constant 0 : i32
    return %c0_i32, %c0_i32_0 : i32, i32
  }
  func.func @transform_5(%arg0: i32) -> (i32, i32) {
    %c0_i32 = arith.constant 0 : i32
    %c0_i32_0 = arith.constant 0 : i32
    %c0_i32_1 = arith.constant 0 : i32
    return %c0_i32, %c0_i32_0 : i32, i32
  }
  func.func @transform_6(%arg0: i32) -> (i32, i32) {
    %c0_i32 = arith.constant 0 : i32
    %c0_i32_0 = arith.constant 0 : i32
    %c0_i32_1 = arith.constant 0 : i32
    return %c0_i32, %c0_i32_0 : i32, i32
  }
  func.func @transform_7(%arg0: i32) -> (i32, i32) {
    %c0_i32 = arith.constant 0 : i32
    %c0_i32_0 = arith.constant 0 : i32
    %c0_i32_1 = arith.constant 0 : i32
    return %c0_i32, %c0_i32_0 : i32, i32
  }
  func.func @transform_8(%arg0: i32) -> (i32, i32) {
    %c0_i32 = arith.constant 0 : i32
    %c0_i32_0 = arith.constant 0 : i32
    %c0_i32_1 = arith.constant 0 : i32
    return %c0_i32, %c0_i32_0 : i32, i32
  }
  func.func @transform_9(%arg0: i32) -> (i32, i32) {
    %c0_i32 = arith.constant 0 : i32
    %c0_i32_0 = arith.constant 0 : i32
    %c0_i32_1 = arith.constant 0 : i32
    return %c0_i32, %c0_i32_0 : i32, i32
  }
  func.func @transform_10(%arg0: i32) -> (i32, i32) {
    %c0_i32 = arith.constant 0 : i32
    %c0_i32_0 = arith.constant 0 : i32
    %c0_i32_1 = arith.constant 0 : i32
    return %c0_i32, %c0_i32_0 : i32, i32
  }
  func.func @transform_11(%arg0: i32) -> (i32, i32) {
    %c0_i32 = arith.constant 0 : i32
    %c0_i32_0 = arith.constant 0 : i32
    %c0_i32_1 = arith.constant 0 : i32
    return %c0_i32, %c0_i32_0 : i32, i32
  }
  func.func @transform_12(%arg0: i32) -> (i32, i32) {
    %c0_i32 = arith.constant 0 : i32
    %c0_i32_0 = arith.constant 0 : i32
    %c0_i32_1 = arith.constant 0 : i32
    return %c0_i32, %c0_i32_0 : i32, i32
  }
  func.func @transform_13(%arg0: i32) -> (i32, i32, i32) {
    %c0_i32 = arith.constant 0 : i32
    %c0_i32_0 = arith.constant 0 : i32
    %c0_i32_1 = arith.constant 0 : i32
    return %arg0, %c0_i32, %c0_i32_0 : i32, i32, i32
  }
}

</mosaic_0001>

<bundles_post_ra>
// kernel: tpu_custom_call.1
= control target key start
LH: loop header
LB: loop body
LE: loop exit
PB: predicated region body
PF: predicated region fallthrough
CT: control target
= control target key end

     0   :  { %s10868_s0 = inlined_call_operand.vmem [shape: bf16[2,256,64], index: 0, kind: input, shape index: {}]   ;;  %s10869_s1 = inlined_call_operand.vmem [shape: bf16[64,32], index: 1, kind: input, shape index: {}]   ;;  %s10870_s2 = inlined_call_operand.vmem [shape: bf16[9,32,32], index: 2, kind: input, shape index: {}]   ;;  %s10871_s3 = inlined_call_operand.vmem [shape: bf16[32,128], index: 3, kind: input, shape index: {}]   ;;  %s10872_s4 = inlined_call_operand.vmem [shape: bf16[64,128], index: 4, kind: input, shape index: {}]   ;;  %s10873_s5 = inlined_call_operand.vmem [shape: f32[1,32], index: 5, kind: input, shape index: {}]   ;;  %s10874_s6 = inlined_call_operand.vmem [shape: f32[1,32], index: 6, kind: input, shape index: {}]   ;;  %s10875_s7 = inlined_call_operand.vmem [shape: f32[1,32], index: 7, kind: input, shape index: {}]   ;;  %s10876_s8 = inlined_call_operand.vmem [shape: f32[1,32], index: 8, kind: input, shape index: {}]   ;;  %s10877_s9 = inlined_call_operand.vmem [shape: f32[1,128], index: 9, kind: input, shape index: {}]   ;;  %s10878_s10 = inlined_call_operand.vmem [shape: f32[1,128], index: 10, kind: input, shape index: {}]   ;;  %s10879_s11 = inlined_call_operand.vmem [shape: f32[1,128], index: 11, kind: input, shape index: {}]   ;;  %s10880_s12 = inlined_call_operand.vmem [shape: f32[1,128], index: 12, kind: input, shape index: {}]   ;;  %s10881_s13 = inlined_call_operand.hbm [shape: f32[2,256,128], index: 13, kind: output, shape index: {}]  }
   0x1   :  { %10962 = sst [smem:[#allocation56_spill]] %s10868_s0 }
   0x2   :  { %18 = vsyncpa [#allocation4], 0 }
   0x3   :  { %20 = vsyncpa [#allocation4 + $0x1], 0  ;;  %s7956_s25 = smov 0   ;;  %s7958_s26 = smov 0  }
   0x4   :  { %s7960_s27 = smov 0   ;;  %s7962_s28 = smov 0  }
   0x5 LB: > { %s7977_s29 = sadd.s32 4294967295, %s7877_s28   ;;  %s6166_s30 = sadd.s32 4294967294, %s7877_s28   ;;  %s7877_s28 = sphi %s7962_s28, %s11198_s28   ;;  %s7873_s27 = sphi %s7960_s27, %s11197_s27   ;;  %s7869_s26 = sphi %s7958_s26, %s11196_s26   ;;  %s7865_s25 = sphi %s7956_s25, %s11195_s25  }
   0x6   : > { %s7981_s14 = sadd.s32 1, %s7877_s28   ;;  %s311_s15 = sadd.s32 1, %s7873_s27 }
   0x7   : > { %s308_s16 = ssub.s32 %s7877_s28, %s7981_s14  ;;  %p321_p0 = scmp.ne.s32.totalorder %s7873_s27, %s7869_s26 }
   0x8   : > { %p309_p1 = scmp.eq.s32.totalorder %s308_s16, 0  ;;  %p322_p2 = scmp.eq.s32.totalorder %s7977_s29, 1 }
   0x9   : > { %p327_p3 = scmp.ne.s32.totalorder %s7869_s26, %s7865_s25  ;;  %p328_p4 = scmp.eq.s32.totalorder %s6166_s30, 1 }
   0xa   : > { %s7992_s17 = scalar_select %p309_p1, %s7873_s27, %s311_s15  }
   0xb   : > { %p7994_p5 = por %p322_p2, %p321_p0  ;;  %p7998_p6 = por %p328_p4, %p327_p3 }
   0xc   : > { %10963 = sst [smem:[#allocation6_spill]] %s7992_s17  ;;  %p6169_p7 = scmp.ge.s32.totalorder %s7877_s28, 1 }
   0xd   : > { %p390_p8 = scmp.lt.s32.totalorder %s7877_s28, 3 }
   0xf   : > { %p391_p9 = pnand %p6169_p7, %p390_p8 }
  0x11   : > { %394 = sbr.rel (%p391_p9) target bundleno = 3292 (0xcdc), region = 72 }
  0x18   : > { %v7747_v0 = vld [vmem:[%s10869_s1] sm:$0xff]   ;;  %p434_p10 = scmp.lt.s32.totalorder %s7977_s29, 1  ;;  %v7748_v1 = vld [vmem:[%s10869_s1 + $0x8] sm:$0xff]   ;;  %vm10886_vm0 = vcmask 523264   ;;  %v7749_v2 = vld [vmem:[%s10869_s1 + $0x10] sm:$0xff]   ;;  %s10966_s0 = sld [smem:[#allocation56_spill]]  ;;  %v440_v22 = vlaneseq }
  0x19   : > { %6810 = vmatprep.subr.bf16.mxu0 %v7747_v0  ;;  %v7750_v4 = vld [vmem:[%s10869_s1 + $0x18] sm:$0xff]   ;;  %vm947_vm1 = vcmask 261120   ;;  %v10882_v20 = vmov 0.0   ;;  %vm1458_vm2 = vcmask 254976   ;;  %v10884_v21 = vmov 0.0|0.0   ;;  %s431_s23 = sand.u32 1, %s7869_s26  }
  0x1a   : > { %s435_s24 = scalar_select %p434_p10, %s7977_s29, 1  ;;  %6811 = vmatpush3.bf16.msra.mxu0 %v7747_v0  ;;  %1463 = vst.msk [vmem:[#allocation2 + $0x30] sm:$0xff] %vm947_vm1, %v10882_v20  ;;  %1464 = vst.msk [vmem:[#allocation2 + $0x38] sm:$0xff] %vm947_vm1, %v10882_v20  ;;  %7376 = vmatprep.subr.bf16.mxu1 %v10884_v21  ;;  %v8165_v23 = vshrl.u32 %v440_v22, 7  ;;  %v8167_v24 = vand.u32 127, %v440_v22 }
  0x1b   : > { %6812 = vmatprep.subr.bf16.mxu0 %v7748_v1  ;;  %1456 = vst.msk [vmem:[#allocation2] sm:$0xff] %vm947_vm1, %v10882_v20  ;;  %1457 = vst.msk [vmem:[#allocation2 + $0x8] sm:$0xff] %vm947_vm1, %v10882_v20  ;;  %v10887_v30 = vmov 1.0|1.0   ;;  %s10827_s20 = scalar_lea.sflag [#allocation4], %s431_s23 }
  0x1c   : > { %s6532_s16 = sshll.u32 %s435_s24, 7  ;;  %1460 = vst.msk [vmem:[#allocation2 + $0x18] sm:$0xff] %vm947_vm1, %v10882_v20  ;;  %1461 = vst.msk [vmem:[#allocation2 + $0x20] sm:$0xff] %vm947_vm1, %v10882_v20  ;;  %v8170_v25 = vadd.s32 8, %v8165_v23  ;;  %v447_v26 = vmul.u32 2, %v8167_v24  ;;  %v8197_v31 = vadd.s32 16, %v8165_v23 }
  0x1d   : > { %1466 = vst.msk [vmem:[#allocation2 + $0x48] sm:$0xff] %vm947_vm1, %v10882_v20  ;;  %1467 = vst.msk [vmem:[#allocation2 + $0x50] sm:$0xff] %vm947_vm1, %v10882_v20  ;;  %v8200_v32 = vadd.s32 24, %v8165_v23  ;;  %s6533_s24 = sshll.u32 %s7977_s29, 12 }
  0x1e   : > { %s8018_s21 = scalar_lea.vmem %s10966_s0, %s6532_s16  ;;  %6813 = vmatpush3.bf16.msra.mxu0 %v7748_v1  ;;  %1469 = vst.msk [vmem:[#allocation2 + $0x60] sm:$0xff] %vm947_vm1, %v10882_v20  ;;  %1470 = vst.msk [vmem:[#allocation2 + $0x68] sm:$0xff] %vm947_vm1, %v10882_v20  ;;  %vm448_vm3 = vcmp.ge.s32.totalorder %v8165_v23, %v447_v26  ;;  %v452_v27 = vadd.s32 2, %v447_v26  ;;  %vm449_vm4 = vcmp.ge.s32.totalorder %v8170_v25, %v447_v26  ;;  %s10805_s16 = scalar_lea.hbm %s10881_s13, %s6533_s24 }
  0x1f   : > { %v7751_v3 = vld [vmem:[%s8018_s21] sm:$0xff]   ;;  %6814 = vmatprep.subr.bf16.mxu0 %v7749_v2  ;;  %v7752_v5 = vld [vmem:[%s8018_s21 + $0x8] sm:$0xff]   ;;  %v7753_v6 = vld [vmem:[%s8018_s21 + $0x10] sm:$0xff]   ;;  %1472 = vst.msk [vmem:[#allocation2 + $0x78] sm:$0xff] %vm947_vm1, %v10882_v20  ;;  %vm450_vm10 = vcmp.ge.s32.totalorder %v8197_v31, %v447_v26  ;;  %vm451_vm11 = vcmp.ge.s32.totalorder %v8200_v32, %v447_v26 }
  0x20   : > { %6818 = vmatprep.mubr.msk.bf16.mxu0 %vm10886_vm0, %v7751_v3  ;;  %v7754_v7 = vld [vmem:[%s8018_s21 + $0x18] sm:$0xff]   ;;  %v7755_v8 = vld [vmem:[%s8018_s21 + $0x20] sm:$0xff]   ;;  %v7756_v9 = vld [vmem:[%s8018_s21 + $0x28] sm:$0xff]   ;;  %1473 = vst.msk [vmem:[#allocation2 + $0x80] sm:$0xff] %vm947_vm1, %v10882_v20  ;;  %vm453_vm5 = vcmp.lt.s32.totalorder %v8165_v23, %v452_v27  ;;  %vm454_vm6 = vcmp.lt.s32.totalorder %v8170_v25, %v452_v27  ;;  %vm455_vm12 = vcmp.lt.s32.totalorder %v8197_v31, %v452_v27 }
  0x21   : > { %v7757_v10 = vld [vmem:[%s8018_s21 + $0x30] sm:$0xff]   ;;  %v7758_v11 = vld [vmem:[%s8018_s21 + $0x38] sm:$0xff]   ;;  %v7759_v12 = vld [vmem:[%s8018_s21 + $0x40] sm:$0xff]   ;;  %1475 = vst.msk [vmem:[#allocation2 + $0x90] sm:$0xff] %vm947_vm1, %v10882_v20  ;;  %vm456_vm13 = vcmp.lt.s32.totalorder %v8200_v32, %v452_v27 }
  0x22   : > { %6815 = vmatpush3.bf16.msra.mxu0 %v7749_v2  ;;  %v7760_v13 = vld [vmem:[%s8018_s21 + $0x48] sm:$0xff]   ;;  %v7761_v14 = vld [vmem:[%s8018_s21 + $0x50] sm:$0xff]   ;;  %v7762_v15 = vld [vmem:[%s8018_s21 + $0x58] sm:$0xff]   ;;  %1476 = vst.msk [vmem:[#allocation2 + $0x98] sm:$0xff] %vm947_vm1, %v10882_v20 }
  0x23   : > { %6816 = vmatprep.subr.bf16.mxu0 %v7750_v4  ;;  %v7763_v16 = vld [vmem:[%s8018_s21 + $0x60] sm:$0xff]   ;;  %v7764_v17 = vld [vmem:[%s8018_s21 + $0x68] sm:$0xff]   ;;  %v7765_v18 = vld [vmem:[%s8018_s21 + $0x70] sm:$0xff]   ;;  %1478 = vst.msk [vmem:[#allocation2 + $0xa8] sm:$0xff] %vm947_vm1, %v10882_v20 }
  0x24   : > { %v7766_v19 = vld [vmem:[%s8018_s21 + $0x78] sm:$0xff]   ;;  %1479 = vst.msk [vmem:[#allocation2 + $0xb0] sm:$0xff] %vm947_vm1, %v10882_v20  ;;  %1481 = vst.msk [vmem:[#allocation2 + $0xc0] sm:$0xff] %vm947_vm1, %v10882_v20 }
  0x25   : > { %1482 = vst.msk [vmem:[#allocation2 + $0xc8] sm:$0xff] %vm947_vm1, %v10882_v20  ;;  %1484 = vst.msk [vmem:[#allocation2 + $0xd8] sm:$0xff] %vm947_vm1, %v10882_v20 }
  0x26   : > { %6817 = vmatpush3.bf16.msra.mxu0 %v7750_v4  ;;  %1485 = vst.msk [vmem:[#allocation2 + $0xe0] sm:$0xff] %vm947_vm1, %v10882_v20  ;;  %1487 = vst.msk [vmem:[#allocation2 + $0xf0] sm:$0xff] %vm947_vm1, %v10882_v20 }
  0x27   : > { %1488 = vst.msk [vmem:[#allocation2 + $0xf8] sm:$0xff] %vm947_vm1, %v10882_v20  ;;  %1490 = vst.msk [vmem:[#allocation2 + $0x108] sm:$0xff] %vm947_vm1, %v10882_v20  ;;  %7370 = vmatprep.subr.bf16.mxu0 %v10884_v21 }
  0x28   : > { %1491 = vst.msk [vmem:[#allocation2 + $0x110] sm:$0xff] %vm947_vm1, %v10882_v20  ;;  %1493 = vst.msk [vmem:[#allocation2 + $0x120] sm:$0xff] %vm947_vm1, %v10882_v20 }
  0x29   : > { %6819 = vmatmul.mubr.msk.bf16.vlgmr.msra.gmra.mrb[0].mxu0 %vm10886_vm0, %v7752_v5  ;;  %1494 = vst.msk [vmem:[#allocation2 + $0x128] sm:$0xff] %vm947_vm1, %v10882_v20  ;;  %1496 = vst.msk [vmem:[#allocation2 + $0x138] sm:$0xff] %vm947_vm1, %v10882_v20 }
  0x2a   : > { %6822 = vmatprep.mubr.msk.bf16.mxu0 %vm10886_vm0, %v7753_v6  ;;  %1497 = vst.msk [vmem:[#allocation2 + $0x140] sm:$0xff] %vm947_vm1, %v10882_v20  ;;  %1499 = vst.msk [vmem:[#allocation2 + $0x150] sm:$0xff] %vm947_vm1, %v10882_v20 }
  0x2b   : > { %1500 = vst.msk [vmem:[#allocation2 + $0x158] sm:$0xff] %vm947_vm1, %v10882_v20  ;;  %1502 = vst.msk [vmem:[#allocation2 + $0x168] sm:$0xff] %vm947_vm1, %v10882_v20 }
  0x2c   : > { %1503 = vst.msk [vmem:[#allocation2 + $0x170] sm:$0xff] %vm947_vm1, %v10882_v20  ;;  %1505 = vst.msk [vmem:[#allocation2 + $0x180] sm:$0xff] %vm947_vm1, %v10882_v20 }
  0x2d   : > { %1506 = vst.msk [vmem:[#allocation2 + $0x188] sm:$0xff] %vm947_vm1, %v10882_v20  ;;  %1508 = vst.msk [vmem:[#allocation2 + $0x198] sm:$0xff] %vm947_vm1, %v10882_v20 }
  0x2e   : > { %1509 = vst.msk [vmem:[#allocation2 + $0x1a0] sm:$0xff] %vm947_vm1, %v10882_v20  ;;  %10967 = vst [vmem:[#allocation7_spill] sm:$0xff] %v8165_v23 }
  0x2f   : > { %1465 = vst.msk [vmem:[#allocation2 + $0x40] sm:$0x3] %vm1458_vm2, %v10882_v20  ;;  %1459 = vst.msk [vmem:[#allocation2 + $0x10] sm:$0x3] %vm1458_vm2, %v10882_v20 }
  0x30   : > { %1462 = vst.msk [vmem:[#allocation2 + $0x28] sm:$0x3] %vm1458_vm2, %v10882_v20  ;;  %1468 = vst.msk [vmem:[#allocation2 + $0x58] sm:$0x3] %vm1458_vm2, %v10882_v20 }
  0x31   : > { %6823 = vmatmul.mubr.msk.bf16.gmra.mrb[4].mxu0 %vm10886_vm0, %v7754_v7  ;;  %1471 = vst.msk [vmem:[#allocation2 + $0x70] sm:$0x3] %vm1458_vm2, %v10882_v20  ;;  %1474 = vst.msk [vmem:[#allocation2 + $0x88] sm:$0x3] %vm1458_vm2, %v10882_v20 }
  0x32   : > { %6826 = vmatprep.mubr.msk.bf16.mxu0 %vm10886_vm0, %v7755_v8  ;;  %1477 = vst.msk [vmem:[#allocation2 + $0xa0] sm:$0x3] %vm1458_vm2, %v10882_v20  ;;  %1480 = vst.msk [vmem:[#allocation2 + $0xb8] sm:$0x3] %vm1458_vm2, %v10882_v20 }
  0x33   : > { %1483 = vst.msk [vmem:[#allocation2 + $0xd0] sm:$0x3] %vm1458_vm2, %v10882_v20  ;;  %1486 = vst.msk [vmem:[#allocation2 + $0xe8] sm:$0x3] %vm1458_vm2, %v10882_v20 }
  0x34   : > { %1489 = vst.msk [vmem:[#allocation2 + $0x100] sm:$0x3] %vm1458_vm2, %v10882_v20  ;;  %1492 = vst.msk [vmem:[#allocation2 + $0x118] sm:$0x3] %vm1458_vm2, %v10882_v20 }
  0x35   : > { %1495 = vst.msk [vmem:[#allocation2 + $0x130] sm:$0x3] %vm1458_vm2, %v10882_v20  ;;  %1498 = vst.msk [vmem:[#allocation2 + $0x148] sm:$0x3] %vm1458_vm2, %v10882_v20 }
  0x36   : > { %1501 = vst.msk [vmem:[#allocation2 + $0x160] sm:$0x3] %vm1458_vm2, %v10882_v20  ;;  %1504 = vst.msk [vmem:[#allocation2 + $0x178] sm:$0x3] %vm1458_vm2, %v10882_v20 }
  0x37   : > { %1507 = vst.msk [vmem:[#allocation2 + $0x190] sm:$0x3] %vm1458_vm2, %v10882_v20  ;;  %1510 = vst.msk [vmem:[#allocation2 + $0x1a8] sm:$0x3] %vm1458_vm2, %v10882_v20 }
  0x38   : > { %10968 = vst [vmem:[#allocation8_spill] sm:$0xff] %v8167_v24  ;;  %10969 = vst [vmem:[#allocation9_spill] sm:$0xff] %v8170_v25 }
  0x39   : > { %6827 = vmatmul.mubr.msk.bf16.gmra.mrb[8].mxu0 %vm10886_vm0, %v7756_v9  ;;  %vm8177_vm7 = vmand %vm448_vm3, %vm453_vm5  ;;  %10974 = vst [vmem:[#allocation10_spill] sm:$0xff] %v8197_v31  ;;  %vm10907_vm3 = vmmov 0  }
  0x3a   : > { %6830 = vmatprep.mubr.msk.bf16.mxu0 %vm10886_vm0, %v7757_v10  ;;  %vm8181_vm8 = vmand %vm449_vm4, %vm454_vm6  ;;  %10975 = vst [vmem:[#allocation11_spill] sm:$0xff] %v8200_v32  ;;  %6865 = vmatprep.mubr.msk.f32.mxu1 %vm10907_vm3, %v10882_v20  ;;  %vm10910_vm4 = vcmask 1040384  }
  0x3b   : > { %vm7371_vm9 = vmpackc.low %vm8181_vm8, %vm8177_vm7 }
  0x3c   : > { %7372 = vmatpush3.bf16.msk.msra.mxu0 %vm7371_vm9, %v10887_v30  ;;  %vm8206_vm14 = vmand %vm450_vm10, %vm455_vm12 }
  0x3d   : > { %7373 = vmatprep.subr.bf16.mxu0 %v10884_v21  ;;  %vm8210_vm15 = vmand %vm451_vm11, %vm456_vm13 }
  0x3e   : > { %vm7374_vm2 = vmpackc.low %vm8210_vm15, %vm8206_vm14 }
  0x40   : > { %7375 = vmatpush3.bf16.msk.msra.mxu0 %vm7374_vm2, %v10887_v30 }
  0x41   : > { %6831 = vmatmul.mubr.msk.bf16.gmra.mrb[12].mxu0 %vm10886_vm0, %v7758_v11 }
  0x42   : > { %6834 = vmatprep.mubr.msk.bf16.mxu0 %vm10886_vm0, %v7759_v12 }
  0x49   : > { %6835 = vmatmul.mubr.msk.bf16.gmra.mrb[16].mxu0 %vm10886_vm0, %v7760_v13 }
  0x4a   : > { %6838 = vmatprep.mubr.msk.bf16.mxu0 %vm10886_vm0, %v7761_v14 }
  0x51   : > { %6839 = vmatmul.mubr.msk.bf16.gmra.mrb[20].mxu0 %vm10886_vm0, %v7762_v15 }
  0x52   : > { %6842 = vmatprep.mubr.msk.bf16.mxu0 %vm10886_vm0, %v7763_v16 }
  0x59   : > { %6843 = vmatmul.mubr.msk.bf16.gmra.mrb[24].mxu0 %vm10886_vm0, %v7764_v17 }
  0x5a   : > { %6846 = vmatprep.mubr.msk.bf16.mxu0 %vm10886_vm0, %v7765_v18 }
  0x61   : > { %6847 = vmatmul.mubr.msk.bf16.gmra.mrb[28].mxu0 %vm10886_vm0, %v7766_v19 }
  0x62   : > { %6858 = vmatprep.mubr.msk.f32.mxu0 %vm10907_vm3, %v10882_v20 }
  0xfc   : > { %v8228_v35 = vpop.f32.mrb[0].mxu0 }
  0xfd   : > { %v8230_v36 = vpop.f32.mrb[1].mxu0  ;;  %v1019_v40 = vmul.f32 %v8228_v35, %v8228_v35  ;;  %v951_v45 = vsel %vm947_vm1, %v8228_v35, 0.0 }
  0xfe   : > { %v1017_v37 = vmul.f32 %v8230_v36, %v8230_v36  ;;  %v8234_v38 = vpop.f32.mrb[2].mxu0  ;;  %v948_v41 = vsel %vm947_vm1, %v8230_v36, 0.0 }
  0xff   : > { %v8236_v39 = vpop.f32.mrb[3].mxu0  ;;  %v1020_v47 = vmul.f32 %v8234_v38, %v8234_v38  ;;  %v1052_v51 = vsel %vm947_vm1, %v1019_v40, 0.0  ;;  %v953_v52 = vsel %vm947_vm1, %v8234_v38, 0.0 }
 0x100   : > { %v949_v42 = vsel %vm947_vm1, %v8236_v39, 0.0  ;;  %v1018_v43 = vmul.f32 %v8236_v39, %v8236_v39  ;;  %v1049_v46 = vsel %vm947_vm1, %v1017_v37, 0.0 }
 0x101   : > { %v950_v44 = vadd.f32 %v949_v42, %v948_v41  ;;  %v1054_v57 = vsel %vm947_vm1, %v1020_v47, 0.0 }
 0x102   : > { %v1050_v48 = vsel %vm947_vm1, %v1018_v43, 0.0 }
 0x103   : > { %v952_v49 = vadd.f32 %v951_v45, %v950_v44  ;;  %v1051_v50 = vadd.f32 %v1050_v48, %v1049_v46 }
 0x104   : > { %v8255_v53 = vpop.f32.mrb[4].mxu0 }
 0x105   : > { %v1053_v54 = vadd.f32 %v1052_v51, %v1051_v50  ;;  %v8257_v55 = vpop.f32.mrb[5].mxu0  ;;  %v954_v56 = vadd.f32 %v953_v52, %v952_v49  ;;  %v1023_v0 = vmul.f32 %v8255_v53, %v8255_v53  ;;  %v959_v6 = vsel %vm947_vm1, %v8255_v53, 0.0 }
 0x106   : > { %v955_v58 = vsel %vm947_vm1, %v8257_v55, 0.0  ;;  %v1021_v59 = vmul.f32 %v8257_v55, %v8257_v55  ;;  %v8264_v60 = vpop.f32.mrb[6].mxu0 }
 0x107   : > { %v956_v61 = vadd.f32 %v955_v58, %v954_v56  ;;  %v1055_v62 = vadd.f32 %v1054_v57, %v1053_v54  ;;  %v8266_v63 = vpop.f32.mrb[7].mxu0  ;;  %v1024_v7 = vmul.f32 %v8264_v60, %v8264_v60  ;;  %v1060_v11 = vsel %vm947_vm1, %v1023_v0, 0.0 }
 0x108   : > { %v1056_v1 = vsel %vm947_vm1, %v1021_v59, 0.0  ;;  %v957_v2 = vsel %vm947_vm1, %v8266_v63, 0.0  ;;  %v1022_v3 = vmul.f32 %v8266_v63, %v8266_v63  ;;  %v961_v12 = vsel %vm947_vm1, %v8264_v60, 0.0 }
 0x109   : > { %v1057_v4 = vadd.f32 %v1056_v1, %v1055_v62  ;;  %v958_v5 = vadd.f32 %v957_v2, %v956_v61  ;;  %v1062_v17 = vsel %vm947_vm1, %v1024_v7, 0.0 }
 0x10a   : > { %v1058_v8 = vsel %vm947_vm1, %v1022_v3, 0.0 }
 0x10b   : > { %v960_v9 = vadd.f32 %v959_v6, %v958_v5  ;;  %v1059_v10 = vadd.f32 %v1058_v8, %v1057_v4 }
 0x10c   : > { %v8283_v13 = vpop.f32.mrb[8].mxu0 }
 0x10d   : > { %v1061_v14 = vadd.f32 %v1060_v11, %v1059_v10  ;;  %v8285_v15 = vpop.f32.mrb[9].mxu0  ;;  %v962_v16 = vadd.f32 %v961_v12, %v960_v9  ;;  %v1027_v40 = vmul.f32 %v8283_v13, %v8283_v13  ;;  %v967_v46 = vsel %vm947_vm1, %v8283_v13, 0.0 }
 0x10e   : > { %v963_v18 = vsel %vm947_vm1, %v8285_v15, 0.0  ;;  %v1025_v19 = vmul.f32 %v8285_v15, %v8285_v15  ;;  %v8292_v22 = vpop.f32.mrb[10].mxu0 }
 0x10f   : > { %v964_v26 = vadd.f32 %v963_v18, %v962_v16  ;;  %v1063_v27 = vadd.f32 %v1062_v17, %v1061_v14  ;;  %v8294_v37 = vpop.f32.mrb[11].mxu0  ;;  %v1028_v47 = vmul.f32 %v8292_v22, %v8292_v22  ;;  %v1068_v51 = vsel %vm947_vm1, %v1027_v40, 0.0 }
 0x110   : > { %v1064_v41 = vsel %vm947_vm1, %v1025_v19, 0.0  ;;  %v965_v42 = vsel %vm947_vm1, %v8294_v37, 0.0  ;;  %v1026_v43 = vmul.f32 %v8294_v37, %v8294_v37  ;;  %v969_v52 = vsel %vm947_vm1, %v8292_v22, 0.0 }
 0x111   : > { %v1065_v44 = vadd.f32 %v1064_v41, %v1063_v27  ;;  %v966_v45 = vadd.f32 %v965_v42, %v964_v26  ;;  %v1070_v59 = vsel %vm947_vm1, %v1028_v47, 0.0 }
 0x112   : > { %v1066_v48 = vsel %vm947_vm1, %v1026_v43, 0.0 }
 0x113   : > { %v968_v49 = vadd.f32 %v967_v46, %v966_v45  ;;  %v1067_v50 = vadd.f32 %v1066_v48, %v1065_v44 }
 0x114   : > { %v8311_v54 = vpop.f32.mrb[12].mxu0 }
 0x115   : > { %v1069_v56 = vadd.f32 %v1068_v51, %v1067_v50  ;;  %v8313_v57 = vpop.f32.mrb[13].mxu0  ;;  %v970_v58 = vadd.f32 %v969_v52, %v968_v49  ;;  %v1031_v4 = vmul.f32 %v8311_v54, %v8311_v54  ;;  %v975_v10 = vsel %vm947_vm1, %v8311_v54, 0.0 }
 0x116   : > { %v971_v61 = vsel %vm947_vm1, %v8313_v57, 0.0  ;;  %v1029_v62 = vmul.f32 %v8313_v57, %v8313_v57  ;;  %v8320_v0 = vpop.f32.mrb[14].mxu0 }
 0x117   : > { %v972_v1 = vadd.f32 %v971_v61, %v970_v58  ;;  %v1071_v2 = vadd.f32 %v1070_v59, %v1069_v56  ;;  %v8322_v3 = vpop.f32.mrb[15].mxu0  ;;  %v1032_v11 = vmul.f32 %v8320_v0, %v8320_v0  ;;  %v1076_v17 = vsel %vm947_vm1, %v1031_v4, 0.0 }
 0x118   : > { %v1072_v5 = vsel %vm947_vm1, %v1029_v62, 0.0  ;;  %v973_v6 = vsel %vm947_vm1, %v8322_v3, 0.0  ;;  %v1030_v7 = vmul.f32 %v8322_v3, %v8322_v3  ;;  %v977_v18 = vsel %vm947_vm1, %v8320_v0, 0.0 }
 0x119   : > { %v1073_v8 = vadd.f32 %v1072_v5, %v1071_v2  ;;  %v974_v9 = vadd.f32 %v973_v6, %v972_v1  ;;  %v1078_v41 = vsel %vm947_vm1, %v1032_v11, 0.0 }
 0x11a   : > { %v1074_v12 = vsel %vm947_vm1, %v1030_v7, 0.0 }
 0x11b   : > { %v976_v14 = vadd.f32 %v975_v10, %v974_v9  ;;  %v1075_v16 = vadd.f32 %v1074_v12, %v1073_v8 }
 0x11c   : > { %v8339_v19 = vpop.f32.mrb[16].mxu0 }
 0x11d   : > { %v1077_v26 = vadd.f32 %v1076_v17, %v1075_v16  ;;  %v8341_v27 = vpop.f32.mrb[17].mxu0  ;;  %v978_v40 = vadd.f32 %v977_v18, %v976_v14  ;;  %v1035_v48 = vmul.f32 %v8339_v19, %v8339_v19  ;;  %v983_v58 = vsel %vm947_vm1, %v8339_v19, 0.0 }
 0x11e   : > { %v979_v42 = vsel %vm947_vm1, %v8341_v27, 0.0  ;;  %v1033_v43 = vmul.f32 %v8341_v27, %v8341_v27  ;;  %v8348_v44 = vpop.f32.mrb[18].mxu0 }
 0x11f   : > { %v980_v45 = vadd.f32 %v979_v42, %v978_v40  ;;  %v1079_v46 = vadd.f32 %v1078_v41, %v1077_v26  ;;  %v8350_v47 = vpop.f32.mrb[19].mxu0  ;;  %v1036_v59 = vmul.f32 %v8348_v44, %v8348_v44  ;;  %v1084_v2 = vsel %vm947_vm1, %v1035_v48, 0.0 }
 0x120   : > { %v1080_v49 = vsel %vm947_vm1, %v1033_v43, 0.0  ;;  %v981_v50 = vsel %vm947_vm1, %v8350_v47, 0.0  ;;  %v1034_v51 = vmul.f32 %v8350_v47, %v8350_v47  ;;  %v985_v4 = vsel %vm947_vm1, %v8348_v44, 0.0 }
 0x121   : > { %v1081_v52 = vadd.f32 %v1080_v49, %v1079_v46  ;;  %v982_v56 = vadd.f32 %v981_v50, %v980_v45  ;;  %v1086_v9 = vsel %vm947_vm1, %v1036_v59, 0.0 }
 0x122   : > { %v1082_v61 = vsel %vm947_vm1, %v1034_v51, 0.0 }
 0x123   : > { %v984_v62 = vadd.f32 %v983_v58, %v982_v56  ;;  %v1083_v1 = vadd.f32 %v1082_v61, %v1081_v52 }
 0x124   : > { %v8367_v5 = vpop.f32.mrb[20].mxu0 }
 0x125   : > { %v1085_v6 = vadd.f32 %v1084_v2, %v1083_v1  ;;  %v8369_v7 = vpop.f32.mrb[21].mxu0  ;;  %v986_v8 = vadd.f32 %v985_v4, %v984_v62  ;;  %v1039_v18 = vmul.f32 %v8367_v5, %v8367_v5  ;;  %v991_v45 = vsel %vm947_vm1, %v8367_v5, 0.0 }
 0x126   : > { %v987_v10 = vsel %vm947_vm1, %v8369_v7, 0.0  ;;  %v1037_v11 = vmul.f32 %v8369_v7, %v8369_v7  ;;  %v8376_v12 = vpop.f32.mrb[22].mxu0 }
 0x127   : > { %v988_v14 = vadd.f32 %v987_v10, %v986_v8  ;;  %v1087_v16 = vadd.f32 %v1086_v9, %v1085_v6  ;;  %v8378_v17 = vpop.f32.mrb[23].mxu0  ;;  %v1040_v46 = vmul.f32 %v8376_v12, %v8376_v12  ;;  %v1092_v51 = vsel %vm947_vm1, %v1039_v18, 0.0 }
 0x128   : > { %v1088_v26 = vsel %vm947_vm1, %v1037_v11, 0.0  ;;  %v989_v40 = vsel %vm947_vm1, %v8378_v17, 0.0  ;;  %v1038_v41 = vmul.f32 %v8378_v17, %v8378_v17  ;;  %v993_v52 = vsel %vm947_vm1, %v8376_v12, 0.0 }
 0x129   : > { %v1089_v42 = vadd.f32 %v1088_v26, %v1087_v16  ;;  %v990_v43 = vadd.f32 %v989_v40, %v988_v14  ;;  %v1094_v62 = vsel %vm947_vm1, %v1040_v46, 0.0 }
 0x12a   : > { %v1090_v48 = vsel %vm947_vm1, %v1038_v41, 0.0 }
 0x12b   : > { %v992_v49 = vadd.f32 %v991_v45, %v990_v43  ;;  %v1091_v50 = vadd.f32 %v1090_v48, %v1089_v42 }
 0x12c   : > { %v8395_v56 = vpop.f32.mrb[24].mxu0 }
 0x12d   : > { %v1093_v58 = vadd.f32 %v1092_v51, %v1091_v50  ;;  %v8397_v59 = vpop.f32.mrb[25].mxu0  ;;  %v994_v61 = vadd.f32 %v993_v52, %v992_v49  ;;  %v1043_v10 = vmul.f32 %v8395_v56, %v8395_v56  ;;  %v999_v40 = vsel %vm947_vm1, %v8395_v56, 0.0 }
 0x12e   : > { %v995_v1 = vsel %vm947_vm1, %v8397_v59, 0.0  ;;  %v1041_v2 = vmul.f32 %v8397_v59, %v8397_v59  ;;  %v8404_v4 = vpop.f32.mrb[26].mxu0 }
 0x12f   : > { %v996_v6 = vadd.f32 %v995_v1, %v994_v61  ;;  %v1095_v8 = vadd.f32 %v1094_v62, %v1093_v58  ;;  %v8406_v9 = vpop.f32.mrb[27].mxu0  ;;  %v1044_v41 = vmul.f32 %v8404_v4, %v8404_v4  ;;  %v1100_v46 = vsel %vm947_vm1, %v1043_v10, 0.0 }
 0x130   : > { %v1096_v11 = vsel %vm947_vm1, %v1041_v2, 0.0  ;;  %v997_v14 = vsel %vm947_vm1, %v8406_v9, 0.0  ;;  %v1042_v16 = vmul.f32 %v8406_v9, %v8406_v9  ;;  %v1001_v48 = vsel %vm947_vm1, %v8404_v4, 0.0 }
 0x131   : > { %v1097_v18 = vadd.f32 %v1096_v11, %v1095_v8  ;;  %v998_v26 = vadd.f32 %v997_v14, %v996_v6  ;;  %v1102_v58 = vsel %vm947_vm1, %v1044_v41, 0.0 }
 0x132   : > { %v1098_v42 = vsel %vm947_vm1, %v1042_v16, 0.0 }
 0x133   : > { %v1000_v43 = vadd.f32 %v999_v40, %v998_v26  ;;  %v1099_v45 = vadd.f32 %v1098_v42, %v1097_v18 }
 0x134   : > { %v8423_v49 = vpop.f32.mrb[28].mxu0 }
 0x135   : > { %v1101_v50 = vadd.f32 %v1100_v46, %v1099_v45  ;;  %v8425_v51 = vpop.f32.mrb[29].mxu0  ;;  %v1002_v52 = vadd.f32 %v1001_v48, %v1000_v43  ;;  %v1047_v10 = vmul.f32 %v8423_v49, %v8423_v49  ;;  %v1007_v40 = vsel %vm947_vm1, %v8423_v49, 0.0 }
 0x136   : > { %v1003_v61 = vsel %vm947_vm1, %v8425_v51, 0.0  ;;  %v1045_v62 = vmul.f32 %v8425_v51, %v8425_v51  ;;  %v8432_v1 = vpop.f32.mrb[30].mxu0 }
 0x137   : > { %v1004_v2 = vadd.f32 %v1003_v61, %v1002_v52  ;;  %v1103_v6 = vadd.f32 %v1102_v58, %v1101_v50  ;;  %v8434_v8 = vpop.f32.mrb[31].mxu0  ;;  %v1048_v41 = vmul.f32 %v8432_v1, %v8432_v1  ;;  %v1108_v46 = vsel %vm947_vm1, %v1047_v10, 0.0 }
 0x138   : > { %v1104_v11 = vsel %vm947_vm1, %v1045_v62, 0.0  ;;  %v1005_v14 = vsel %vm947_vm1, %v8434_v8, 0.0  ;;  %v1046_v16 = vmul.f32 %v8434_v8, %v8434_v8  ;;  %v1009_v48 = vsel %vm947_vm1, %v8432_v1, 0.0 }
 0x139   : > { %v1105_v18 = vadd.f32 %v1104_v11, %v1103_v6  ;;  %v1006_v26 = vadd.f32 %v1005_v14, %v1004_v2  ;;  %v1110_v58 = vsel %vm947_vm1, %v1048_v41, 0.0  ;;  %v469_v41 = vmul.u32 2, %v8165_v23 }
 0x13a   : > { %v1106_v42 = vsel %vm947_vm1, %v1046_v16, 0.0 }
 0x13b   : > { %v1008_v43 = vadd.f32 %v1007_v40, %v1006_v26  ;;  %v1107_v45 = vadd.f32 %v1106_v42, %v1105_v18  ;;  %vm471_vm5 = vcmp.ge.s32.totalorder %v8167_v24, %v469_v41 }
 0x13d   : > { %v1010_v50 = vadd.f32 %v1009_v48, %v1008_v43  ;;  %v1109_v52 = vadd.f32 %v1108_v46, %v1107_v45  ;;  %v470_v43 = vmul.u32 2, %v8170_v25  ;;  %v473_v45 = vadd.s32 2, %v469_v41  ;;  %v8504_v41 = vld [vmem:[%s10870_s2 + $0x30] sm:$0xff]  }
 0x13f   : > { %v1011_v61 = vrot.slane %v1010_v50, 4  ;;  %v1111_v62 = vadd.f32 %v1110_v58, %v1109_v52  ;;  %v474_v46 = vadd.s32 2, %v470_v43  ;;  %vm472_vm6 = vcmp.ge.s32.totalorder %v8167_v24, %v470_v43  ;;  %v8510_v43 = vld [vmem:[%s10870_s2] sm:$0xff]  }
 0x140   : > { %vm475_vm10 = vcmp.lt.s32.totalorder %v8167_v24, %v473_v45  ;;  %v8514_v45 = vsub.s32 0, %v8165_v23 }
 0x141   : > { %v1012_v2 = vadd.f32 %v1011_v61, %v1010_v50  ;;  %v1112_v6 = vrot.slane %v1111_v62, 4  ;;  %vm476_vm11 = vcmp.lt.s32.totalorder %v8167_v24, %v474_v46  ;;  %vm8460_vm12 = vmand %vm471_vm5, %vm475_vm10  ;;  %vm10906_vm5 = vcmask 130048  }
 0x142   : > { %vm8464_vm13 = vmand %vm472_vm6, %vm476_vm11  ;;  %10984 = vst [vmem:[#allocation12_spill] sm:$0xff] %v8514_v45  ;;  %v8517_v46 = vsub.s32 1, %v8165_v23 }
 0x143   : > { %v1013_v11 = vrot.slane %v1012_v2, 2  ;;  %v1113_v14 = vadd.f32 %v1112_v6, %v1111_v62  ;;  %vm7377_vm0 = vmpackc.low %vm8464_vm13, %vm8460_vm12 }
 0x144   : > { %7378 = vmatpush3.bf16.msk.msra.mxu1 %vm7377_vm0, %v10887_v30  ;;  %10985 = vst [vmem:[#allocation13_spill] sm:$0xff] %v8517_v46 }
 0x145   : > { %v1014_v20 = vadd.f32 %v1013_v11, %v1012_v2  ;;  %v1114_v21 = vrot.slane %v1113_v14, 2 }
 0x147   : > { %v1015_v16 = vrot.slane %v1014_v20, 1  ;;  %v1115_v26 = vadd.f32 %v1114_v21, %v1113_v14  ;;  %v7767_v14 = vld [vmem:[%s10870_s2 + $0x10] sm:$0xff]   ;;  %v7786_v21 = vld [vmem:[%s10871_s3 + $0x8] sm:$0xff]  }
 0x148   : > { %6868 = vmatprep.subr.bf16.mxu0 %v7767_v14 }
 0x149   : > { %v1116_v18 = vrot.slane %v1115_v26, 1  ;;  %v1016_v10 = vadd.f32 %v1015_v16, %v1014_v20  ;;  %v8486_v16 = vld [vmem:[%s10870_s2 + $0x20] sm:$0xff]  }
 0x14a   : > { %7442 = vmatprep.subr.bf16.mxu1 %v8486_v16  ;;  %v7785_v20 = vld [vmem:[%s10871_s3] sm:$0xff]  }
 0x14b   : > { %v1117_v40 = vadd.f32 %v1116_v18, %v1115_v26  ;;  %v7769_v26 = vld [vmem:[%s10870_s2 + $0x18] sm:$0xff]   ;;  %v8494_v18 = vld [vmem:[%s10870_s2 + $0x28] sm:$0xff]  }
 0x14d   : > { %v1119_v42 = vsel %vm10910_vm4, %v1016_v10, %v1117_v40  ;;  %v1596_v10 = vld [vmem:[#allocation2 + $0x1] sm:$0xff]  ;;  %v1597_v40 = vld [vmem:[#allocation2 + $0x9] sm:$0xff] }
 0x14e   : > { %6859 = vmatmul.mubr.msk.f32.vlgmr.msra.gmra.mrb[32].mxu0 %vm947_vm1, %v1119_v42  ;;  %v1628_v42 = vpack.c.bf16 %v1597_v40, %v1596_v10 }
 0x14f   : > { %6869 = vmatpush3.bf16.msra.mxu0 %v7767_v14 }
 0x150   : > { %6870 = vmatprep.subr.bf16.mxu0 %v7769_v26  ;;  %6872 = vmatprep.mubr.msk.bf16.mxu0 %vm947_vm1, %v1628_v42 }
 0x153   : > { %6871 = vmatpush3.bf16.msra.mxu0 %v7769_v26 }
 0x154   : > { %6904 = vmatprep.subr.bf16.mxu0 %v8510_v43 }
 0x221   : > { %v1189_v48 = vpop.f32.mrb[32].mxu0 }
 0x222   : > { %v1193_v50 = vmul.f32 0.001953125, %v1189_v48  ;;  %v6860_v52 = vpop.f32.mrb[33].mxu0 }
 0x224   : > { %v1194_v58 = vmul.f32 %v1193_v50, %v1193_v50 }
 0x226   : > { %v1196_v61 = vrot.slane %v1194_v58, 7 }
 0x228   : > { %v1198_v62 = vsub.f32 %v1193_v50, %v1196_v61 }
 0x22a   : > { %v1199_v2 = vadd.f32 1e-05, %v1198_v62 }
 0x22c   : > { %7791 = vrsqrt.f32 %v1199_v2 }
 0x236   : > { %v7792_v6 = vpop.eup %7791 }
 0x237   : > { %v1201_v11 = vsel %vm10910_vm4, %v1193_v50, %v7792_v6 }
 0x238   : > { %6866 = vmatmul.mubr.msk.f32.vlgmr.msra.gmra.mrb[0].mxu1 %vm10906_vm5, %v1201_v11 }
 0x239   : > { %7444 = vmatpush3.bf16.msra.mxu1 %v8486_v16 }
 0x23a   : > { %7443 = vmatprep.subr.bf16.mxu1 %v8494_v18 }
 0x23d   : > { %7445 = vmatpush3.bf16.msra.mxu1 %v8494_v18 }
 0x23e   : > { %6976 = vmatprep.subr.bf16.mxu1 %v8504_v41 }
 0x30b   : > { %v1272_v48 = vpop.f32.mrb[0].mxu1 }
 0x30c   : > { %v8520_v50 = vrot.slane %v1272_v48, %v8514_v45  ;;  %v6867_v52 = vpop.f32.mrb[1].mxu1  ;;  %v8523_v58 = vrot.slane %v1272_v48, %v8517_v46 }
 0x30e   : > { %v1280_v61 = vsub.f32 %v8230_v36, %v8520_v50  ;;  %v1281_v62 = vsub.f32 %v8236_v39, %v8520_v50  ;;  %v1282_v2 = vsub.f32 %v8228_v35, %v8520_v50  ;;  %v1283_v6 = vsub.f32 %v8234_v38, %v8520_v50 }
 0x30f   : > { %v1284_v11 = vsub.f32 %v8257_v55, %v8520_v50  ;;  %v1285_v14 = vsub.f32 %v8266_v63, %v8520_v50  ;;  %v1286_v26 = vsub.f32 %v8255_v53, %v8520_v50  ;;  %v1287_v36 = vsub.f32 %v8264_v60, %v8520_v50 }
 0x310   : > { %v1288_v39 = vsub.f32 %v8285_v15, %v8520_v50  ;;  %v1289_v35 = vsub.f32 %v8294_v37, %v8520_v50  ;;  %v1290_v38 = vsub.f32 %v8283_v13, %v8520_v50  ;;  %v1291_v55 = vsub.f32 %v8292_v22, %v8520_v50 }
 0x311   : > { %v1292_v63 = vsub.f32 %v8313_v57, %v8520_v50  ;;  %v1293_v53 = vsub.f32 %v8322_v3, %v8520_v50  ;;  %v1294_v60 = vsub.f32 %v8311_v54, %v8520_v50  ;;  %v1295_v15 = vsub.f32 %v8320_v0, %v8520_v50 }
 0x312   : > { %v1296_v37 = vsub.f32 %v8341_v27, %v8520_v50  ;;  %v1297_v13 = vsub.f32 %v8350_v47, %v8520_v50  ;;  %v1298_v22 = vsub.f32 %v8339_v19, %v8520_v50  ;;  %v1299_v57 = vsub.f32 %v8348_v44, %v8520_v50 }
 0x313   : > { %v1300_v3 = vsub.f32 %v8369_v7, %v8520_v50  ;;  %v1301_v54 = vsub.f32 %v8378_v17, %v8520_v50  ;;  %v1302_v0 = vsub.f32 %v8367_v5, %v8520_v50  ;;  %v1303_v27 = vsub.f32 %v8376_v12, %v8520_v50 }
 0x314   : > { %v1304_v47 = vsub.f32 %v8397_v59, %v8520_v50  ;;  %v1305_v19 = vsub.f32 %v8406_v9, %v8520_v50  ;;  %v1306_v44 = vsub.f32 %v8395_v56, %v8520_v50  ;;  %v1307_v7 = vsub.f32 %v8404_v4, %v8520_v50 }
 0x315   : > { %v1308_v17 = vsub.f32 %v8425_v51, %v8520_v50  ;;  %v1309_v5 = vsub.f32 %v8434_v8, %v8520_v50  ;;  %v1310_v12 = vsub.f32 %v8423_v49, %v8520_v50  ;;  %v1311_v59 = vsub.f32 %v8432_v1, %v8520_v50 }
 0x316   : > { %v1316_v9 = vmul.f32 %v8523_v58, %v1280_v61  ;;  %v1317_v10 = vmul.f32 %v8523_v58, %v1281_v62  ;;  %v1318_v56 = vmul.f32 %v8523_v58, %v1282_v2  ;;  %v1319_v4 = vmul.f32 %v8523_v58, %v1283_v6 }
 0x317   : > { %v1320_v40 = vmul.f32 %v8523_v58, %v1284_v11  ;;  %v1321_v51 = vmul.f32 %v8523_v58, %v1285_v14  ;;  %v1322_v8 = vmul.f32 %v8523_v58, %v1286_v26  ;;  %v1323_v42 = vmul.f32 %v8523_v58, %v1287_v36  ;;  %v6241_v36 = vld [vmem:[%s10873_s5] ss:$0 sm:$0xff] }
 0x318   : > { %v1324_v49 = vmul.f32 %v8523_v58, %v1288_v39  ;;  %v1325_v1 = vmul.f32 %v8523_v58, %v1289_v35  ;;  %v1326_v48 = vmul.f32 %v8523_v58, %v1290_v38  ;;  %v1327_v50 = vmul.f32 %v8523_v58, %v1291_v55 }
 0x319   : > { %v1328_v52 = vmul.f32 %v8523_v58, %v1292_v63  ;;  %v1329_v61 = vmul.f32 %v8523_v58, %v1293_v53  ;;  %v1330_v62 = vmul.f32 %v8523_v58, %v1294_v60  ;;  %v1331_v2 = vmul.f32 %v8523_v58, %v1295_v15 }
 0x31a   : > { %v1332_v6 = vmul.f32 %v8523_v58, %v1296_v37  ;;  %v1333_v11 = vmul.f32 %v8523_v58, %v1297_v13  ;;  %v1334_v14 = vmul.f32 %v8523_v58, %v1298_v22  ;;  %v1335_v26 = vmul.f32 %v8523_v58, %v1299_v57 }
 0x31b   : > { %v1336_v39 = vmul.f32 %v8523_v58, %v1300_v3  ;;  %v1337_v35 = vmul.f32 %v8523_v58, %v1301_v54  ;;  %v1338_v38 = vmul.f32 %v8523_v58, %v1302_v0  ;;  %v1339_v55 = vmul.f32 %v8523_v58, %v1303_v27 }
 0x31c   : > { %v1340_v63 = vmul.f32 %v8523_v58, %v1304_v47  ;;  %v1341_v53 = vmul.f32 %v8523_v58, %v1305_v19  ;;  %v1342_v60 = vmul.f32 %v8523_v58, %v1306_v44  ;;  %v1343_v15 = vmul.f32 %v8523_v58, %v1307_v7 }
 0x31d   : > { %v1344_v37 = vmul.f32 %v8523_v58, %v1308_v17  ;;  %v1345_v13 = vmul.f32 %v8523_v58, %v1309_v5  ;;  %v1346_v22 = vmul.f32 %v8523_v58, %v1310_v12  ;;  %v1347_v57 = vmul.f32 %v8523_v58, %v1311_v59  ;;  %v6242_v59 = vld [vmem:[%s10874_s6] ss:$0 sm:$0xff] }
 0x31e   : > { %v1354_v3 = vmul.f32 %v6241_v36, %v1316_v9  ;;  %v1355_v54 = vmul.f32 %v6241_v36, %v1317_v10  ;;  %v1356_v0 = vmul.f32 %v6241_v36, %v1318_v56  ;;  %v1357_v27 = vmul.f32 %v6241_v36, %v1319_v4 }
 0x31f   : > { %v1358_v30 = vmul.f32 %v6241_v36, %v1320_v40  ;;  %v1359_v47 = vmul.f32 %v6241_v36, %v1321_v51  ;;  %v1360_v32 = vmul.f32 %v6241_v36, %v1322_v8  ;;  %v1361_v19 = vmul.f32 %v6241_v36, %v1323_v42 }
 0x320   : > { %v1362_v31 = vmul.f32 %v6241_v36, %v1324_v49  ;;  %v1363_v44 = vmul.f32 %v6241_v36, %v1325_v1  ;;  %v1364_v25 = vmul.f32 %v6241_v36, %v1326_v48  ;;  %v1365_v7 = vmul.f32 %v6241_v36, %v1327_v50 }
 0x321   : > { %v1366_v23 = vmul.f32 %v6241_v36, %v1328_v52  ;;  %v1367_v17 = vmul.f32 %v6241_v36, %v1329_v61  ;;  %v1368_v24 = vmul.f32 %v6241_v36, %v1330_v62  ;;  %v1369_v5 = vmul.f32 %v6241_v36, %v1331_v2 }
 0x322   : > { %v1370_v46 = vmul.f32 %v6241_v36, %v1332_v6  ;;  %v1371_v12 = vmul.f32 %v6241_v36, %v1333_v11  ;;  %v1372_v45 = vmul.f32 %v6241_v36, %v1334_v14  ;;  %v1373_v58 = vmul.f32 %v6241_v36, %v1335_v26 }
 0x323   : > { %v1374_v9 = vmul.f32 %v6241_v36, %v1336_v39  ;;  %v1375_v10 = vmul.f32 %v6241_v36, %v1337_v35  ;;  %v1376_v56 = vmul.f32 %v6241_v36, %v1338_v38  ;;  %v1377_v4 = vmul.f32 %v6241_v36, %v1339_v55 }
 0x324   : > { %v1378_v40 = vmul.f32 %v6241_v36, %v1340_v63  ;;  %v1379_v51 = vmul.f32 %v6241_v36, %v1341_v53  ;;  %v1380_v8 = vmul.f32 %v6241_v36, %v1342_v60  ;;  %v1381_v42 = vmul.f32 %v6241_v36, %v1343_v15 }
 0x325   : > { %v1382_v49 = vmul.f32 %v6241_v36, %v1344_v37  ;;  %v1383_v1 = vmul.f32 %v6241_v36, %v1345_v13  ;;  %v1384_v48 = vmul.f32 %v6241_v36, %v1346_v22  ;;  %v1385_v50 = vmul.f32 %v6241_v36, %v1347_v57 }
 0x326   : > { %v1392_v52 = vadd.f32 %v6242_v59, %v1354_v3  ;;  %v1393_v61 = vadd.f32 %v6242_v59, %v1355_v54  ;;  %v1394_v62 = vadd.f32 %v6242_v59, %v1356_v0  ;;  %v1395_v2 = vadd.f32 %v6242_v59, %v1357_v27 }
 0x327   : > { %v1396_v6 = vadd.f32 %v6242_v59, %v1358_v30  ;;  %v1397_v11 = vadd.f32 %v6242_v59, %v1359_v47  ;;  %v1398_v14 = vadd.f32 %v6242_v59, %v1360_v32  ;;  %v1399_v26 = vadd.f32 %v6242_v59, %v1361_v19 }
 0x328   : > { %v1400_v39 = vadd.f32 %v6242_v59, %v1362_v31  ;;  %v1401_v35 = vadd.f32 %v6242_v59, %v1363_v44  ;;  %v1402_v38 = vadd.f32 %v6242_v59, %v1364_v25  ;;  %v1403_v55 = vadd.f32 %v6242_v59, %v1365_v7 }
 0x329   : > { %v1404_v63 = vadd.f32 %v6242_v59, %v1366_v23  ;;  %v1405_v53 = vadd.f32 %v6242_v59, %v1367_v17  ;;  %v1406_v60 = vadd.f32 %v6242_v59, %v1368_v24  ;;  %v1407_v15 = vadd.f32 %v6242_v59, %v1369_v5 }
 0x32a   : > { %v1408_v37 = vadd.f32 %v6242_v59, %v1370_v46  ;;  %v1409_v13 = vadd.f32 %v6242_v59, %v1371_v12  ;;  %v1410_v22 = vadd.f32 %v6242_v59, %v1372_v45  ;;  %v1411_v36 = vadd.f32 %v6242_v59, %v1373_v58 }
 0x32b   : > { %v8627_v57 = vadd.f32 %v6242_v59, %v1374_v9  ;;  %v8629_v3 = vadd.f32 %v6242_v59, %v1375_v10  ;;  %v8631_v30 = vadd.f32 %v6242_v59, %v1376_v56  ;;  %v8633_v32 = vadd.f32 %v6242_v59, %v1377_v4 }
 0x32c   : > { %v8635_v31 = vadd.f32 %v6242_v59, %v1378_v40  ;;  %v8637_v25 = vadd.f32 %v6242_v59, %v1379_v51  ;;  %v8639_v23 = vadd.f32 %v6242_v59, %v1380_v8  ;;  %v8641_v24 = vadd.f32 %v6242_v59, %v1381_v42 }
 0x32d   : > { %v8643_v46 = vadd.f32 %v6242_v59, %v1382_v49  ;;  %v8645_v45 = vadd.f32 %v6242_v59, %v1383_v1  ;;  %v8647_v54 = vadd.f32 %v6242_v59, %v1384_v48  ;;  %v8649_v0 = vadd.f32 %v6242_v59, %v1385_v50 }
 0x32e   : > { %v1424_v27 = vmax.f32 %v1392_v52, 0.0  ;;  %v1425_v47 = vmax.f32 %v1393_v61, 0.0  ;;  %v1426_v19 = vmax.f32 %v1394_v62, 0.0  ;;  %v1427_v44 = vmax.f32 %v1395_v2, 0.0 }
 0x32f   : > { %v1428_v7 = vmax.f32 %v1396_v6, 0.0  ;;  %v1429_v17 = vmax.f32 %v1397_v11, 0.0  ;;  %v1430_v5 = vmax.f32 %v1398_v14, 0.0  ;;  %v1431_v12 = vmax.f32 %v1399_v26, 0.0 }
 0x330   : > { %v1432_v58 = vmax.f32 %v1400_v39, 0.0  ;;  %v1433_v9 = vmax.f32 %v1401_v35, 0.0  ;;  %v1434_v10 = vmax.f32 %v1402_v38, 0.0  ;;  %v1435_v56 = vmax.f32 %v1403_v55, 0.0  ;;  %1512 = vst.msk [vmem:[#allocation2 + $0x19] sm:$0xff] %vm947_vm1, %v1424_v27  ;;  %1513 = vst.msk [vmem:[#allocation2 + $0x21] sm:$0xff] %vm947_vm1, %v1425_v47 }
 0x331   : > { %1514 = vst.msk [vmem:[#allocation2 + $0x31] sm:$0xff] %vm947_vm1, %v1426_v19  ;;  %1515 = vst.msk [vmem:[#allocation2 + $0x39] sm:$0xff] %vm947_vm1, %v1427_v44  ;;  %v1436_v59 = vmax.f32 %v1404_v63, 0.0  ;;  %v1437_v4 = vmax.f32 %v1405_v53, 0.0  ;;  %v1438_v40 = vmax.f32 %v1406_v60, 0.0  ;;  %v1439_v51 = vmax.f32 %v1407_v15, 0.0 }
 0x332   : > { %1516 = vst.msk [vmem:[#allocation2 + $0x49] sm:$0xff] %vm947_vm1, %v1428_v7  ;;  %1517 = vst.msk [vmem:[#allocation2 + $0x51] sm:$0xff] %vm947_vm1, %v1429_v17  ;;  %v1440_v8 = vmax.f32 %v1408_v37, 0.0  ;;  %v1441_v42 = vmax.f32 %v1409_v13, 0.0  ;;  %v1442_v49 = vmax.f32 %v1410_v22, 0.0  ;;  %v1443_v1 = vmax.f32 %v1411_v36, 0.0 }
 0x333   : > { %1518 = vst.msk [vmem:[#allocation2 + $0x61] sm:$0xff] %vm947_vm1, %v1430_v5  ;;  %1519 = vst.msk [vmem:[#allocation2 + $0x69] sm:$0xff] %vm947_vm1, %v1431_v12  ;;  %v1444_v48 = vmax.f32 %v8627_v57, 0.0  ;;  %v1445_v50 = vmax.f32 %v8629_v3, 0.0  ;;  %v1446_v52 = vmax.f32 %v8631_v30, 0.0  ;;  %v1447_v61 = vmax.f32 %v8633_v32, 0.0 }
 0x334   : > { %1520 = vst.msk [vmem:[#allocation2 + $0x79] sm:$0xff] %vm947_vm1, %v1432_v58  ;;  %1521 = vst.msk [vmem:[#allocation2 + $0x81] sm:$0xff] %vm947_vm1, %v1433_v9  ;;  %v1448_v62 = vmax.f32 %v8635_v31, 0.0  ;;  %v1449_v2 = vmax.f32 %v8637_v25, 0.0  ;;  %v1450_v6 = vmax.f32 %v8639_v23, 0.0  ;;  %v1451_v11 = vmax.f32 %v8641_v24, 0.0 }
 0x335   : > { %1522 = vst.msk [vmem:[#allocation2 + $0x91] sm:$0xff] %vm947_vm1, %v1434_v10  ;;  %1523 = vst.msk [vmem:[#allocation2 + $0x99] sm:$0xff] %vm947_vm1, %v1435_v56  ;;  %v1452_v14 = vmax.f32 %v8643_v46, 0.0  ;;  %v1453_v26 = vmax.f32 %v8645_v45, 0.0  ;;  %v1454_v39 = vmax.f32 %v8647_v54, 0.0  ;;  %v1455_v35 = vmax.f32 %v8649_v0, 0.0 }
 0x336   : > { %1524 = vst.msk [vmem:[#allocation2 + $0xa9] sm:$0xff] %vm947_vm1, %v1436_v59  ;;  %1525 = vst.msk [vmem:[#allocation2 + $0xb1] sm:$0xff] %vm947_vm1, %v1437_v4  ;;  %v7776_v15 = vld [vmem:[%s10870_s2 + $0x8] sm:$0xff]   ;;  %v7772_v36 = vld [vmem:[%s10870_s2 + $0x38] sm:$0xff]  }
 0x337   : > { %1526 = vst.msk [vmem:[#allocation2 + $0xc1] sm:$0xff] %vm947_vm1, %v1438_v40  ;;  %1527 = vst.msk [vmem:[#allocation2 + $0xc9] sm:$0xff] %vm947_vm1, %v1439_v51  ;;  %v1598_v38 = vld [vmem:[#allocation2 + $0x19] sm:$0xff]  ;;  %v1599_v55 = vld [vmem:[#allocation2 + $0x21] sm:$0xff] }
 0x338   : > { %1528 = vst.msk [vmem:[#allocation2 + $0xd9] sm:$0xff] %vm947_vm1, %v1440_v8  ;;  %1529 = vst.msk [vmem:[#allocation2 + $0xe1] sm:$0xff] %vm947_vm1, %v1441_v42  ;;  %v1600_v63 = vld [vmem:[#allocation2 + $0x31] sm:$0xff]  ;;  %v8695_v53 = vpack.c.bf16 %v1599_v55, %v1598_v38  ;;  %v1601_v60 = vld [vmem:[#allocation2 + $0x39] sm:$0xff] }
 0x339   : > { %1530 = vst.msk [vmem:[#allocation2 + $0xf1] sm:$0xff] %vm947_vm1, %v1442_v49  ;;  %1531 = vst.msk [vmem:[#allocation2 + $0xf9] sm:$0xff] %vm947_vm1, %v1443_v1  ;;  %v8700_v37 = vpack.c.bf16 %v1601_v60, %v1600_v63  ;;  %v1602_v23 = vld [vmem:[#allocation2 + $0x49] sm:$0xff]  ;;  %v1603_v24 = vld [vmem:[#allocation2 + $0x51] sm:$0xff] }
 0x33a   : > { %1532 = vst.msk [vmem:[#allocation2 + $0x109] sm:$0xff] %vm947_vm1, %v1444_v48  ;;  %1533 = vst.msk [vmem:[#allocation2 + $0x111] sm:$0xff] %vm947_vm1, %v1445_v50  ;;  %6873 = vmatmul.mubr.msk.bf16.vlgmr.msra.gmra.mrb[36].mxu0 %vm947_vm1, %v8695_v53  ;;  %v1604_v45 = vld [vmem:[#allocation2 + $0x61] sm:$0xff]  ;;  %v1605_v54 = vld [vmem:[#allocation2 + $0x69] sm:$0xff] }
 0x33b   : > { %1534 = vst.msk [vmem:[#allocation2 + $0x121] sm:$0xff] %vm947_vm1, %v1446_v52  ;;  %1535 = vst.msk [vmem:[#allocation2 + $0x129] sm:$0xff] %vm947_vm1, %v1447_v61  ;;  %6876 = vmatprep.mubr.msk.bf16.mxu0 %vm947_vm1, %v8700_v37  ;;  %6905 = vmatpush3.bf16.msra.mxu0 %v8510_v43  ;;  %v8723_v43 = vpack.c.bf16 %v1603_v24, %v1602_v23  ;;  %v8725_v0 = vpack.c.bf16 %v1605_v54, %v1604_v45  ;;  %v7773_v27 = vld [vmem:[%s10870_s2 + $0x40] sm:$0xff]   ;;  %v2397_v40 = vld [vmem:[#allocation2 + $0x18] sm:$0xff] }
 0x33c   : > { %1536 = vst.msk [vmem:[#allocation2 + $0x139] sm:$0xff] %vm947_vm1, %v1448_v62  ;;  %1537 = vst.msk [vmem:[#allocation2 + $0x141] sm:$0xff] %vm947_vm1, %v1449_v2  ;;  %6906 = vmatprep.subr.bf16.mxu0 %v7776_v15  ;;  %v1606_v17 = vld [vmem:[#allocation2 + $0x79] sm:$0xff]  ;;  %v1607_v5 = vld [vmem:[#allocation2 + $0x81] sm:$0xff] }
 0x33d   : > { %1538 = vst.msk [vmem:[#allocation2 + $0x151] sm:$0xff] %vm947_vm1, %v1450_v6  ;;  %1539 = vst.msk [vmem:[#allocation2 + $0x159] sm:$0xff] %vm947_vm1, %v1451_v11  ;;  %v1608_v58 = vld [vmem:[#allocation2 + $0x91] sm:$0xff]  ;;  %v1609_v9 = vld [vmem:[#allocation2 + $0x99] sm:$0xff]  ;;  %v8743_v10 = vpack.c.bf16 %v1607_v5, %v1606_v17 }
 0x33e   : > { %1540 = vst.msk [vmem:[#allocation2 + $0x169] sm:$0xff] %vm947_vm1, %v1452_v14  ;;  %1541 = vst.msk [vmem:[#allocation2 + $0x171] sm:$0xff] %vm947_vm1, %v1453_v26  ;;  %v8745_v56 = vpack.c.bf16 %v1609_v9, %v1608_v58  ;;  %v2398_v51 = vld [vmem:[#allocation2 + $0x20] sm:$0xff]  ;;  %v1610_v42 = vld [vmem:[#allocation2 + $0xa9] sm:$0xff] }
 0x33f   : > { %1542 = vst.msk [vmem:[#allocation2 + $0x181] sm:$0xff] %vm947_vm1, %v1454_v39  ;;  %1543 = vst.msk [vmem:[#allocation2 + $0x189] sm:$0xff] %vm947_vm1, %v1455_v35  ;;  %6907 = vmatpush3.bf16.msra.mxu0 %v7776_v15  ;;  %v1611_v49 = vld [vmem:[#allocation2 + $0xb1] sm:$0xff]  ;;  %v8753_v1 = vpack.c.bf16 %v2398_v51, %v2397_v40  ;;  %v1612_v48 = vld [vmem:[#allocation2 + $0xc1] sm:$0xff] }
 0x340   : > { %v2111_v13 = vld [vmem:[#allocation2 + $0xf2] sm:$0xff]  ;;  %v2112_v22 = vld [vmem:[#allocation2 + $0xfa] sm:$0xff]  ;;  %6940 = vmatprep.subr.bf16.mxu0 %v8486_v16  ;;  %v1613_v50 = vld [vmem:[#allocation2 + $0xc9] sm:$0xff]  ;;  %v8759_v52 = vpack.c.bf16 %v1611_v49, %v1610_v42 }
 0x341   : > { %v8710_v57 = vpack.c.bf16 %v2112_v22, %v2111_v13  ;;  %v2113_v3 = vld [vmem:[#allocation2 + $0x10a] sm:$0xff]  ;;  %v2114_v30 = vld [vmem:[#allocation2 + $0x112] sm:$0xff]  ;;  %v8761_v61 = vpack.c.bf16 %v1613_v50, %v1612_v48  ;;  %v1615_v39 = vld [vmem:[#allocation2 + $0xe1] sm:$0xff] }
 0x342   : > { %v2115_v32 = vld [vmem:[#allocation2 + $0x122] sm:$0xff]  ;;  %v8712_v31 = vpack.c.bf16 %v2114_v30, %v2113_v3  ;;  %v2116_v25 = vld [vmem:[#allocation2 + $0x12a] sm:$0xff]  ;;  %6877 = vmatmul.mubr.msk.bf16.gmra.mrb[40].mxu0 %vm947_vm1, %v8723_v43  ;;  %v2400_v2 = vld [vmem:[#allocation2 + $0x38] sm:$0xff] }
 0x343   : > { %6964 = vmatprep.mubr.msk.bf16.mxu1 %vm947_vm1, %v8710_v57  ;;  %v8716_v46 = vpack.c.bf16 %v2116_v25, %v2115_v32  ;;  %v2117_v47 = vld [vmem:[#allocation2 + $0x13a] sm:$0xff]  ;;  %v2118_v19 = vld [vmem:[#allocation2 + $0x142] sm:$0xff]  ;;  %6880 = vmatprep.mubr.msk.bf16.mxu0 %vm947_vm1, %v8725_v0  ;;  %v2399_v62 = vld [vmem:[#allocation2 + $0x30] sm:$0xff] }
 0x344   : > { %6965 = vmatmul.mubr.msk.bf16.vlgmr.msra.gmra.mrb[4].mxu1 %vm947_vm1, %v8712_v31  ;;  %v2120_v44 = vld [vmem:[#allocation2 + $0x15a] sm:$0xff]  ;;  %v8735_v7 = vpack.c.bf16 %v2118_v19, %v2117_v47  ;;  %v2401_v6 = vld [vmem:[#allocation2 + $0x48] sm:$0xff]  ;;  %v2402_v11 = vld [vmem:[#allocation2 + $0x50] sm:$0xff]  ;;  %v8767_v14 = vpack.c.bf16 %v2400_v2, %v2399_v62 }
 0x345   : > { %6977 = vmatpush3.bf16.msra.mxu1 %v8504_v41  ;;  %6968 = vmatprep.mubr.msk.bf16.mxu1 %vm947_vm1, %v8716_v46  ;;  %v2119_v41 = vld [vmem:[#allocation2 + $0x152] sm:$0xff]  ;;  %v2121_v59 = vld [vmem:[#allocation2 + $0x16a] sm:$0xff]  ;;  %v8772_v38 = vpack.c.bf16 %v2402_v11, %v2401_v6  ;;  %v2403_v22 = vld [vmem:[#allocation2 + $0x60] sm:$0xff] }
 0x346   : > { %6978 = vmatprep.subr.bf16.mxu1 %v7772_v36  ;;  %v8737_v12 = vpack.c.bf16 %v2120_v44, %v2119_v41  ;;  %v2122_v4 = vld [vmem:[#allocation2 + $0x172] sm:$0xff]  ;;  %v7775_v35 = vld [vmem:[%s10870_s2 + $0x48] sm:$0xff]   ;;  %v2406_v30 = vld [vmem:[#allocation2 + $0x80] sm:$0xff] }
 0x347   : > { %v8751_v8 = vpack.c.bf16 %v2122_v4, %v2121_v59  ;;  %v1614_v26 = vld [vmem:[#allocation2 + $0xd9] sm:$0xff]  ;;  %v1616_v55 = vld [vmem:[#allocation2 + $0xf1] sm:$0xff]  ;;  %v1618_v25 = vld [vmem:[#allocation2 + $0x109] sm:$0xff] }
 0x348   : > { %v1617_v63 = vld [vmem:[#allocation2 + $0xf9] sm:$0xff]  ;;  %v8778_v60 = vpack.c.bf16 %v1615_v39, %v1614_v26  ;;  %v8785_v13 = vld [vmem:[%s10870_s2 + $0x50] sm:$0xff]   ;;  %v1620_v45 = vld [vmem:[#allocation2 + $0x121] sm:$0xff] }
 0x349   : > { %6979 = vmatpush3.bf16.msra.mxu1 %v7772_v36  ;;  %v8780_v15 = vpack.c.bf16 %v1617_v63, %v1616_v55  ;;  %v2404_v36 = vld [vmem:[#allocation2 + $0x68] sm:$0xff]  ;;  %v2405_v3 = vld [vmem:[#allocation2 + $0x78] sm:$0xff]  ;;  %v2407_v19 = vld [vmem:[#allocation2 + $0x90] sm:$0xff] }
 0x34a   : > { %7012 = vmatprep.subr.bf16.mxu1 %v7773_v27  ;;  %6881 = vmatmul.mubr.msk.bf16.gmra.mrb[44].mxu0 %vm947_vm1, %v8743_v10  ;;  %v8791_v32 = vpack.c.bf16 %v2404_v36, %v2403_v22  ;;  %v1619_v23 = vld [vmem:[#allocation2 + $0x111] sm:$0xff]  ;;  %v8794_v24 = vpack.c.bf16 %v2406_v30, %v2405_v3  ;;  %v1621_v54 = vld [vmem:[#allocation2 + $0x129] sm:$0xff]  ;;  %v1622_v58 = vld [vmem:[#allocation2 + $0x139] sm:$0xff] }
 0x34b   : > { %6884 = vmatprep.mubr.msk.bf16.mxu0 %vm947_vm1, %v8745_v56  ;;  %v8802_v47 = vpack.c.bf16 %v1621_v54, %v1620_v45  ;;  %v2408_v41 = vld [vmem:[#allocation2 + $0x98] sm:$0xff]  ;;  %v2409_v44 = vld [vmem:[#allocation2 + $0xa8] sm:$0xff]  ;;  %v2410_v17 = vld [vmem:[#allocation2 + $0xb0] sm:$0xff] }
 0x34c   : > { %6969 = vmatmul.mubr.msk.bf16.gmra.mrb[8].mxu1 %vm947_vm1, %v8735_v7  ;;  %v8808_v5 = vpack.c.bf16 %v2408_v41, %v2407_v19  ;;  %v1623_v9 = vld [vmem:[#allocation2 + $0x141] sm:$0xff]  ;;  %v8810_v59 = vpack.c.bf16 %v2410_v17, %v2409_v44  ;;  %v1624_v4 = vld [vmem:[#allocation2 + $0x151] sm:$0xff]  ;;  %v1625_v40 = vld [vmem:[#allocation2 + $0x159] sm:$0xff] }
 0x34d   : > { %6972 = vmatprep.mubr.msk.bf16.mxu1 %vm947_vm1, %v8737_v12  ;;  %v8816_v51 = vpack.c.bf16 %v1623_v9, %v1622_v58  ;;  %v8818_v42 = vpack.c.bf16 %v1625_v40, %v1624_v4  ;;  %v2411_v49 = vld [vmem:[#allocation2 + $0xc0] sm:$0xff]  ;;  %v2412_v48 = vld [vmem:[#allocation2 + $0xc8] sm:$0xff]  ;;  %v2413_v50 = vld [vmem:[#allocation2 + $0xd8] sm:$0xff] }
 0x34e   : > { %v2414_v62 = vld [vmem:[#allocation2 + $0xe0] sm:$0xff]  ;;  %v1545_v6 = vld [vmem:[#allocation2 + $0x8] sm:$0xff]  ;;  %v8824_v11 = vpack.c.bf16 %v2412_v48, %v2411_v49  ;;  %v1627_v39 = vld [vmem:[#allocation2 + $0x171] sm:$0xff] }
 0x34f   : > { %v1544_v2 = vld [vmem:[#allocation2] sm:$0xff]  ;;  %v1626_v26 = vld [vmem:[#allocation2 + $0x169] sm:$0xff]  ;;  %v2416_v36 = vld [vmem:[#allocation2 + $0xf8] sm:$0xff] }
 0x350   : > { %v1576_v55 = vpack.c.bf16 %v1545_v6, %v1544_v2  ;;  %v8832_v63 = vpack.c.bf16 %v1627_v39, %v1626_v26  ;;  %v2415_v22 = vld [vmem:[#allocation2 + $0xf0] sm:$0xff]  ;;  %v2417_v3 = vld [vmem:[#allocation2 + $0x108] sm:$0xff]  ;;  %v2419_v45 = vld [vmem:[#allocation2 + $0x120] sm:$0xff] }
 0x351   : > { %v2418_v30 = vld [vmem:[#allocation2 + $0x110] sm:$0xff]  ;;  %v2420_v54 = vld [vmem:[#allocation2 + $0x128] sm:$0xff]  ;;  %v2421_v19 = vld [vmem:[#allocation2 + $0x138] sm:$0xff] }
 0x352   : > { %6885 = vmatmul.mubr.msk.bf16.gmra.mrb[48].mxu0 %vm947_vm1, %v8759_v52  ;;  %v2422_v41 = vld [vmem:[#allocation2 + $0x140] sm:$0xff]  ;;  %v8851_v44 = vpack.c.bf16 %v2420_v54, %v2419_v45  ;;  %v2424_v58 = vld [vmem:[#allocation2 + $0x158] sm:$0xff]  ;;  %v2425_v9 = vld [vmem:[#allocation2 + $0x168] sm:$0xff] }
 0x353   : > { %6888 = vmatprep.mubr.msk.bf16.mxu0 %vm947_vm1, %v8761_v61  ;;  %v8853_v17 = vpack.c.bf16 %v2422_v41, %v2421_v19  ;;  %v2426_v4 = vld [vmem:[#allocation2 + $0x170] sm:$0xff]  ;;  %v2428_v48 = vld [vmem:[#allocation2 + $0x188] sm:$0xff]  ;;  %v2093_v26 = vld [vmem:[#allocation2 + $0x1a] sm:$0xff] }
 0x354   : > { %6973 = vmatmul.mubr.msk.bf16.gmra.mrb[12].mxu1 %vm947_vm1, %v8751_v8  ;;  %v8867_v49 = vpack.c.bf16 %v2426_v4, %v2425_v9  ;;  %v2092_v2 = vld [vmem:[#allocation2 + $0xa] sm:$0xff]  ;;  %v2094_v39 = vld [vmem:[#allocation2 + $0x22] sm:$0xff]  ;;  %v2098_v54 = vld [vmem:[#allocation2 + $0x52] sm:$0xff] }
 0x355   : > { %6980 = vmatprep.mubr.msk.bf16.mxu1 %vm947_vm1, %v8753_v1  ;;  %v2097_v45 = vld [vmem:[#allocation2 + $0x4a] sm:$0xff]  ;;  %v2099_v19 = vld [vmem:[#allocation2 + $0x62] sm:$0xff]  ;;  %v2101_v34 = vld [vmem:[#allocation2 + $0x7a] sm:$0xff] }
 0x356   : > { %v2100_v41 = vld [vmem:[#allocation2 + $0x6a] sm:$0xff]  ;;  %v8954_v28 = vpack.c.bf16 %v2098_v54, %v2097_v45  ;;  %v2103_v33 = vld [vmem:[#allocation2 + $0x92] sm:$0xff]  ;;  %v2110_v45 = vld [vmem:[#allocation2 + $0xe2] sm:$0xff] }
 0x357   : > { %v8957_v29 = vpack.c.bf16 %v2100_v41, %v2099_v19  ;;  %v7780_v54 = vld [vmem:[%s10870_s2 + $0x68] sm:$0xff]   ;;  %v7781_v19 = vld [vmem:[%s10870_s2 + $0x70] sm:$0xff]   ;;  %v10988_v41 = vmov 0.0  }
 0x35a   : > { %6889 = vmatmul.mubr.msk.bf16.gmra.mrb[52].mxu0 %vm947_vm1, %v8778_v60 }
 0x35b   : > { %6892 = vmatprep.mubr.msk.bf16.mxu0 %vm947_vm1, %v8780_v15 }
 0x35c   : > { %6981 = vmatmul.mubr.msk.bf16.vlgmr.msra.gmra.mrb[16].mxu1 %vm947_vm1, %v8767_v14 }
 0x35d   : > { %7013 = vmatpush3.bf16.msra.mxu1 %v7773_v27  ;;  %6984 = vmatprep.mubr.msk.bf16.mxu1 %vm947_vm1, %v8772_v38  ;;  %v8800_v27 = vpack.c.bf16 %v1619_v23, %v1618_v25  ;;  %v8837_v25 = vpack.c.bf16 %v2416_v36, %v2415_v22  ;;  %v8839_v23 = vpack.c.bf16 %v2418_v30, %v2417_v3  ;;  %v2096_v22 = vld [vmem:[#allocation2 + $0x3a] sm:$0xff]  ;;  %v10987_v30 = vmov 1.0|1.0  }
 0x35e   : > { %7014 = vmatprep.subr.bf16.mxu1 %v7775_v35  ;;  %v2124_v36 = vpack.c.bf16 %v2094_v39, %v2093_v26  ;;  %v2108_v26 = vld [vmem:[#allocation2 + $0xca] sm:$0xff] }
 0x361   : > { %7015 = vmatpush3.bf16.msra.mxu1 %v7775_v35  ;;  %v8826_v35 = vpack.c.bf16 %v2414_v62, %v2413_v50  ;;  %v7778_v62 = vld [vmem:[%s10870_s2 + $0x58] sm:$0xff]  }
 0x362   : > { %7048 = vmatprep.subr.bf16.mxu1 %v8785_v13  ;;  %6893 = vmatmul.mubr.msk.bf16.gmra.mrb[56].mxu0 %vm947_vm1, %v8800_v27 }
 0x363   : > { %6896 = vmatprep.mubr.msk.bf16.mxu0 %vm947_vm1, %v8802_v47 }
 0x364   : > { %6985 = vmatmul.mubr.msk.bf16.gmra.mrb[20].mxu1 %vm947_vm1, %v8791_v32 }
 0x365   : > { %6988 = vmatprep.mubr.msk.bf16.mxu1 %vm947_vm1, %v8794_v24 }
 0x36a   : > { %6897 = vmatmul.mubr.msk.bf16.gmra.mrb[60].mxu0 %vm947_vm1, %v8816_v51 }
 0x36b   : > { %6900 = vmatprep.mubr.msk.bf16.mxu0 %vm947_vm1, %v8818_v42 }
 0x36c   : > { %6989 = vmatmul.mubr.msk.bf16.gmra.mrb[24].mxu1 %vm947_vm1, %v8808_v5 }
 0x36d   : > { %6992 = vmatprep.mubr.msk.bf16.mxu1 %vm947_vm1, %v8810_v59 }
 0x372   : > { %6901 = vmatmul.mubr.msk.bf16.gmra.mrb[64].mxu0 %vm947_vm1, %v8832_v63 }
 0x373   : > { %6908 = vmatprep.mubr.msk.bf16.mxu0 %vm947_vm1, %v1576_v55  ;;  %v2095_v55 = vld [vmem:[#allocation2 + $0x32] sm:$0xff] }
 0x374   : > { %6993 = vmatmul.mubr.msk.bf16.gmra.mrb[28].mxu1 %vm947_vm1, %v8824_v11  ;;  %v8932_v3 = vpack.c.bf16 %v2096_v22, %v2095_v55  ;;  %v2109_v22 = vld [vmem:[#allocation2 + $0xda] sm:$0xff] }
 0x375   : > { %6996 = vmatprep.mubr.msk.bf16.mxu1 %vm947_vm1, %v8826_v35 }
 0x37a   : > { %6909 = vmatmul.mubr.msk.bf16.vlgmr.msra.gmra.mrb[36].mxu0 %vm947_vm1, %v8753_v1  ;;  %v10986_v1 = vmov 0.0|0.0  }
 0x37b   : > { %6912 = vmatprep.mubr.msk.bf16.mxu0 %vm947_vm1, %v8767_v14  ;;  %6941 = vmatpush3.bf16.msra.mxu0 %v8486_v16  ;;  %v2423_v16 = vld [vmem:[#allocation2 + $0x150] sm:$0xff] }
 0x37c   : > { %6997 = vmatmul.mubr.msk.bf16.gmra.mrb[32].mxu1 %vm947_vm1, %v8837_v25  ;;  %6942 = vmatprep.subr.bf16.mxu0 %v8494_v18  ;;  %v8865_v40 = vpack.c.bf16 %v2424_v58, %v2423_v16  ;;  %v2102_v16 = vld [vmem:[#allocation2 + $0x82] sm:$0xff]  ;;  %v2104_v58 = vld [vmem:[#allocation2 + $0x9a] sm:$0xff] }
 0x37d   : > { %7000 = vmatprep.mubr.msk.bf16.mxu1 %vm947_vm1, %v8839_v23  ;;  %v8967_v9 = vpack.c.bf16 %v2102_v16, %v2101_v34  ;;  %v8969_v4 = vpack.c.bf16 %v2104_v58, %v2103_v33  ;;  %v3040_v34 = vld [vmem:[#allocation2 + $0x18a] sm:$0xff]  ;;  %v3945_v33 = vld [vmem:[#allocation2 + $0xfa] sm:$0xff] }
 0x37f   : > { %6943 = vmatpush3.bf16.msra.mxu0 %v8494_v18  ;;  %v2427_v18 = vld [vmem:[#allocation2 + $0x180] sm:$0xff] }
 0x380   : > { %7379 = vmatprep.subr.bf16.mxu0 %v10986_v1  ;;  %v8877_v50 = vpack.c.bf16 %v2428_v48, %v2427_v18  ;;  %v2733_v18 = vld [vmem:[#allocation2 + $0x181] sm:$0xff]  ;;  %v2734_v48 = vld [vmem:[#allocation2 + $0x189] sm:$0xff] }
 0x382   : > { %6913 = vmatmul.mubr.msk.bf16.gmra.mrb[40].mxu0 %vm947_vm1, %v8772_v38 }
 0x383   : > { %6916 = vmatprep.mubr.msk.bf16.mxu0 %vm947_vm1, %v8791_v32 }
 0x384   : > { %7001 = vmatmul.mubr.msk.bf16.gmra.mrb[4].mxu1 %vm947_vm1, %v8851_v44 }
 0x385   : > { %7004 = vmatprep.mubr.msk.bf16.mxu1 %vm947_vm1, %v8853_v17 }
 0x38a   : > { %6917 = vmatmul.mubr.msk.bf16.gmra.mrb[44].mxu0 %vm947_vm1, %v8794_v24 }
 0x38b   : > { %6920 = vmatprep.mubr.msk.bf16.mxu0 %vm947_vm1, %v8808_v5 }
 0x38c   : > { %7005 = vmatmul.mubr.msk.bf16.gmra.mrb[8].mxu1 %vm947_vm1, %v8865_v40 }
 0x38d   : > { %7008 = vmatprep.mubr.msk.bf16.mxu1 %vm947_vm1, %v8867_v49 }
 0x392   : > { %6921 = vmatmul.mubr.msk.bf16.gmra.mrb[48].mxu0 %vm947_vm1, %v8810_v59 }
 0x393   : > { %6924 = vmatprep.mubr.msk.bf16.mxu0 %vm947_vm1, %v8824_v11 }
 0x394   : > { %7009 = vmatmul.mubr.msk.bf16.gmra.mrb[12].mxu1 %vm947_vm1, %v8877_v50 }
 0x395   : > { %7016 = vmatprep.mubr.msk.bf16.mxu1 %vm947_vm1, %v8695_v53  ;;  %v8898_v53 = vld [vmem:[%s10870_s2 + $0x60] sm:$0xff]  }
 0x39a   : > { %6925 = vmatmul.mubr.msk.bf16.gmra.mrb[52].mxu0 %vm947_vm1, %v8826_v35 }
 0x39b   : > { %6928 = vmatprep.mubr.msk.bf16.mxu0 %vm947_vm1, %v8837_v25 }
 0x39c   : > { %7017 = vmatmul.mubr.msk.bf16.vlgmr.msra.gmra.mrb[16].mxu1 %vm947_vm1, %v8700_v37 }
 0x39d   : > { %7049 = vmatpush3.bf16.msra.mxu1 %v8785_v13  ;;  %7020 = vmatprep.mubr.msk.bf16.mxu1 %vm947_vm1, %v8723_v43  ;;  %v2091_v13 = vld [vmem:[#allocation2 + $0x2] sm:$0xff] }
 0x39e   : > { %7050 = vmatprep.subr.bf16.mxu1 %v7778_v62  ;;  %v2123_v6 = vpack.c.bf16 %v2092_v2, %v2091_v13  ;;  %v2105_v13 = vld [vmem:[#allocation2 + $0xaa] sm:$0xff]  ;;  %v2106_v2 = vld [vmem:[#allocation2 + $0xb2] sm:$0xff] }
 0x39f   : > { %v8980_v39 = vpack.c.bf16 %v2106_v2, %v2105_v13  ;;  %v3947_v13 = vld [vmem:[#allocation2 + $0x112] sm:$0xff]  ;;  %v3948_v2 = vld [vmem:[#allocation2 + $0x122] sm:$0xff] }
 0x3a1   : > { %7051 = vmatpush3.bf16.msra.mxu1 %v7778_v62  ;;  %v8975_v62 = vpack.c.bf16 %v2734_v48, %v2733_v18 }
 0x3a2   : > { %7084 = vmatprep.subr.bf16.mxu1 %v8898_v53  ;;  %6929 = vmatmul.mubr.msk.bf16.gmra.mrb[56].mxu0 %vm947_vm1, %v8839_v23 }
 0x3a3   : > { %6932 = vmatprep.mubr.msk.bf16.mxu0 %vm947_vm1, %v8851_v44 }
 0x3a4   : > { %7021 = vmatmul.mubr.msk.bf16.gmra.mrb[20].mxu1 %vm947_vm1, %v8725_v0 }
 0x3a5   : > { %7024 = vmatprep.mubr.msk.bf16.mxu1 %vm947_vm1, %v8743_v10 }
 0x3aa   : > { %6933 = vmatmul.mubr.msk.bf16.gmra.mrb[60].mxu0 %vm947_vm1, %v8853_v17 }
 0x3ab   : > { %6936 = vmatprep.mubr.msk.bf16.mxu0 %vm947_vm1, %v8865_v40 }
 0x3ac   : > { %7025 = vmatmul.mubr.msk.bf16.gmra.mrb[24].mxu1 %vm947_vm1, %v8745_v56 }
 0x3ad   : > { %7028 = vmatprep.mubr.msk.bf16.mxu1 %vm947_vm1, %v8759_v52 }
 0x3b2   : > { %6937 = vmatmul.mubr.msk.bf16.gmra.mrb[64].mxu0 %vm947_vm1, %v8867_v49 }
 0x3b3   : > { %6944 = vmatprep.mubr.msk.bf16.mxu0 %vm947_vm1, %v2123_v6  ;;  %v2107_v6 = vld [vmem:[#allocation2 + $0xc2] sm:$0xff] }
 0x3b4   : > { %7029 = vmatmul.mubr.msk.bf16.gmra.mrb[28].mxu1 %vm947_vm1, %v8761_v61  ;;  %v8982_v55 = vpack.c.bf16 %v2108_v26, %v2107_v6  ;;  %v3949_v6 = vld [vmem:[#allocation2 + $0x12a] sm:$0xff] }
 0x3b5   : > { %7032 = vmatprep.mubr.msk.bf16.mxu1 %vm947_vm1, %v8778_v60 }
 0x3ba   : > { %6945 = vmatmul.mubr.msk.bf16.vlgmr.msra.gmra.mrb[36].mxu0 %vm947_vm1, %v2124_v36 }
 0x3bb   : > { %6948 = vmatprep.mubr.msk.bf16.mxu0 %vm947_vm1, %v8932_v3  ;;  %7381 = vmatpush3.bf16.msk.msra.mxu0 %vm7371_vm9, %v10987_v30 }
 0x3bc   : > { %7033 = vmatmul.mubr.msk.bf16.gmra.mrb[32].mxu1 %vm947_vm1, %v8780_v15  ;;  %7382 = vmatprep.subr.bf16.mxu0 %v10986_v1 }
 0x3bd   : > { %7036 = vmatprep.mubr.msk.bf16.mxu1 %vm947_vm1, %v8800_v27 }
 0x3bf   : > { %7384 = vmatpush3.bf16.msk.msra.mxu0 %vm7374_vm2, %v10987_v30 }
 0x3c0   : > { %7385 = vmatprep.subr.bf16.mxu0 %v10986_v1 }
 0x3c2   : > { %6949 = vmatmul.mubr.msk.bf16.gmra.mrb[40].mxu0 %vm947_vm1, %v8954_v28 }
 0x3c3   : > { %6952 = vmatprep.mubr.msk.bf16.mxu0 %vm947_vm1, %v8957_v29 }
 0x3c4   : > { %7037 = vmatmul.mubr.msk.bf16.gmra.mrb[4].mxu1 %vm947_vm1, %v8802_v47 }
 0x3c5   : > { %7040 = vmatprep.mubr.msk.bf16.mxu1 %vm947_vm1, %v8816_v51 }
 0x3ca   : > { %6953 = vmatmul.mubr.msk.bf16.gmra.mrb[44].mxu0 %vm947_vm1, %v8967_v9 }
 0x3cb   : > { %6956 = vmatprep.mubr.msk.bf16.mxu0 %vm947_vm1, %v8969_v4 }
 0x3cc   : > { %7041 = vmatmul.mubr.msk.bf16.gmra.mrb[8].mxu1 %vm947_vm1, %v8818_v42 }
 0x3cd   : > { %7044 = vmatprep.mubr.msk.bf16.mxu1 %vm947_vm1, %v8832_v63 }
 0x3d2   : > { %6957 = vmatmul.mubr.msk.bf16.gmra.mrb[48].mxu0 %vm947_vm1, %v8980_v39 }
 0x3d3   : > { %6960 = vmatprep.mubr.msk.bf16.mxu0 %vm947_vm1, %v8982_v55 }
 0x3d4   : > { %7045 = vmatmul.mubr.msk.bf16.gmra.mrb[12].mxu1 %vm947_vm1, %v8975_v62 }
 0x3d5   : > { %7052 = vmatprep.mubr.msk.bf16.mxu1 %vm947_vm1, %v2124_v36  ;;  %v8996_v36 = vpack.c.bf16 %v2110_v45, %v2109_v22  ;;  %v3951_v22 = vld [vmem:[#allocation2 + $0x142] sm:$0xff]  ;;  %v3952_v45 = vld [vmem:[#allocation2 + $0x152] sm:$0xff] }
 0x3da   : > { %6961 = vmatmul.mubr.msk.bf16.gmra.mrb[52].mxu0 %vm947_vm1, %v8996_v36 }
 0x3db   : > { %7200 = vmatprep.mubr.msk.f32.mxu0 %vm10907_vm3, %v10988_v41 }
 0x3dc   : > { %7053 = vmatmul.mubr.msk.bf16.vlgmr.msra.gmra.mrb[16].mxu1 %vm947_vm1, %v8932_v3 }
 0x3dd   : > { %7085 = vmatpush3.bf16.msra.mxu1 %v8898_v53  ;;  %7056 = vmatprep.mubr.msk.bf16.mxu1 %vm947_vm1, %v8954_v28  ;;  %v3039_v53 = vld [vmem:[#allocation2 + $0x182] sm:$0xff] }
 0x3de   : > { %7086 = vmatprep.subr.bf16.mxu1 %v7780_v54  ;;  %v9029_v16 = vpack.c.bf16 %v3040_v34, %v3039_v53  ;;  %v3954_v53 = vld [vmem:[#allocation2 + $0x16a] sm:$0xff]  ;;  %v3955_v34 = vld [vmem:[#allocation2 + $0x172] sm:$0xff] }
 0x3e1   : > { %7087 = vmatpush3.bf16.msra.mxu1 %v7780_v54  ;;  %v3953_v54 = vld [vmem:[#allocation2 + $0x15a] sm:$0xff] }
 0x3e2   : > { %7120 = vmatprep.subr.bf16.mxu1 %v7781_v19 }
 0x3e4   : > { %7057 = vmatmul.mubr.msk.bf16.gmra.mrb[20].mxu1 %vm947_vm1, %v8957_v29 }
 0x3e5   : > { %7060 = vmatprep.mubr.msk.bf16.mxu1 %vm947_vm1, %v8967_v9 }
 0x3ec   : > { %7061 = vmatmul.mubr.msk.bf16.gmra.mrb[24].mxu1 %vm947_vm1, %v8969_v4 }
 0x3ed   : > { %7064 = vmatprep.mubr.msk.bf16.mxu1 %vm947_vm1, %v8980_v39 }
 0x3f4   : > { %7065 = vmatmul.mubr.msk.bf16.gmra.mrb[28].mxu1 %vm947_vm1, %v8982_v55 }
 0x3f5   : > { %7068 = vmatprep.mubr.msk.bf16.mxu1 %vm947_vm1, %v8996_v36 }
 0x3fc   : > { %7069 = vmatmul.mubr.msk.bf16.gmra.mrb[32].mxu1 %vm947_vm1, %v8710_v57  ;;  %v7782_v57 = vld [vmem:[%s10870_s2 + $0x78] sm:$0xff]  }
 0x3fd   : > { %7072 = vmatprep.mubr.msk.bf16.mxu1 %vm947_vm1, %v8712_v31  ;;  %v7783_v31 = vld [vmem:[%s10870_s2 + $0x80] sm:$0xff]  }
 0x404   : > { %7073 = vmatmul.mubr.msk.bf16.gmra.mrb[4].mxu1 %vm947_vm1, %v8716_v46  ;;  %v3346_v46 = vld [vmem:[#allocation2 + $0x198] sm:$0xff] }
 0x405   : > { %7076 = vmatprep.mubr.msk.bf16.mxu1 %vm947_vm1, %v8735_v7  ;;  %v3347_v7 = vld [vmem:[#allocation2 + $0x1a0] sm:$0xff] }
 0x40c   : > { %7077 = vmatmul.mubr.msk.bf16.gmra.mrb[8].mxu1 %vm947_vm1, %v8737_v12  ;;  %v3363_v12 = vpack.c.bf16 %v3347_v7, %v3346_v46  ;;  %v3959_v46 = vld [vmem:[#allocation2 + $0x1a2] sm:$0xff] }
 0x40d   : > { %7080 = vmatprep.mubr.msk.bf16.mxu1 %vm947_vm1, %v8751_v8  ;;  %v7784_v8 = vld [vmem:[%s10870_s2 + $0x88] sm:$0xff]  }
 0x414   : > { %7081 = vmatmul.mubr.msk.bf16.gmra.mrb[12].mxu1 %vm947_vm1, %v9029_v16 }
 0x415   : > { %7088 = vmatprep.mubr.msk.bf16.mxu1 %vm947_vm1, %v8767_v14 }
 0x41c   : > { %7089 = vmatmul.mubr.msk.bf16.vlgmr.msra.gmra.mrb[16].mxu1 %vm947_vm1, %v8772_v38 }
 0x41d   : > { %7121 = vmatpush3.bf16.msra.mxu1 %v7781_v19  ;;  %7092 = vmatprep.mubr.msk.bf16.mxu1 %vm947_vm1, %v8791_v32  ;;  %v3972_v19 = vpack.c.bf16 %v3953_v54, %v3952_v45 }
 0x41e   : > { %7122 = vmatprep.subr.bf16.mxu1 %v7782_v57 }
 0x421   : > { %7123 = vmatpush3.bf16.msra.mxu1 %v7782_v57  ;;  %v3973_v57 = vpack.c.bf16 %v3955_v34, %v3954_v53 }
 0x422   : > { %7156 = vmatprep.subr.bf16.mxu1 %v7783_v31 }
 0x424   : > { %7093 = vmatmul.mubr.msk.bf16.gmra.mrb[20].mxu1 %vm947_vm1, %v8794_v24  ;;  %v3652_v24 = vld [vmem:[#allocation2 + $0x199] sm:$0xff] }
 0x425   : > { %7096 = vmatprep.mubr.msk.bf16.mxu1 %vm947_vm1, %v8808_v5 }
 0x42c   : > { %7097 = vmatmul.mubr.msk.bf16.gmra.mrb[24].mxu1 %vm947_vm1, %v8810_v59 }
 0x42d   : > { %7100 = vmatprep.mubr.msk.bf16.mxu1 %vm947_vm1, %v8824_v11 }
 0x434   : > { %7101 = vmatmul.mubr.msk.bf16.gmra.mrb[28].mxu1 %vm947_vm1, %v8826_v35 }
 0x435   : > { %7104 = vmatprep.mubr.msk.bf16.mxu1 %vm947_vm1, %v8837_v25 }
 0x43c   : > { %7105 = vmatmul.mubr.msk.bf16.gmra.mrb[32].mxu1 %vm947_vm1, %v8839_v23 }
 0x43d   : > { %7108 = vmatprep.mubr.msk.bf16.mxu1 %vm947_vm1, %v8851_v44 }
 0x444   : > { %7109 = vmatmul.mubr.msk.bf16.gmra.mrb[4].mxu1 %vm947_vm1, %v8853_v17 }
 0x445   : > { %7112 = vmatprep.mubr.msk.bf16.mxu1 %vm947_vm1, %v8865_v40 }
 0x44c   : > { %7113 = vmatmul.mubr.msk.bf16.gmra.mrb[8].mxu1 %vm947_vm1, %v8867_v49 }
 0x44d   : > { %7116 = vmatprep.mubr.msk.bf16.mxu1 %vm947_vm1, %v8877_v50 }
 0x454   : > { %7117 = vmatmul.mubr.msk.bf16.gmra.mrb[12].mxu1 %vm947_vm1, %v3363_v12 }
 0x455   : > { %7124 = vmatprep.mubr.msk.bf16.mxu1 %vm947_vm1, %v8700_v37 }
 0x45c   : > { %7125 = vmatmul.mubr.msk.bf16.vlgmr.msra.gmra.mrb[16].mxu1 %vm947_vm1, %v8723_v43 }
 0x45d   : > { %7157 = vmatpush3.bf16.msra.mxu1 %v7783_v31  ;;  %7128 = vmatprep.mubr.msk.bf16.mxu1 %vm947_vm1, %v8725_v0  ;;  %v3958_v31 = vld [vmem:[#allocation2 + $0x19a] sm:$0xff] }
 0x45e   : > { %7158 = vmatprep.subr.bf16.mxu1 %v7784_v8  ;;  %v3975_v7 = vpack.c.bf16 %v3959_v46, %v3958_v31 }
 0x461   : > { %7159 = vmatpush3.bf16.msra.mxu1 %v7784_v8 }
 0x464   : > { %7129 = vmatmul.mubr.msk.bf16.gmra.mrb[20].mxu1 %vm947_vm1, %v8743_v10 }
 0x465   : > { %7132 = vmatprep.mubr.msk.bf16.mxu1 %vm947_vm1, %v8745_v56 }
 0x46c   : > { %7133 = vmatmul.mubr.msk.bf16.gmra.mrb[24].mxu1 %vm947_vm1, %v8759_v52 }
 0x46d   : > { %7136 = vmatprep.mubr.msk.bf16.mxu1 %vm947_vm1, %v8761_v61 }
 0x474   : > { %7137 = vmatmul.mubr.msk.bf16.gmra.mrb[28].mxu1 %vm947_vm1, %v8778_v60 }
 0x475   : > { %7140 = vmatprep.mubr.msk.bf16.mxu1 %vm947_vm1, %v8780_v15  ;;  %v9091_v37 = vpop.f32.mrb[56].mxu0 }
 0x476   : > { %v9093_v43 = vpop.f32.mrb[57].mxu0 }
 0x477   : > { %v9097_v0 = vpop.f32.mrb[58].mxu0 }
 0x478   : > { %v9101_v10 = vpop.f32.mrb[59].mxu0 }
 0x47c   : > { %7141 = vmatmul.mubr.msk.bf16.gmra.mrb[32].mxu1 %vm947_vm1, %v8800_v27  ;;  %v3653_v27 = vld [vmem:[#allocation2 + $0x1a1] sm:$0xff] }
 0x47d   : > { %7144 = vmatprep.mubr.msk.bf16.mxu1 %vm947_vm1, %v8802_v47  ;;  %v9103_v56 = vpop.f32.mrb[60].mxu0  ;;  %v3669_v47 = vpack.c.bf16 %v3653_v27, %v3652_v24 }
 0x47e   : > { %v9105_v52 = vpop.f32.mrb[61].mxu0 }
 0x47f   : > { %v9109_v61 = vpop.f32.mrb[62].mxu0 }
 0x480   : > { %v9113_v14 = vpop.f32.mrb[63].mxu0 }
 0x484   : > { %7145 = vmatmul.mubr.msk.bf16.gmra.mrb[4].mxu1 %vm947_vm1, %v8816_v51 }
 0x485   : > { %7148 = vmatprep.mubr.msk.bf16.mxu1 %vm947_vm1, %v8818_v42  ;;  %v9115_v38 = vpop.f32.mrb[64].mxu0 }
 0x486   : > { %v9117_v60 = vpop.f32.mrb[65].mxu0 }
 0x487   : > { %v9121_v15 = vpop.f32.mrb[66].mxu0 }
 0x488   : > { %v9125_v32 = vpop.f32.mrb[67].mxu0 }
 0x48c   : > { %7149 = vmatmul.mubr.msk.bf16.gmra.mrb[8].mxu1 %vm947_vm1, %v8832_v63 }
 0x48d   : > { %7152 = vmatprep.mubr.msk.bf16.mxu1 %vm947_vm1, %v8975_v62  ;;  %v6946_v5 = vpop.f32.mrb[36].mxu0  ;;  %v3946_v62 = vld [vmem:[#allocation2 + $0x10a] sm:$0xff] }
 0x48e   : > { %v2238_v59 = vpop.f32.mrb[37].mxu0  ;;  %v3969_v26 = vpack.c.bf16 %v3947_v13, %v3946_v62 }
 0x48f   : > { %v6947_v51 = vpop.f32.mrb[38].mxu0 }
 0x490   : > { %v2241_v42 = vpop.f32.mrb[39].mxu0 }
 0x494   : > { %7153 = vmatmul.mubr.msk.bf16.gmra.mrb[12].mxu1 %vm947_vm1, %v3669_v47 }
 0x495   : > { %7160 = vmatprep.mubr.msk.bf16.mxu1 %vm947_vm1, %v8932_v3  ;;  %v9130_v11 = vpop.f32.mrb[40].mxu0 }
 0x496   : > { %v9132_v35 = vpop.f32.mrb[41].mxu0 }
 0x497   : > { %v9136_v63 = vpop.f32.mrb[42].mxu0 }
 0x498   : > { %v9140_v25 = vpop.f32.mrb[43].mxu0 }
 0x49c   : > { %7161 = vmatmul.mubr.msk.bf16.vlgmr.msra.gmra.mrb[16].mxu1 %vm947_vm1, %v8954_v28 }
 0x49d   : > { %7164 = vmatprep.mubr.msk.bf16.mxu1 %vm947_vm1, %v8957_v29  ;;  %v9142_v23 = vpop.f32.mrb[44].mxu0  ;;  %v3944_v29 = vld [vmem:[#allocation2 + $0xf2] sm:$0xff] }
 0x49e   : > { %v9144_v44 = vpop.f32.mrb[45].mxu0 }
 0x49f   : > { %v9148_v17 = vpop.f32.mrb[46].mxu0 }
 0x4a0   : > { %v9152_v40 = vpop.f32.mrb[47].mxu0 }
 0x4a4   : > { %7165 = vmatmul.mubr.msk.bf16.gmra.mrb[20].mxu1 %vm947_vm1, %v8967_v9  ;;  %v3968_v9 = vpack.c.bf16 %v3945_v33, %v3944_v29 }
 0x4a5   : > { %7168 = vmatprep.mubr.msk.bf16.mxu1 %vm947_vm1, %v8969_v4  ;;  %v9154_v49 = vpop.f32.mrb[48].mxu0 }
 0x4a6   : > { %v9156_v50 = vpop.f32.mrb[49].mxu0 }
 0x4a7   : > { %v9160_v3 = vpop.f32.mrb[50].mxu0 }
 0x4a8   : > { %v9164_v28 = vpop.f32.mrb[51].mxu0 }
 0x4ac   : > { %7169 = vmatmul.mubr.msk.bf16.gmra.mrb[24].mxu1 %vm947_vm1, %v8980_v39  ;;  %v3970_v39 = vpack.c.bf16 %v3949_v6, %v3948_v2 }
 0x4ad   : > { %7172 = vmatprep.mubr.msk.bf16.mxu1 %vm947_vm1, %v8982_v55  ;;  %v9166_v58 = vpop.f32.mrb[52].mxu0  ;;  %v3950_v55 = vld [vmem:[#allocation2 + $0x13a] sm:$0xff] }
 0x4ae   : > { %v9168_v4 = vpop.f32.mrb[53].mxu0 }
 0x4af   : > { %v9172_v18 = vpop.f32.mrb[54].mxu0 }
 0x4b0   : > { %v9175_v48 = vpop.f32.mrb[55].mxu0 }
 0x4b4   : > { %7173 = vmatmul.mubr.msk.bf16.gmra.mrb[28].mxu1 %vm947_vm1, %v8996_v36  ;;  %v3971_v36 = vpack.c.bf16 %v3951_v22, %v3950_v55 }
 0x4b5   : > { %7176 = vmatprep.mubr.msk.bf16.mxu1 %vm947_vm1, %v3968_v9 }
 0x4bc   : > { %7177 = vmatmul.mubr.msk.bf16.gmra.mrb[32].mxu1 %vm947_vm1, %v3969_v26 }
 0x4bd   : > { %7180 = vmatprep.mubr.msk.bf16.mxu1 %vm947_vm1, %v3970_v39 }
 0x4c4   : > { %7181 = vmatmul.mubr.msk.bf16.gmra.mrb[4].mxu1 %vm947_vm1, %v3971_v36 }
 0x4c5   : > { %7184 = vmatprep.mubr.msk.bf16.mxu1 %vm947_vm1, %v3972_v19 }
 0x4cc   : > { %7185 = vmatmul.mubr.msk.bf16.gmra.mrb[8].mxu1 %vm947_vm1, %v3973_v57 }
 0x4cd   : > { %7188 = vmatprep.mubr.msk.bf16.mxu1 %vm947_vm1, %v9029_v16 }
 0x4d4   : > { %7189 = vmatmul.mubr.msk.bf16.gmra.mrb[12].mxu1 %vm947_vm1, %v3975_v7 }
 0x56f   : > { %v7162_v12 = vpop.f32.mrb[16].mxu1 }
 0x570   : > { %v9185_v8 = vadd.f32 %v7162_v12, %v6946_v5  ;;  %v4075_v24 = vpop.f32.mrb[17].mxu1 }
 0x571   : > { %v9187_v27 = vadd.f32 %v4075_v24, %v2238_v59  ;;  %v7163_v47 = vpop.f32.mrb[18].mxu1 }
 0x572   : > { %v9189_v29 = vadd.f32 %v7163_v47, %v6947_v51  ;;  %v4078_v33 = vpop.f32.mrb[19].mxu1  ;;  %v4307_v16 = vmul.f32 %v9185_v8, %v9185_v8 }
 0x573   : > { %v4305_v9 = vmul.f32 %v9187_v27, %v9187_v27  ;;  %v9193_v62 = vadd.f32 %v4078_v33, %v2241_v42  ;;  %v4236_v13 = vsel %vm947_vm1, %v9187_v27, 0.0  ;;  %v4239_v42 = vsel %vm947_vm1, %v9185_v8, 0.0 }
 0x574   : > { %v4308_v51 = vmul.f32 %v9189_v29, %v9189_v29  ;;  %v4340_v36 = vsel %vm947_vm1, %v4307_v16, 0.0  ;;  %v4241_v19 = vsel %vm947_vm1, %v9189_v29, 0.0 }
 0x575   : > { %v4237_v5 = vsel %vm947_vm1, %v9193_v62, 0.0  ;;  %v4306_v59 = vmul.f32 %v9193_v62, %v9193_v62  ;;  %v4337_v6 = vsel %vm947_vm1, %v4305_v9, 0.0 }
 0x576   : > { %v4238_v2 = vadd.f32 %v4237_v5, %v4236_v13  ;;  %v4342_v57 = vsel %vm947_vm1, %v4308_v51, 0.0 }
 0x577   : > { %v4338_v26 = vsel %vm947_vm1, %v4306_v59, 0.0  ;;  %v7166_v39 = vpop.f32.mrb[20].mxu1 }
 0x578   : > { %v4240_v55 = vadd.f32 %v4239_v42, %v4238_v2  ;;  %v4339_v22 = vadd.f32 %v4338_v26, %v4337_v6  ;;  %v9210_v45 = vadd.f32 %v7166_v39, %v9130_v11  ;;  %v4091_v54 = vpop.f32.mrb[21].mxu1 }
 0x579   : > { %v9216_v53 = vadd.f32 %v4091_v54, %v9132_v35  ;;  %v7167_v34 = vpop.f32.mrb[22].mxu1 }
 0x57a   : > { %v4341_v31 = vadd.f32 %v4340_v36, %v4339_v22  ;;  %v4242_v46 = vadd.f32 %v4241_v19, %v4240_v55  ;;  %v4094_v7 = vpop.f32.mrb[23].mxu1  ;;  %v9224_v24 = vadd.f32 %v7167_v34, %v9136_v63  ;;  %v4311_v13 = vmul.f32 %v9210_v45, %v9210_v45 }
 0x57b   : > { %v4243_v12 = vsel %vm947_vm1, %v9216_v53, 0.0  ;;  %v4309_v11 = vmul.f32 %v9216_v53, %v9216_v53  ;;  %v9227_v47 = vadd.f32 %v4094_v7, %v9140_v25  ;;  %v4247_v63 = vsel %vm947_vm1, %v9210_v45, 0.0 }
 0x57c   : > { %v4244_v35 = vadd.f32 %v4243_v12, %v4242_v46  ;;  %v4343_v33 = vadd.f32 %v4342_v57, %v4341_v31  ;;  %v4312_v2 = vmul.f32 %v9224_v24, %v9224_v24  ;;  %v4249_v55 = vsel %vm947_vm1, %v9224_v24, 0.0 }
 0x57d   : > { %v4344_v9 = vsel %vm947_vm1, %v4309_v11, 0.0  ;;  %v4245_v16 = vsel %vm947_vm1, %v9227_v47, 0.0  ;;  %v4310_v51 = vmul.f32 %v9227_v47, %v9227_v47  ;;  %v4348_v19 = vsel %vm947_vm1, %v4311_v13, 0.0 }
 0x57e   : > { %v4345_v5 = vadd.f32 %v4344_v9, %v4343_v33  ;;  %v4246_v59 = vadd.f32 %v4245_v16, %v4244_v35 }
 0x57f   : > { %v7170_v25 = vpop.f32.mrb[24].mxu1  ;;  %v4346_v6 = vsel %vm947_vm1, %v4310_v51, 0.0 }
 0x580   : > { %v4248_v42 = vadd.f32 %v4247_v63, %v4246_v59  ;;  %v9242_v26 = vadd.f32 %v7170_v25, %v9142_v23  ;;  %v4107_v39 = vpop.f32.mrb[25].mxu1  ;;  %v4347_v22 = vadd.f32 %v4346_v6, %v4345_v5 }
 0x581   : > { %v9247_v54 = vadd.f32 %v4107_v39, %v9144_v44  ;;  %v7171_v36 = vpop.f32.mrb[26].mxu1  ;;  %v4350_v44 = vsel %vm947_vm1, %v4312_v2, 0.0 }
 0x582   : > { %v4250_v34 = vadd.f32 %v4249_v55, %v4248_v42  ;;  %v9251_v57 = vadd.f32 %v7171_v36, %v9148_v17  ;;  %v4110_v31 = vpop.f32.mrb[27].mxu1  ;;  %v4349_v46 = vadd.f32 %v4348_v19, %v4347_v22  ;;  %v4315_v16 = vmul.f32 %v9242_v26, %v9242_v26 }
 0x583   : > { %v4251_v23 = vsel %vm947_vm1, %v9247_v54, 0.0  ;;  %v4313_v7 = vmul.f32 %v9247_v54, %v9247_v54  ;;  %v9258_v12 = vadd.f32 %v4110_v31, %v9152_v40  ;;  %v4255_v40 = vsel %vm947_vm1, %v9242_v26, 0.0 }
 0x584   : > { %v4252_v11 = vadd.f32 %v4251_v23, %v4250_v34  ;;  %v4351_v35 = vadd.f32 %v4350_v44, %v4349_v46  ;;  %v4316_v63 = vmul.f32 %v9251_v57, %v9251_v57  ;;  %v4257_v6 = vsel %vm947_vm1, %v9251_v57, 0.0 }
 0x585   : > { %v4352_v33 = vsel %vm947_vm1, %v4313_v7, 0.0  ;;  %v4253_v17 = vsel %vm947_vm1, %v9258_v12, 0.0  ;;  %v4314_v9 = vmul.f32 %v9258_v12, %v9258_v12  ;;  %v4356_v36 = vsel %vm947_vm1, %v4315_v16, 0.0 }
 0x586   : > { %v4254_v13 = vadd.f32 %v4253_v17, %v4252_v11  ;;  %v4353_v5 = vadd.f32 %v4352_v33, %v4351_v35 }
 0x587   : > { %v4354_v59 = vsel %vm947_vm1, %v4314_v9, 0.0  ;;  %v7174_v51 = vpop.f32.mrb[28].mxu1 }
 0x588   : > { %v4256_v25 = vadd.f32 %v4255_v40, %v4254_v13  ;;  %v9274_v2 = vadd.f32 %v7174_v51, %v9154_v49  ;;  %v4123_v42 = vpop.f32.mrb[29].mxu1  ;;  %v4355_v39 = vadd.f32 %v4354_v59, %v4353_v5 }
 0x589   : > { %v9279_v55 = vadd.f32 %v4123_v42, %v9156_v50  ;;  %v7175_v22 = vpop.f32.mrb[30].mxu1  ;;  %v4358_v50 = vsel %vm947_vm1, %v4316_v63, 0.0 }
 0x58a   : > { %v4258_v19 = vadd.f32 %v4257_v6, %v4256_v25  ;;  %v9283_v34 = vadd.f32 %v7175_v22, %v9160_v3  ;;  %v4126_v31 = vpop.f32.mrb[31].mxu1  ;;  %v4357_v46 = vadd.f32 %v4356_v36, %v4355_v39  ;;  %v4319_v17 = vmul.f32 %v9274_v2, %v9274_v2 }
 0x58b   : > { %v4259_v49 = vsel %vm947_vm1, %v9279_v55, 0.0  ;;  %v4317_v23 = vmul.f32 %v9279_v55, %v9279_v55  ;;  %v9290_v7 = vadd.f32 %v4126_v31, %v9164_v28  ;;  %v4263_v28 = vsel %vm947_vm1, %v9274_v2, 0.0 }
 0x58c   : > { %v4260_v44 = vadd.f32 %v4259_v49, %v4258_v19  ;;  %v4359_v11 = vadd.f32 %v4358_v50, %v4357_v46  ;;  %v4320_v5 = vmul.f32 %v9283_v34, %v9283_v34  ;;  %v4265_v25 = vsel %vm947_vm1, %v9283_v34, 0.0 }
 0x58d   : > { %v4360_v35 = vsel %vm947_vm1, %v4317_v23, 0.0  ;;  %v4261_v3 = vsel %vm947_vm1, %v9290_v7, 0.0  ;;  %v4318_v33 = vmul.f32 %v9290_v7, %v9290_v7  ;;  %v4364_v22 = vsel %vm947_vm1, %v4319_v17, 0.0 }
 0x58e   : > { %v4262_v9 = vadd.f32 %v4261_v3, %v4260_v44  ;;  %v4361_v16 = vadd.f32 %v4360_v35, %v4359_v11 }
 0x58f   : > { %v4362_v13 = vsel %vm947_vm1, %v4318_v33, 0.0  ;;  %v7178_v40 = vpop.f32.mrb[32].mxu1 }
 0x590   : > { %v4264_v59 = vadd.f32 %v4263_v28, %v4262_v9  ;;  %v9306_v51 = vadd.f32 %v7178_v40, %v9166_v58  ;;  %v4139_v63 = vpop.f32.mrb[33].mxu1  ;;  %v4363_v42 = vadd.f32 %v4362_v13, %v4361_v16 }
 0x591   : > { %v9311_v6 = vadd.f32 %v4139_v63, %v9168_v4  ;;  %v7179_v39 = vpop.f32.mrb[34].mxu1  ;;  %v4366_v4 = vsel %vm947_vm1, %v4320_v5, 0.0 }
 0x592   : > { %v4266_v36 = vadd.f32 %v4265_v25, %v4264_v59  ;;  %v9315_v19 = vadd.f32 %v7179_v39, %v9172_v18  ;;  %v4142_v31 = vpop.f32.mrb[35].mxu1  ;;  %v4365_v46 = vadd.f32 %v4364_v22, %v4363_v42  ;;  %v4323_v3 = vmul.f32 %v9306_v51, %v9306_v51 }
 0x593   : > { %v4267_v58 = vsel %vm947_vm1, %v9311_v6, 0.0  ;;  %v4321_v49 = vmul.f32 %v9311_v6, %v9311_v6  ;;  %v9322_v23 = vadd.f32 %v4142_v31, %v9175_v48  ;;  %v4271_v48 = vsel %vm947_vm1, %v9306_v51, 0.0 }
 0x594   : > { %v4268_v50 = vadd.f32 %v4267_v58, %v4266_v36  ;;  %v4367_v44 = vadd.f32 %v4366_v4, %v4365_v46  ;;  %v4324_v16 = vmul.f32 %v9315_v19, %v9315_v19  ;;  %v4273_v59 = vsel %vm947_vm1, %v9315_v19, 0.0 }
 0x595   : > { %v4368_v11 = vsel %vm947_vm1, %v4321_v49, 0.0  ;;  %v4269_v18 = vsel %vm947_vm1, %v9322_v23, 0.0  ;;  %v4322_v35 = vmul.f32 %v9322_v23, %v9322_v23  ;;  %v4372_v39 = vsel %vm947_vm1, %v4323_v3, 0.0 }
 0x596   : > { %v4270_v33 = vadd.f32 %v4269_v18, %v4268_v50  ;;  %v4369_v17 = vadd.f32 %v4368_v11, %v4367_v44 }
 0x597   : > { %v4370_v9 = vsel %vm947_vm1, %v4322_v35, 0.0  ;;  %v7182_v28 = vpop.f32.mrb[4].mxu1 }
 0x598   : > { %v4272_v13 = vadd.f32 %v4271_v48, %v4270_v33  ;;  %v9338_v40 = vadd.f32 %v7182_v28, %v9091_v37  ;;  %v4155_v5 = vpop.f32.mrb[5].mxu1  ;;  %v4371_v63 = vadd.f32 %v4370_v9, %v4369_v17 }
 0x599   : > { %v9343_v25 = vadd.f32 %v4155_v5, %v9093_v43  ;;  %v7183_v42 = vpop.f32.mrb[6].mxu1  ;;  %v4374_v43 = vsel %vm947_vm1, %v4324_v16, 0.0 }
 0x59a   : > { %v4274_v22 = vadd.f32 %v4273_v59, %v4272_v13  ;;  %v9347_v36 = vadd.f32 %v7183_v42, %v9097_v0  ;;  %v4158_v31 = vpop.f32.mrb[7].mxu1  ;;  %v4373_v46 = vadd.f32 %v4372_v39, %v4371_v63  ;;  %v4327_v18 = vmul.f32 %v9338_v40, %v9338_v40 }
 0x59b   : > { %v4275_v37 = vsel %vm947_vm1, %v9343_v25, 0.0  ;;  %v4325_v58 = vmul.f32 %v9343_v25, %v9343_v25  ;;  %v9354_v49 = vadd.f32 %v4158_v31, %v9101_v10  ;;  %v4279_v10 = vsel %vm947_vm1, %v9338_v40, 0.0 }
 0x59c   : > { %v4276_v4 = vadd.f32 %v4275_v37, %v4274_v22  ;;  %v4375_v50 = vadd.f32 %v4374_v43, %v4373_v46  ;;  %v4328_v17 = vmul.f32 %v9347_v36, %v9347_v36  ;;  %v4281_v13 = vsel %vm947_vm1, %v9347_v36, 0.0 }
 0x59d   : > { %v4376_v44 = vsel %vm947_vm1, %v4325_v58, 0.0  ;;  %v4277_v0 = vsel %vm947_vm1, %v9354_v49, 0.0  ;;  %v4326_v11 = vmul.f32 %v9354_v49, %v9354_v49  ;;  %v4380_v42 = vsel %vm947_vm1, %v4327_v18, 0.0 }
 0x59e   : > { %v4278_v35 = vadd.f32 %v4277_v0, %v4276_v4  ;;  %v4377_v3 = vadd.f32 %v4376_v44, %v4375_v50 }
 0x59f   : > { %v4378_v33 = vsel %vm947_vm1, %v4326_v11, 0.0  ;;  %v7186_v48 = vpop.f32.mrb[8].mxu1 }
 0x5a0   : > { %v4280_v9 = vadd.f32 %v4279_v10, %v4278_v35  ;;  %v9370_v28 = vadd.f32 %v7186_v48, %v9103_v56  ;;  %v4171_v16 = vpop.f32.mrb[9].mxu1  ;;  %v4379_v5 = vadd.f32 %v4378_v33, %v4377_v3 }
 0x5a1   : > { %v9375_v59 = vadd.f32 %v4171_v16, %v9105_v52  ;;  %v7187_v63 = vpop.f32.mrb[10].mxu1  ;;  %v4382_v52 = vsel %vm947_vm1, %v4328_v17, 0.0 }
 0x5a2   : > { %v4282_v39 = vadd.f32 %v4281_v13, %v4280_v9  ;;  %v9379_v22 = vadd.f32 %v7187_v63, %v9109_v61  ;;  %v4174_v31 = vpop.f32.mrb[11].mxu1  ;;  %v4381_v46 = vadd.f32 %v4380_v42, %v4379_v5  ;;  %v4331_v0 = vmul.f32 %v9370_v28, %v9370_v28 }
 0x5a3   : > { %v4283_v56 = vsel %vm947_vm1, %v9375_v59, 0.0  ;;  %v4329_v37 = vmul.f32 %v9375_v59, %v9375_v59  ;;  %v9386_v58 = vadd.f32 %v4174_v31, %v9113_v14  ;;  %v4287_v14 = vsel %vm947_vm1, %v9370_v28, 0.0 }
 0x5a4   : > { %v4284_v43 = vadd.f32 %v4283_v56, %v4282_v39  ;;  %v4383_v4 = vadd.f32 %v4382_v52, %v4381_v46  ;;  %v4332_v3 = vmul.f32 %v9379_v22, %v9379_v22  ;;  %v4289_v9 = vsel %vm947_vm1, %v9379_v22, 0.0 }
 0x5a5   : > { %v4384_v50 = vsel %vm947_vm1, %v4329_v37, 0.0  ;;  %v4285_v61 = vsel %vm947_vm1, %v9386_v58, 0.0  ;;  %v4330_v44 = vmul.f32 %v9386_v58, %v9386_v58  ;;  %v4388_v63 = vsel %vm947_vm1, %v4331_v0, 0.0 }
 0x5a6   : > { %v4286_v11 = vadd.f32 %v4285_v61, %v4284_v43  ;;  %v4385_v18 = vadd.f32 %v4384_v50, %v4383_v4 }
 0x5a7   : > { %v4386_v35 = vsel %vm947_vm1, %v4330_v44, 0.0  ;;  %v7190_v10 = vpop.f32.mrb[12].mxu1 }
 0x5a8   : > { %v4288_v33 = vadd.f32 %v4287_v14, %v4286_v11  ;;  %v9402_v48 = vadd.f32 %v7190_v10, %v9115_v38  ;;  %v4187_v17 = vpop.f32.mrb[13].mxu1  ;;  %v4387_v16 = vadd.f32 %v4386_v35, %v4385_v18 }
 0x5a9   : > { %v9407_v13 = vadd.f32 %v4187_v17, %v9117_v60  ;;  %v7191_v5 = vpop.f32.mrb[14].mxu1  ;;  %v4390_v60 = vsel %vm947_vm1, %v4332_v3, 0.0 }
 0x5aa   : > { %v4290_v42 = vadd.f32 %v4289_v9, %v4288_v33  ;;  %v9411_v39 = vadd.f32 %v7191_v5, %v9121_v15  ;;  %v4190_v31 = vpop.f32.mrb[15].mxu1  ;;  %v4389_v46 = vadd.f32 %v4388_v63, %v4387_v16  ;;  %v4335_v61 = vmul.f32 %v9402_v48, %v9402_v48 }
 0x5ab   : > { %v4291_v38 = vsel %vm947_vm1, %v9407_v13, 0.0  ;;  %v4333_v56 = vmul.f32 %v9407_v13, %v9407_v13  ;;  %v9418_v37 = vadd.f32 %v4190_v31, %v9125_v32  ;;  %v4295_v32 = vsel %vm947_vm1, %v9402_v48, 0.0 }
 0x5ac   : > { %v4292_v52 = vadd.f32 %v4291_v38, %v4290_v42  ;;  %v4391_v43 = vadd.f32 %v4390_v60, %v4389_v46  ;;  %v4336_v14 = vmul.f32 %v9411_v39, %v9411_v39  ;;  %v4297_v35 = vsel %vm947_vm1, %v9411_v39, 0.0 }
 0x5ad   : > { %v4392_v4 = vsel %vm947_vm1, %v4333_v56, 0.0  ;;  %v4293_v15 = vsel %vm947_vm1, %v9418_v37, 0.0  ;;  %v4334_v50 = vmul.f32 %v9418_v37, %v9418_v37  ;;  %v4396_v3 = vsel %vm947_vm1, %v4335_v61, 0.0 }
 0x5ae   : > { %v4294_v44 = vadd.f32 %v4293_v15, %v4292_v52  ;;  %v4393_v0 = vadd.f32 %v4392_v4, %v4391_v43  ;;  %v4398_v9 = vsel %vm947_vm1, %v4336_v14, 0.0 }
 0x5af   : > { %v4394_v11 = vsel %vm947_vm1, %v4334_v50, 0.0 }
 0x5b0   : > { %v4296_v18 = vadd.f32 %v4295_v32, %v4294_v44  ;;  %v4395_v10 = vadd.f32 %v4394_v11, %v4393_v0 }
 0x5b2   : > { %v4298_v33 = vadd.f32 %v4297_v35, %v4296_v18  ;;  %v4397_v17 = vadd.f32 %v4396_v3, %v4395_v10 }
 0x5b4   : > { %v4299_v16 = vrot.slane %v4298_v33, 4  ;;  %v4399_v5 = vadd.f32 %v4398_v9, %v4397_v17  ;;  %v10989_v17 = vld [vmem:[#allocation12_spill] sm:$0xff] }
 0x5b6   : > { %v4300_v63 = vadd.f32 %v4299_v16, %v4298_v33  ;;  %v4400_v42 = vrot.slane %v4399_v5, 4 }
 0x5b8   : > { %v4301_v31 = vrot.slane %v4300_v63, 2  ;;  %v4401_v46 = vadd.f32 %v4400_v42, %v4399_v5 }
 0x5ba   : > { %v4302_v38 = vadd.f32 %v4301_v31, %v4300_v63  ;;  %v4402_v56 = vrot.slane %v4401_v46, 2 }
 0x5bc   : > { %v4303_v60 = vrot.slane %v4302_v38, 1  ;;  %v4403_v52 = vadd.f32 %v4402_v56, %v4401_v46 }
 0x5be   : > { %v4404_v43 = vrot.slane %v4403_v52, 1  ;;  %v4304_v4 = vadd.f32 %v4303_v60, %v4302_v38  ;;  %v10990_v38 = vld [vmem:[#allocation13_spill] sm:$0xff] }
 0x5c0   : > { %v4405_v15 = vadd.f32 %v4404_v43, %v4403_v52 }
 0x5c2   : > { %v4406_v50 = vsel %vm10910_vm4, %v4304_v4, %v4405_v15 }
 0x5c3   : > { %7201 = vmatmul.mubr.msk.f32.vlgmr.msra.gmra.mrb[34].mxu0 %vm947_vm1, %v4406_v50 }
 0x5c4   : > { %7387 = vmatpush3.bf16.msk.msra.mxu0 %vm7377_vm0, %v10987_v30  ;;  %7207 = vmatprep.mubr.msk.f32.mxu0 %vm10907_vm3, %v10988_v41 }
 0x5c5   : > { %7210 = vmatprep.subr.bf16.mxu0 %v7785_v20 }
 0x696   : > { %v4476_v61 = vpop.f32.mrb[34].mxu0 }
 0x697   : > { %v4480_v44 = vmul.f32 0.001953125, %v4476_v61  ;;  %v7202_v32 = vpop.f32.mrb[35].mxu0 }
 0x699   : > { %v4481_v0 = vmul.f32 %v4480_v44, %v4480_v44 }
 0x69b   : > { %v4483_v11 = vrot.slane %v4481_v0, 7 }
 0x69d   : > { %v4485_v14 = vsub.f32 %v4480_v44, %v4483_v11 }
 0x69f   : > { %v4486_v18 = vadd.f32 1e-05, %v4485_v14 }
 0x6a1   : > { %7793 = vrsqrt.f32 %v4486_v18 }
 0x6ab   : > { %v7794_v35 = vpop.eup %7793 }
 0x6ac   : > { %v4488_v10 = vsel %vm10910_vm4, %v4480_v44, %v7794_v35 }
 0x6ad   : > { %7208 = vmatmul.mubr.msk.f32.vlgmr.msra.gmra.mrb[68].mxu0 %vm10906_vm5, %v4488_v10 }
 0x6ae   : > { %7211 = vmatpush3.bf16.msra.mxu0 %v7785_v20 }
 0x6af   : > { %7212 = vmatprep.subr.bf16.mxu0 %v7786_v21 }
 0x6b2   : > { %7213 = vmatpush3.bf16.msra.mxu0 %v7786_v21 }
 0x6b3   : > { %7388 = vmatprep.subr.bf16.mxu0 %v10986_v1 }
 0x780   : > { %v4558_v3 = vpop.f32.mrb[68].mxu0 }
 0x781   : > { %v7209_v33 = vpop.f32.mrb[69].mxu0  ;;  %v9457_v9 = vrot.slane %v4558_v3, %v10989_v17  ;;  %v9472_v56 = vrot.slane %v4558_v3, %v10990_v38 }
 0x783   : > { %v4566_v16 = vsub.f32 %v9187_v27, %v9457_v9  ;;  %v4567_v5 = vsub.f32 %v9193_v62, %v9457_v9  ;;  %v4568_v63 = vsub.f32 %v9185_v8, %v9457_v9  ;;  %v4569_v42 = vsub.f32 %v9189_v29, %v9457_v9 }
 0x784   : > { %v4570_v31 = vsub.f32 %v9216_v53, %v9457_v9  ;;  %v4571_v46 = vsub.f32 %v9227_v47, %v9457_v9  ;;  %v4572_v27 = vsub.f32 %v9210_v45, %v9457_v9  ;;  %v4573_v62 = vsub.f32 %v9224_v24, %v9457_v9  ;;  %v9485_v47 = vld [vmem:[%s10875_s7] ss:$0 sm:$0xff] }
 0x785   : > { %v4602_v8 = vmul.f32 %v9472_v56, %v4566_v16  ;;  %v4603_v60 = vmul.f32 %v9472_v56, %v4567_v5  ;;  %v4604_v29 = vmul.f32 %v9472_v56, %v4568_v63  ;;  %v4605_v53 = vmul.f32 %v9472_v56, %v4569_v42 }
 0x786   : > { %v4574_v52 = vsub.f32 %v9247_v54, %v9457_v9  ;;  %v4575_v45 = vsub.f32 %v9258_v12, %v9457_v9  ;;  %v4606_v24 = vmul.f32 %v9472_v56, %v4570_v31  ;;  %v4607_v43 = vmul.f32 %v9472_v56, %v4571_v46  ;;  %v9502_v54 = vld [vmem:[%s10876_s8] ss:$0 sm:$0xff] }
 0x787   : > { %v4608_v4 = vmul.f32 %v9472_v56, %v4572_v27  ;;  %v4609_v15 = vmul.f32 %v9472_v56, %v4573_v62  ;;  %v4640_v50 = vmul.f32 %v9485_v47, %v4602_v8  ;;  %v4641_v61 = vmul.f32 %v9485_v47, %v4603_v60 }
 0x788   : > { %v4642_v44 = vmul.f32 %v9485_v47, %v4604_v29  ;;  %v4643_v32 = vmul.f32 %v9485_v47, %v4605_v53  ;;  %v4610_v12 = vmul.f32 %v9472_v56, %v4574_v52  ;;  %v4611_v0 = vmul.f32 %v9472_v56, %v4575_v45 }
 0x789   : > { %v4644_v11 = vmul.f32 %v9485_v47, %v4606_v24  ;;  %v4645_v14 = vmul.f32 %v9485_v47, %v4607_v43  ;;  %v4576_v18 = vsub.f32 %v9242_v26, %v9457_v9  ;;  %v4577_v35 = vsub.f32 %v9251_v57, %v9457_v9 }
 0x78a   : > { %v4578_v10 = vsub.f32 %v9279_v55, %v9457_v9  ;;  %v4579_v20 = vsub.f32 %v9290_v7, %v9457_v9  ;;  %v4646_v21 = vmul.f32 %v9485_v47, %v4608_v4  ;;  %v4647_v3 = vmul.f32 %v9485_v47, %v4609_v15 }
 0x78b   : > { %v4680_v33 = vadd.f32 %v9502_v54, %v4642_v44  ;;  %v4681_v16 = vadd.f32 %v9502_v54, %v4643_v32  ;;  %v4678_v5 = vadd.f32 %v9502_v54, %v4640_v50  ;;  %v4679_v26 = vadd.f32 %v9502_v54, %v4641_v61 }
 0x78c   : > { %v4648_v57 = vmul.f32 %v9485_v47, %v4610_v12  ;;  %v4649_v63 = vmul.f32 %v9485_v47, %v4611_v0  ;;  %v4682_v55 = vadd.f32 %v9502_v54, %v4644_v11  ;;  %v4683_v7 = vadd.f32 %v9502_v54, %v4645_v14 }
 0x78d   : > { %v4712_v42 = vmax.f32 %v4680_v33, 0.0  ;;  %v4713_v31 = vmax.f32 %v4681_v16, 0.0  ;;  %v4710_v46 = vmax.f32 %v4678_v5, 0.0  ;;  %v4711_v27 = vmax.f32 %v4679_v26, 0.0 }
 0x78e   : > { %v4714_v62 = vmax.f32 %v4682_v55, 0.0  ;;  %v4715_v8 = vmax.f32 %v4683_v7, 0.0  ;;  %v4612_v60 = vmul.f32 %v9472_v56, %v4576_v18  ;;  %v4613_v52 = vmul.f32 %v9472_v56, %v4577_v35 }
 0x78f   : > { %v4742_v29 = vpack.c.bf16 %v4711_v27, %v4710_v46  ;;  %v4743_v53 = vpack.c.bf16 %v4713_v31, %v4712_v42  ;;  %v4614_v45 = vmul.f32 %v9472_v56, %v4578_v10  ;;  %v4684_v24 = vadd.f32 %v9502_v54, %v4646_v21 }
 0x790   : > { %v4685_v43 = vadd.f32 %v9502_v54, %v4647_v3  ;;  %v4615_v4 = vmul.f32 %v9472_v56, %v4579_v20  ;;  %v4744_v15 = vpack.c.bf16 %v4715_v8, %v4714_v62  ;;  %v4686_v50 = vadd.f32 %v9502_v54, %v4648_v57 }
 0x791   : > { %7214 = vmatprep.mubr.msk.bf16.mxu0 %vm947_vm1, %v4742_v29  ;;  %v4687_v61 = vadd.f32 %v9502_v54, %v4649_v63  ;;  %v4580_v44 = vsub.f32 %v9274_v2, %v9457_v9  ;;  %v4581_v32 = vsub.f32 %v9283_v34, %v9457_v9  ;;  %v4582_v12 = vsub.f32 %v9311_v6, %v9457_v9 }
 0x792   : > { %7215 = vmatmul.mubr.msk.bf16.vlgmr.msra.gmra.mrb[72].mxu0 %vm947_vm1, %v4743_v53  ;;  %v4583_v0 = vsub.f32 %v9322_v23, %v9457_v9  ;;  %v4650_v11 = vmul.f32 %v9485_v47, %v4612_v60  ;;  %v4651_v14 = vmul.f32 %v9485_v47, %v4613_v52  ;;  %v4716_v18 = vmax.f32 %v4684_v24, 0.0 }
 0x793   : > { %7218 = vmatprep.mubr.msk.bf16.mxu0 %vm947_vm1, %v4744_v15  ;;  %v4717_v35 = vmax.f32 %v4685_v43, 0.0  ;;  %v4652_v10 = vmul.f32 %v9485_v47, %v4614_v45  ;;  %v4653_v2 = vmul.f32 %v9485_v47, %v4615_v4  ;;  %v4718_v20 = vmax.f32 %v4686_v50, 0.0 }
 0x794   : > { %v4719_v34 = vmax.f32 %v4687_v61, 0.0  ;;  %v4616_v21 = vmul.f32 %v9472_v56, %v4580_v44  ;;  %v4617_v6 = vmul.f32 %v9472_v56, %v4581_v32  ;;  %v4618_v23 = vmul.f32 %v9472_v56, %v4582_v12 }
 0x795   : > { %v4745_v3 = vpack.c.bf16 %v4717_v35, %v4716_v18  ;;  %v4688_v33 = vadd.f32 %v9502_v54, %v4650_v11  ;;  %v4689_v16 = vadd.f32 %v9502_v54, %v4651_v14  ;;  %v4619_v5 = vmul.f32 %v9472_v56, %v4583_v0 }
 0x796   : > { %v4746_v26 = vpack.c.bf16 %v4719_v34, %v4718_v20  ;;  %v4690_v57 = vadd.f32 %v9502_v54, %v4652_v10  ;;  %v4691_v63 = vadd.f32 %v9502_v54, %v4653_v2  ;;  %v4584_v55 = vsub.f32 %v9306_v51, %v9457_v9 }
 0x797   : > { %v4585_v7 = vsub.f32 %v9315_v19, %v9457_v9  ;;  %v4586_v42 = vsub.f32 %v9343_v25, %v9457_v9  ;;  %v4587_v31 = vsub.f32 %v9354_v49, %v9457_v9  ;;  %v4654_v46 = vmul.f32 %v9485_v47, %v4616_v21 }
 0x798   : > { %v4655_v27 = vmul.f32 %v9485_v47, %v4617_v6  ;;  %v4720_v62 = vmax.f32 %v4688_v33, 0.0  ;;  %v4721_v8 = vmax.f32 %v4689_v16, 0.0  ;;  %v4656_v60 = vmul.f32 %v9485_v47, %v4618_v23 }
 0x799   : > { %v4657_v51 = vmul.f32 %v9485_v47, %v4619_v5  ;;  %v4722_v29 = vmax.f32 %v4690_v57, 0.0  ;;  %v4723_v19 = vmax.f32 %v4691_v63, 0.0  ;;  %v4620_v53 = vmul.f32 %v9472_v56, %v4584_v55 }
 0x79a   : > { %7219 = vmatmul.mubr.msk.bf16.gmra.mrb[76].mxu0 %vm947_vm1, %v4745_v3  ;;  %v4621_v25 = vmul.f32 %v9472_v56, %v4585_v7  ;;  %v4622_v49 = vmul.f32 %v9472_v56, %v4586_v42  ;;  %v4747_v52 = vpack.c.bf16 %v4721_v8, %v4720_v62  ;;  %v4692_v45 = vadd.f32 %v9502_v54, %v4654_v46 }
 0x79b   : > { %7222 = vmatprep.mubr.msk.bf16.mxu0 %vm947_vm1, %v4746_v26  ;;  %v4693_v24 = vadd.f32 %v9502_v54, %v4655_v27  ;;  %v4623_v43 = vmul.f32 %v9472_v56, %v4587_v31  ;;  %v4748_v4 = vpack.c.bf16 %v4723_v19, %v4722_v29  ;;  %v4694_v15 = vadd.f32 %v9502_v54, %v4656_v60 }
 0x79c   : > { %v4695_v50 = vadd.f32 %v9502_v54, %v4657_v51  ;;  %v4588_v61 = vsub.f32 %v9338_v40, %v9457_v9  ;;  %v4589_v44 = vsub.f32 %v9347_v36, %v9457_v9  ;;  %v4590_v32 = vsub.f32 %v9375_v59, %v9457_v9 }
 0x79d   : > { %v4591_v12 = vsub.f32 %v9386_v58, %v9457_v9  ;;  %v4658_v0 = vmul.f32 %v9485_v47, %v4620_v53  ;;  %v4659_v11 = vmul.f32 %v9485_v47, %v4621_v25  ;;  %v4724_v14 = vmax.f32 %v4692_v45, 0.0 }
 0x79e   : > { %v4725_v18 = vmax.f32 %v4693_v24, 0.0  ;;  %v4660_v35 = vmul.f32 %v9485_v47, %v4622_v49  ;;  %v4661_v40 = vmul.f32 %v9485_v47, %v4623_v43  ;;  %v4726_v10 = vmax.f32 %v4694_v15, 0.0 }
 0x79f   : > { %v4727_v36 = vmax.f32 %v4695_v50, 0.0  ;;  %v4624_v2 = vmul.f32 %v9472_v56, %v4588_v61  ;;  %v4625_v59 = vmul.f32 %v9472_v56, %v4589_v44  ;;  %v4626_v58 = vmul.f32 %v9472_v56, %v4590_v32 }
 0x7a0   : > { %v4749_v20 = vpack.c.bf16 %v4725_v18, %v4724_v14  ;;  %v4696_v34 = vadd.f32 %v9502_v54, %v4658_v0  ;;  %v4697_v21 = vadd.f32 %v9502_v54, %v4659_v11  ;;  %v4627_v6 = vmul.f32 %v9472_v56, %v4591_v12 }
 0x7a1   : > { %v4750_v23 = vpack.c.bf16 %v4727_v36, %v4726_v10  ;;  %v4698_v3 = vadd.f32 %v9502_v54, %v4660_v35  ;;  %v4699_v33 = vadd.f32 %v9502_v54, %v4661_v40  ;;  %v4592_v16 = vsub.f32 %v9370_v28, %v9457_v9 }
 0x7a2   : > { %7223 = vmatmul.mubr.msk.bf16.gmra.mrb[80].mxu0 %vm947_vm1, %v4747_v52  ;;  %v4593_v5 = vsub.f32 %v9379_v22, %v9457_v9  ;;  %v4594_v26 = vsub.f32 %v9407_v13, %v9457_v9  ;;  %v4595_v57 = vsub.f32 %v9418_v37, %v9457_v9  ;;  %v4662_v63 = vmul.f32 %v9485_v47, %v4624_v2 }
 0x7a3   : > { %7226 = vmatprep.mubr.msk.bf16.mxu0 %vm947_vm1, %v4748_v4  ;;  %v4663_v55 = vmul.f32 %v9485_v47, %v4625_v59  ;;  %v4728_v7 = vmax.f32 %v4696_v34, 0.0  ;;  %v4729_v42 = vmax.f32 %v4697_v21, 0.0  ;;  %v4664_v31 = vmul.f32 %v9485_v47, %v4626_v58 }
 0x7a4   : > { %v4665_v28 = vmul.f32 %v9485_v47, %v4627_v6  ;;  %v4730_v46 = vmax.f32 %v4698_v3, 0.0  ;;  %v4731_v22 = vmax.f32 %v4699_v33, 0.0  ;;  %v4628_v27 = vmul.f32 %v9472_v56, %v4592_v16  ;;  %v10993_v3 = vld [vmem:[#allocation9_spill] sm:$0xff]  ;;  %v7804_v33 = vld [vmem:[%s8018_s21 + $0x28] sm:$0xff]  }
 0x7a5   : > { %v4629_v13 = vmul.f32 %v9472_v56, %v4593_v5  ;;  %v4630_v37 = vmul.f32 %v9472_v56, %v4594_v26  ;;  %v4751_v62 = vpack.c.bf16 %v4729_v42, %v4728_v7  ;;  %v4700_v8 = vadd.f32 %v9502_v54, %v4662_v63  ;;  %v10998_v5 = vld [vmem:[#allocation10_spill] sm:$0xff]  ;;  %v10999_v26 = vld [vmem:[#allocation11_spill] sm:$0xff]  ;;  %v7803_v16 = vld [vmem:[%s8018_s21 + $0x20] sm:$0xff]  }
 0x7a6   : > { %v4701_v60 = vadd.f32 %v9502_v54, %v4663_v55  ;;  %v4631_v51 = vmul.f32 %v9472_v56, %v4595_v57  ;;  %v4752_v29 = vpack.c.bf16 %v4731_v22, %v4730_v46  ;;  %v4702_v19 = vadd.f32 %v9502_v54, %v4664_v31  ;;  %v7805_v57 = vld [vmem:[%s8018_s21 + $0x30] sm:$0xff]   ;;  %v7806_v63 = vld [vmem:[%s8018_s21 + $0x38] sm:$0xff]   ;;  %v7807_v42 = vld [vmem:[%s8018_s21 + $0x40] sm:$0xff]  }
 0x7a7   : > { %v4703_v53 = vadd.f32 %v9502_v54, %v4665_v28  ;;  %v4596_v25 = vsub.f32 %v9402_v48, %v9457_v9  ;;  %v4597_v49 = vsub.f32 %v9411_v39, %v9457_v9  ;;  %v4666_v52 = vmul.f32 %v9485_v47, %v4628_v27  ;;  %v7808_v31 = vld [vmem:[%s8018_s21 + $0x48] sm:$0xff]  }
 0x7a8   : > { %v4667_v45 = vmul.f32 %v9485_v47, %v4629_v13  ;;  %v4732_v24 = vmax.f32 %v4700_v8, 0.0  ;;  %v4733_v43 = vmax.f32 %v4701_v60, 0.0  ;;  %v4668_v4 = vmul.f32 %v9485_v47, %v4630_v37 }
 0x7a9   : > { %v4669_v15 = vmul.f32 %v9485_v47, %v4631_v51  ;;  %v4734_v50 = vmax.f32 %v4702_v19, 0.0  ;;  %v4735_v61 = vmax.f32 %v4703_v53, 0.0  ;;  %v4632_v44 = vmul.f32 %v9472_v56, %v4596_v25 }
 0x7aa   : > { %7227 = vmatmul.mubr.msk.bf16.gmra.mrb[84].mxu0 %vm947_vm1, %v4749_v20  ;;  %v4633_v48 = vmul.f32 %v9472_v56, %v4597_v49  ;;  %v4753_v32 = vpack.c.bf16 %v4733_v43, %v4732_v24  ;;  %v4704_v39 = vadd.f32 %v9502_v54, %v4666_v52  ;;  %v4705_v9 = vadd.f32 %v9502_v54, %v4667_v45 }
 0x7ab   : > { %7230 = vmatprep.mubr.msk.bf16.mxu0 %vm947_vm1, %v4750_v23  ;;  %v4754_v12 = vpack.c.bf16 %v4735_v61, %v4734_v50  ;;  %v4706_v0 = vadd.f32 %v9502_v54, %v4668_v4  ;;  %v4707_v11 = vadd.f32 %v9502_v54, %v4669_v15  ;;  %v4670_v14 = vmul.f32 %v9485_v47, %v4632_v44  ;;  %v10992_v23 = vld [vmem:[#allocation7_spill] sm:$0xff] }
 0x7ac   : > { %v4671_v18 = vmul.f32 %v9485_v47, %v4633_v48  ;;  %v4736_v35 = vmax.f32 %v4704_v39, 0.0  ;;  %v4737_v56 = vmax.f32 %v4705_v9, 0.0  ;;  %v10991_v47 = vld [vmem:[#allocation8_spill] sm:$0xff]  ;;  %v483_v55 = vadd.s32 32, %v10992_v23 }
 0x7ad   : > { %v4738_v40 = vmax.f32 %v4706_v0, 0.0  ;;  %v4739_v10 = vmax.f32 %v4707_v11, 0.0  ;;  %v4708_v2 = vadd.f32 %v9502_v54, %v4670_v14  ;;  %v9651_v6 = vmul.u32 8, %v10991_v47 }
 0x7ae   : > { %v4755_v36 = vpack.c.bf16 %v4737_v56, %v4736_v35  ;;  %v4709_v59 = vadd.f32 %v9502_v54, %v4671_v18  ;;  %v484_v7 = vadd.s32 40, %v10992_v23  ;;  %v485_v28 = vadd.s32 48, %v10992_v23 }
 0x7af   : > { %v4756_v58 = vpack.c.bf16 %v4739_v10, %v4738_v40  ;;  %v4740_v20 = vmax.f32 %v4708_v2, 0.0  ;;  %vm496_vm0 = vcmp.ge.s32.totalorder %v10992_v23, %v9651_v6  ;;  %v9656_v54 = vadd.s32 8, %v9651_v6 }
 0x7b0   : > { %v4741_v34 = vmax.f32 %v4709_v59, 0.0  ;;  %vm497_vm7 = vcmp.ge.s32.totalorder %v10993_v3, %v9651_v6  ;;  %vm498_vm2 = vcmp.ge.s32.totalorder %v10998_v5, %v9651_v6  ;;  %vm499_vm6 = vcmp.ge.s32.totalorder %v10999_v26, %v9651_v6 }
 0x7b1   : > { %vm513_vm8 = vcmp.lt.s32.totalorder %v10992_v23, %v9656_v54  ;;  %vm515_vm10 = vcmp.lt.s32.totalorder %v10998_v5, %v9656_v54  ;;  %vm516_vm11 = vcmp.lt.s32.totalorder %v10999_v26, %v9656_v54  ;;  %v486_v46 = vadd.s32 56, %v10992_v23 }
 0x7b2   : > { %7231 = vmatmul.mubr.msk.bf16.gmra.mrb[88].mxu0 %vm947_vm1, %v4751_v62  ;;  %v4757_v21 = vpack.c.bf16 %v4741_v34, %v4740_v20  ;;  %vm9664_vm9 = vmand %vm496_vm0, %vm513_vm8  ;;  %vm501_vm8 = vcmp.ge.s32.totalorder %v484_v7, %v9651_v6  ;;  %v11008_v22 = vmov 0  ;;  %v11010_v27 = vmov 0 }
 0x7b3   : > { %7234 = vmatprep.mubr.msk.bf16.mxu0 %vm947_vm1, %v4752_v29  ;;  %vm9691_vm12 = vmand %vm498_vm2, %vm515_vm10  ;;  %vm518_vm2 = vcmp.lt.s32.totalorder %v484_v7, %v9656_v54  ;;  %v487_v13 = vadd.s32 64, %v10992_v23  ;;  %v488_v37 = vadd.s32 72, %v10992_v23  ;;  %v11012_v62 = vmov 0 }
 0x7b4   : > { %vm9695_vm13 = vmand %vm499_vm6, %vm516_vm11  ;;  %v11014_v8 = vmov 0  ;;  %v489_v60 = vadd.s32 80, %v10992_v23  ;;  %v490_v51 = vadd.s32 88, %v10992_v23  ;;  %v11016_v29 = vmov 0 }
 0x7b5   : > { %vm10903_vm0 = vmpackc.low %vm9695_vm13, %vm9691_vm12  ;;  %v11018_v19 = vmov 0  ;;  %v491_v53 = vadd.s32 96, %v10992_v23  ;;  %v492_v25 = vadd.s32 104, %v10992_v23  ;;  %v493_v49 = vadd.s32 112, %v10992_v23 }
 0x7b6   : > { %vm9720_vm10 = vmand %vm501_vm8, %vm518_vm2  ;;  %vm503_vm8 = vcmp.ge.s32.totalorder %v486_v46, %v9651_v6  ;;  %vm520_vm2 = vcmp.lt.s32.totalorder %v486_v46, %v9656_v54  ;;  %v494_v52 = vadd.s32 120, %v10992_v23  ;;  %v11024_v43 = vmov 0 }
 0x7ba   : > { %7235 = vmatmul.mubr.msk.bf16.gmra.mrb[92].mxu0 %vm947_vm1, %v4753_v32 }
 0x7bb   : > { %7238 = vmatprep.mubr.msk.bf16.mxu0 %vm947_vm1, %v4754_v12 }
 0x7c2   : > { %7239 = vmatmul.mubr.msk.bf16.gmra.mrb[96].mxu0 %vm947_vm1, %v4755_v36 }
 0x7c3   : > { %7242 = vmatprep.mubr.msk.bf16.mxu0 %vm947_vm1, %v4756_v58 }
 0x7ca   : > { %7243 = vmatmul.mubr.msk.bf16.gmra.mrb[100].mxu0 %vm947_vm1, %v4757_v21  ;;  %vm514_vm1 = vcmp.lt.s32.totalorder %v10993_v3, %v9656_v54 }
 0x7cb   : > { %7278 = vmatprep.mubr.msk.f32.mxu0 %vm10907_vm3, %v10988_v41  ;;  %vm9668_vm14 = vmand %vm497_vm7, %vm514_vm1  ;;  %vm500_vm7 = vcmp.ge.s32.totalorder %v483_v55, %v9651_v6  ;;  %vm517_vm1 = vcmp.lt.s32.totalorder %v483_v55, %v9656_v54 }
 0x7cc   : > { %vm10904_vm15 = vmpackc.low %vm9668_vm14, %vm9664_vm9 }
 0x7cd   : > { %7390 = vmatpush3.bf16.msk.msra.mxu0 %vm10904_vm15, %v10987_v30  ;;  %vm9716_vm6 = vmand %vm500_vm7, %vm517_vm1  ;;  %vm502_vm7 = vcmp.ge.s32.totalorder %v485_v28, %v9651_v6  ;;  %vm519_vm1 = vcmp.lt.s32.totalorder %v485_v28, %v9656_v54 }
 0x7ce   : > { %7391 = vmatprep.subr.bf16.mxu0 %v10986_v1  ;;  %vm10905_vm11 = vmpackc.low %vm9720_vm10, %vm9716_vm6 }
 0x7cf   : > { %vm9745_vm15 = vmand %vm503_vm8, %vm520_vm2  ;;  %vm505_vm8 = vcmp.ge.s32.totalorder %v488_v37, %v9651_v6  ;;  %vm522_vm2 = vcmp.lt.s32.totalorder %v488_v37, %v9656_v54 }
 0x7d0   : > { %v11011_v27 = vsel %vm9745_vm15, 4294967295, %v11010_v27  ;;  %vm9770_vm3 = vmand %vm505_vm8, %vm522_vm2  ;;  %vm507_vm8 = vcmp.ge.s32.totalorder %v490_v51, %v9651_v6  ;;  %vm524_vm2 = vcmp.lt.s32.totalorder %v490_v51, %v9656_v54 }
 0x7d1   : > { %7393 = vmatpush3.bf16.msk.msra.mxu0 %vm10903_vm0, %v10987_v30  ;;  %vm9741_vm0 = vmand %vm502_vm7, %vm519_vm1  ;;  %vm504_vm7 = vcmp.ge.s32.totalorder %v487_v13, %v9651_v6  ;;  %vm521_vm1 = vcmp.lt.s32.totalorder %v487_v13, %v9656_v54  ;;  %v11015_v8 = vsel %vm9770_vm3, 4294967295, %v11014_v8 }
 0x7d2   : > { %7394 = vmatprep.subr.bf16.mxu0 %v10986_v1  ;;  %v11009_v22 = vsel %vm9741_vm0, 4294967295, %v11008_v22  ;;  %vm9766_vm5 = vmand %vm504_vm7, %vm521_vm1  ;;  %vm506_vm7 = vcmp.ge.s32.totalorder %v489_v60, %v9651_v6  ;;  %vm523_vm1 = vcmp.lt.s32.totalorder %v489_v60, %v9656_v54 }
 0x7d3   : > { %v11013_v62 = vsel %vm9766_vm5, 4294967295, %v11012_v62  ;;  %vm9791_vm4 = vmand %vm506_vm7, %vm523_vm1  ;;  %vm508_vm7 = vcmp.ge.s32.totalorder %v491_v53, %v9651_v6  ;;  %vm525_vm1 = vcmp.lt.s32.totalorder %v491_v53, %v9656_v54 }
 0x7d4   : > { %v11017_v29 = vsel %vm9791_vm4, 4294967295, %v11016_v29 }
 0x7d5   : > { %7396 = vmatpush3.bf16.msk.msra.mxu0 %vm10905_vm11, %v10987_v30  ;;  %vm10909_vm11 = vmpackc.low %vm9745_vm15, %vm9741_vm0  ;;  %vm511_vm0 = vcmp.ge.s32.totalorder %v494_v52, %v9651_v6  ;;  %vm528_vm15 = vcmp.lt.s32.totalorder %v494_v52, %v9656_v54 }
 0x7d6   : > { %7397 = vmatprep.subr.bf16.mxu0 %v10986_v1 }
 0x7d9   : > { %7399 = vmatpush3.bf16.msk.msra.mxu0 %vm10909_vm11, %v10987_v30  ;;  %vm10912_vm11 = vmpackc.low %vm9770_vm3, %vm9766_vm5 }
 0x7da   : > { %7400 = vmatprep.subr.bf16.mxu0 %v10986_v1  ;;  %vm9795_vm5 = vmand %vm507_vm8, %vm524_vm2  ;;  %vm509_vm8 = vcmp.ge.s32.totalorder %v492_v25, %v9651_v6  ;;  %vm526_vm2 = vcmp.lt.s32.totalorder %v492_v25, %v9656_v54 }
 0x7db   : > { %v11019_v19 = vsel %vm9795_vm5, 4294967295, %v11018_v19  ;;  %vm9824_vm3 = vmand %vm509_vm8, %vm526_vm2 }
 0x7dd   : > { %7402 = vmatpush3.bf16.msk.msra.mxu0 %vm10912_vm11, %v10987_v30  ;;  %vm10914_vm11 = vmpackc.low %vm9795_vm5, %vm9791_vm4  ;;  %vm527_vm5 = vcmp.lt.s32.totalorder %v493_v49, %v9656_v54 }
 0x7de   : > { %7403 = vmatprep.subr.bf16.mxu0 %v10986_v1  ;;  %vm9818_vm4 = vmand %vm508_vm7, %vm525_vm1 }
 0x7df   : > { %vm10933_vm7 = vmpackc.low %vm9824_vm3, %vm9818_vm4 }
 0x7e0   : > { %vm9845_vm1 = vmand %vm511_vm0, %vm528_vm15  ;;  %vm11042_vm15 = vmmov 0  }
 0x7e1   : > { %7405 = vmatpush3.bf16.msk.msra.mxu0 %vm10914_vm11, %v10987_v30  ;;  %vm510_vm11 = vcmp.ge.s32.totalorder %v493_v49, %v9651_v6 }
 0x7e2   : > { %7406 = vmatprep.subr.bf16.mxu0 %v10986_v1  ;;  %vm9840_vm8 = vmand %vm510_vm11, %vm527_vm5  ;;  %vm11041_vm5 = vcmask 1040384  }
 0x7e3   : > { %v11025_v43 = vsel %vm9840_vm8, 4294967295, %v11024_v43  ;;  %vm10932_vm2 = vmpackc.low %vm9845_vm1, %vm9840_vm8 }
 0x7e5   : > { %7408 = vmatpush3.bf16.msk.msra.mxu0 %vm10933_vm7, %v10987_v30 }
 0x7e6   : > { %7409 = vmatprep.subr.bf16.mxu0 %v10986_v1 }
 0x7e9   : > { %7411 = vmatpush3.bf16.msk.msra.mxu0 %vm10932_vm2, %v10987_v30 }
 0x7ea   : > { %7412 = vmatprep.subr.bf16.mxu0 %v10986_v1 }
 0x865   : > { %v9860_v15 = vpop.f32.mrb[72].mxu0 }
 0x866   : > { %v9862_v50 = vpop.f32.mrb[73].mxu0  ;;  %v5024_v9 = vmul.f32 %v9860_v15, %v9860_v15 }
 0x867   : > { %v9864_v61 = vpop.f32.mrb[74].mxu0  ;;  %v5022_v48 = vmul.f32 %v9862_v50, %v9862_v50 }
 0x868   : > { %v9866_v44 = vpop.f32.mrb[75].mxu0  ;;  %v5025_v11 = vmul.f32 %v9864_v61, %v9864_v61 }
 0x869   : > { %v4985_v32 = vadd.f32 %v9866_v44, %v9862_v50  ;;  %v5023_v39 = vmul.f32 %v9866_v44, %v9866_v44 }
 0x86b   : > { %v4986_v12 = vadd.f32 %v9860_v15, %v4985_v32  ;;  %v5054_v0 = vadd.f32 %v5023_v39, %v5022_v48 }
 0x86d   : > { %v5055_v14 = vadd.f32 %v5054_v0, %v5024_v9  ;;  %v9879_v18 = vpop.f32.mrb[76].mxu0  ;;  %v4987_v35 = vadd.f32 %v9864_v61, %v4986_v12 }
 0x86e   : > { %v9882_v56 = vpop.f32.mrb[77].mxu0  ;;  %v5028_v21 = vmul.f32 %v9879_v18, %v9879_v18 }
 0x86f   : > { %v4988_v40 = vadd.f32 %v4987_v35, %v9882_v56  ;;  %v5026_v10 = vmul.f32 %v9882_v56, %v9882_v56  ;;  %v5056_v36 = vadd.f32 %v5055_v14, %v5025_v11  ;;  %v9887_v2 = vpop.f32.mrb[78].mxu0 }
 0x870   : > { %v9889_v59 = vpop.f32.mrb[79].mxu0  ;;  %v5029_v5 = vmul.f32 %v9887_v2, %v9887_v2 }
 0x871   : > { %v5057_v58 = vadd.f32 %v5056_v36, %v5026_v10  ;;  %v4989_v20 = vadd.f32 %v4988_v40, %v9889_v59  ;;  %v5027_v34 = vmul.f32 %v9889_v59, %v9889_v59 }
 0x873   : > { %v4990_v6 = vadd.f32 %v9879_v18, %v4989_v20  ;;  %v5058_v54 = vadd.f32 %v5057_v58, %v5027_v34 }
 0x875   : > { %v5059_v26 = vadd.f32 %v5058_v54, %v5028_v21  ;;  %v9899_v55 = vpop.f32.mrb[80].mxu0  ;;  %v4991_v7 = vadd.f32 %v9887_v2, %v4990_v6 }
 0x876   : > { %v9902_v28 = vpop.f32.mrb[81].mxu0  ;;  %v5032_v52 = vmul.f32 %v9899_v55, %v9899_v55 }
 0x877   : > { %v4992_v46 = vadd.f32 %v4991_v7, %v9902_v28  ;;  %v5030_v13 = vmul.f32 %v9902_v28, %v9902_v28  ;;  %v5060_v37 = vadd.f32 %v5059_v26, %v5029_v5  ;;  %v9907_v60 = vpop.f32.mrb[82].mxu0 }
 0x878   : > { %v9909_v51 = vpop.f32.mrb[83].mxu0  ;;  %v5033_v39 = vmul.f32 %v9907_v60, %v9907_v60 }
 0x879   : > { %v5061_v53 = vadd.f32 %v5060_v37, %v5030_v13  ;;  %v4993_v25 = vadd.f32 %v4992_v46, %v9909_v51  ;;  %v5031_v49 = vmul.f32 %v9909_v51, %v9909_v51 }
 0x87b   : > { %v4994_v48 = vadd.f32 %v9899_v55, %v4993_v25  ;;  %v5062_v32 = vadd.f32 %v5061_v53, %v5031_v49 }
 0x87d   : > { %v5063_v9 = vadd.f32 %v5062_v32, %v5032_v52  ;;  %v9919_v12 = vpop.f32.mrb[84].mxu0  ;;  %v4995_v0 = vadd.f32 %v9907_v60, %v4994_v48 }
 0x87e   : > { %v9922_v11 = vpop.f32.mrb[85].mxu0  ;;  %v5036_v21 = vmul.f32 %v9919_v12, %v9919_v12 }
 0x87f   : > { %v4996_v14 = vadd.f32 %v4995_v0, %v9922_v11  ;;  %v5034_v35 = vmul.f32 %v9922_v11, %v9922_v11  ;;  %v5064_v40 = vadd.f32 %v5063_v9, %v5033_v39  ;;  %v9927_v10 = vpop.f32.mrb[86].mxu0 }
 0x880   : > { %v9929_v36 = vpop.f32.mrb[87].mxu0  ;;  %v5037_v5 = vmul.f32 %v9927_v10, %v9927_v10 }
 0x881   : > { %v5065_v58 = vadd.f32 %v5064_v40, %v5034_v35  ;;  %v4997_v20 = vadd.f32 %v4996_v14, %v9929_v36  ;;  %v5035_v34 = vmul.f32 %v9929_v36, %v9929_v36 }
 0x883   : > { %v4998_v6 = vadd.f32 %v9919_v12, %v4997_v20  ;;  %v5066_v54 = vadd.f32 %v5065_v58, %v5035_v34 }
 0x885   : > { %v5067_v26 = vadd.f32 %v5066_v54, %v5036_v21  ;;  %v9939_v7 = vpop.f32.mrb[88].mxu0  ;;  %v4999_v46 = vadd.f32 %v9927_v10, %v4998_v6 }
 0x886   : > { %11028 = vst [vmem:[#allocation12_spill] sm:$0xff] %v9939_v7  ;;  %v9942_v13 = vpop.f32.mrb[89].mxu0  ;;  %v5040_v9 = vmul.f32 %v9939_v7, %v9939_v7 }
 0x887   : > { %v5000_v37 = vadd.f32 %v4999_v46, %v9942_v13  ;;  %v5038_v53 = vmul.f32 %v9942_v13, %v9942_v13  ;;  %v5068_v25 = vadd.f32 %v5067_v26, %v5037_v5  ;;  %v9947_v49 = vpop.f32.mrb[90].mxu0 }
 0x888   : > { %11029 = vst [vmem:[#allocation13_spill] sm:$0xff] %v9947_v49  ;;  %v9949_v52 = vpop.f32.mrb[91].mxu0  ;;  %v5041_v35 = vmul.f32 %v9947_v49, %v9947_v49 }
 0x889   : > { %11030 = vst [vmem:[#allocation8_spill] sm:$0xff] %v9949_v52  ;;  %v5069_v48 = vadd.f32 %v5068_v25, %v5038_v53  ;;  %v5001_v32 = vadd.f32 %v5000_v37, %v9949_v52  ;;  %v5039_v39 = vmul.f32 %v9949_v52, %v9949_v52 }
 0x88b   : > { %v5002_v0 = vadd.f32 %v9939_v7, %v5001_v32  ;;  %v5070_v14 = vadd.f32 %v5069_v48, %v5039_v39 }
 0x88d   : > { %v5071_v40 = vadd.f32 %v5070_v14, %v5040_v9  ;;  %v9959_v58 = vpop.f32.mrb[92].mxu0  ;;  %v5003_v20 = vadd.f32 %v9947_v49, %v5002_v0 }
 0x88e   : > { %11031 = vst [vmem:[#allocation7_spill] sm:$0xff] %v9959_v58  ;;  %v9962_v34 = vpop.f32.mrb[93].mxu0  ;;  %v5044_v25 = vmul.f32 %v9959_v58, %v9959_v58 }
 0x88f   : > { %11032 = vst [vmem:[#allocation9_spill] sm:$0xff] %v9962_v34  ;;  %v5004_v21 = vadd.f32 %v5003_v20, %v9962_v34  ;;  %v5042_v6 = vmul.f32 %v9962_v34, %v9962_v34  ;;  %v5072_v54 = vadd.f32 %v5071_v40, %v5041_v35  ;;  %v9967_v5 = vpop.f32.mrb[94].mxu0 }
 0x890   : > { %11033 = vst [vmem:[#allocation10_spill] sm:$0xff] %v9967_v5  ;;  %v9969_v26 = vpop.f32.mrb[95].mxu0  ;;  %v5045_v39 = vmul.f32 %v9967_v5, %v9967_v5 }
 0x891   : > { %11034 = vst [vmem:[#allocation11_spill] sm:$0xff] %v9969_v26  ;;  %v5073_v46 = vadd.f32 %v5072_v54, %v5042_v6  ;;  %v5005_v37 = vadd.f32 %v5004_v21, %v9969_v26  ;;  %v5043_v53 = vmul.f32 %v9969_v26, %v9969_v26 }
 0x893   : > { %v5006_v48 = vadd.f32 %v9959_v58, %v5005_v37  ;;  %v5074_v32 = vadd.f32 %v5073_v46, %v5043_v53 }
 0x895   : > { %v5075_v9 = vadd.f32 %v5074_v32, %v5044_v25  ;;  %v9979_v0 = vpop.f32.mrb[96].mxu0  ;;  %v5007_v14 = vadd.f32 %v9967_v5, %v5006_v48 }
 0x896   : > { %11035 = vst [vmem:[#allocation14_spill] sm:$0xff] %v9979_v0  ;;  %v9982_v35 = vpop.f32.mrb[97].mxu0  ;;  %v5048_v25 = vmul.f32 %v9979_v0, %v9979_v0 }
 0x897   : > { %11036 = vst [vmem:[#allocation15_spill] sm:$0xff] %v9982_v35  ;;  %v5008_v40 = vadd.f32 %v5007_v14, %v9982_v35  ;;  %v5046_v20 = vmul.f32 %v9982_v35, %v9982_v35  ;;  %v5076_v21 = vadd.f32 %v5075_v9, %v5045_v39  ;;  %v9987_v6 = vpop.f32.mrb[98].mxu0 }
 0x898   : > { %11037 = vst [vmem:[#allocation16_spill] sm:$0xff] %v9987_v6  ;;  %v9989_v54 = vpop.f32.mrb[99].mxu0  ;;  %v5049_v14 = vmul.f32 %v9987_v6, %v9987_v6 }
 0x899   : > { %11038 = vst [vmem:[#allocation17_spill] sm:$0xff] %v9989_v54  ;;  %v5077_v46 = vadd.f32 %v5076_v21, %v5046_v20  ;;  %v5009_v37 = vadd.f32 %v5008_v40, %v9989_v54  ;;  %v5047_v53 = vmul.f32 %v9989_v54, %v9989_v54 }
 0x89b   : > { %v5010_v48 = vadd.f32 %v9979_v0, %v5009_v37  ;;  %v5078_v32 = vadd.f32 %v5077_v46, %v5047_v53 }
 0x89d   : > { %v5079_v39 = vadd.f32 %v5078_v32, %v5048_v25  ;;  %v9999_v9 = vpop.f32.mrb[100].mxu0  ;;  %v5011_v35 = vadd.f32 %v9987_v6, %v5010_v48 }
 0x89e   : > { %v10002_v20 = vpop.f32.mrb[101].mxu0  ;;  %v5052_v48 = vmul.f32 %v9999_v9, %v9999_v9 }
 0x89f   : > { %11039 = vst [vmem:[#allocation18_spill] sm:$0xff] %v10002_v20  ;;  %v5012_v40 = vadd.f32 %v5011_v35, %v10002_v20  ;;  %v5050_v21 = vmul.f32 %v10002_v20, %v10002_v20  ;;  %v5080_v54 = vadd.f32 %v5079_v39, %v5049_v14  ;;  %v10007_v5 = vpop.f32.mrb[102].mxu0 }
 0x8a0   : > { %v10009_v37 = vpop.f32.mrb[103].mxu0  ;;  %v5053_v20 = vmul.f32 %v10007_v5, %v10007_v5 }
 0x8a1   : > { %11040 = vst [vmem:[#allocation19_spill] sm:$0xff] %v10009_v37  ;;  %v5081_v46 = vadd.f32 %v5080_v54, %v5050_v21  ;;  %v5013_v53 = vadd.f32 %v5012_v40, %v10009_v37  ;;  %v5051_v25 = vmul.f32 %v10009_v37, %v10009_v37 }
 0x8a3   : > { %v5014_v32 = vadd.f32 %v9999_v9, %v5013_v53  ;;  %v5082_v35 = vadd.f32 %v5081_v46, %v5051_v25  ;;  %v577_v25 = vmul.u32 8, %v10992_v23  ;;  %v7787_v23 = vld [vmem:[%s10872_s4] sm:$0xff]  }
 0x8a5   : > { %v5015_v14 = vadd.f32 %v10007_v5, %v5014_v32  ;;  %v5083_v39 = vadd.f32 %v5082_v35, %v5052_v48  ;;  %vm579_vm0 = vcmp.ge.s32.totalorder %v10991_v47, %v577_v25  ;;  %v7788_v32 = vld [vmem:[%s10872_s4 + $0x8] sm:$0xff]  }
 0x8a7   : > { %v5016_v6 = vrot.slane %v5015_v14, 4  ;;  %v5084_v0 = vadd.f32 %v5083_v39, %v5053_v20  ;;  %v7789_v39 = vld [vmem:[%s10872_s4 + $0x10] sm:$0xff]  }
 0x8a9   : > { %v5017_v54 = vadd.f32 %v5016_v6, %v5015_v14  ;;  %v5085_v21 = vrot.slane %v5084_v0, 4  ;;  %v578_v6 = vmul.u32 8, %v10993_v3  ;;  %v7799_v14 = vld [vmem:[%s8018_s21] sm:$0xff]  }
 0x8ab   : > { %v5018_v40 = vrot.slane %v5017_v54, 2  ;;  %v5086_v58 = vadd.f32 %v5085_v21, %v5084_v0  ;;  %v581_v0 = vadd.s32 8, %v577_v25  ;;  %v582_v20 = vadd.s32 8, %v578_v6  ;;  %v7800_v21 = vld [vmem:[%s8018_s21 + $0x8] sm:$0xff]  }
 0x8ac   : > { %vm580_vm11 = vcmp.ge.s32.totalorder %v10991_v47, %v578_v6 }
 0x8ad   : > { %v5019_v26 = vadd.f32 %v5018_v40, %v5017_v54  ;;  %v5087_v37 = vrot.slane %v5086_v58, 2  ;;  %vm583_vm2 = vcmp.lt.s32.totalorder %v10991_v47, %v581_v0  ;;  %vm584_vm7 = vcmp.lt.s32.totalorder %v10991_v47, %v582_v20  ;;  %v7790_v54 = vld [vmem:[%s10872_s4 + $0x18] sm:$0xff]   ;;  %v7801_v40 = vld [vmem:[%s8018_s21 + $0x10] sm:$0xff]  }
 0x8ae   : > { %vm10029_vm8 = vmand %vm579_vm0, %vm583_vm2  ;;  %vm11048_vm2 = vcmask 130048   ;;  %vm11049_vm0 = vcmask 523264  }
 0x8af   : > { %v5020_v34 = vrot.slane %v5019_v26, 1  ;;  %v5088_v49 = vadd.f32 %v5087_v37, %v5086_v58 }
 0x8b1   : > { %v5089_v7 = vrot.slane %v5088_v49, 1  ;;  %v5021_v52 = vadd.f32 %v5020_v34, %v5019_v26 }
 0x8b3   : > { %v5090_v53 = vadd.f32 %v5089_v7, %v5088_v49 }
 0x8b5   : > { %v5091_v46 = vsel %vm11041_vm5, %v5021_v52, %v5090_v53  ;;  %vm10036_vm5 = vmand %vm580_vm11, %vm584_vm7  ;;  %vm11047_vm7 = vcmask 1040384   ;;  %v7802_v53 = vld [vmem:[%s8018_s21 + $0x18] sm:$0xff]  }
 0x8b6   : > { %7279 = vmatmul.mubr.f32.vlgmr.msra.gmra.mrb[70].mxu0 %v5091_v46  ;;  %vm11050_vm11 = vmmov %vm11049_vm0 }
 0x8b7   : > { %7285 = vmatprep.mubr.msk.f32.mxu0 %vm11042_vm15, %v10988_v41  ;;  %vm7413_vm15 = vmpackc.low %vm10036_vm5, %vm10029_vm8 }
 0x8b8   : > { %7414 = vmatpush3.bf16.msk.msra.mxu0 %vm7413_vm15, %v10987_v30 }
 0x8b9   : > { %7288 = vmatprep.subr.bf16.mxu0 %v7787_v23 }
 0x989   : > { %v5158_v47 = vpop.f32.mrb[70].mxu0 }
 0x98a   : > { %v5162_v49 = vmul.f32 0.00048828125, %v5158_v47  ;;  %v7280_v52 = vpop.f32.mrb[71].mxu0 }
 0x98c   : > { %v5163_v58 = vmul.f32 %v5162_v49, %v5162_v49 }
 0x98e   : > { %v5165_v34 = vrot.slane %v5163_v58, 7 }
 0x990   : > { %v5167_v26 = vsub.f32 %v5162_v49, %v5165_v34 }
 0x992   : > { %v5168_v37 = vadd.f32 1e-05, %v5167_v26 }
 0x994   : > { %7795 = vrsqrt.f32 %v5168_v37 }
 0x99e   : > { %v7796_v48 = vpop.eup %7795 }
 0x99f   : > { %v5170_v35 = vsel %vm11047_vm7, %v5162_v49, %v7796_v48  ;;  %vm11051_vm7 = vmmov %vm11049_vm0  ;;  %v11087_v48 = vld [vmem:[#allocation15_spill] sm:$0xff] }
 0x9a0   : > { %7286 = vmatmul.mubr.msk.f32.vlgmr.msra.gmra.mrb[104].mxu0 %vm11048_vm2, %v5170_v35  ;;  %vm11052_vm2 = vmpackc.low %vm9668_vm14, %vm9664_vm9  ;;  %vm11056_vm14 = vnez %v11011_v27  ;;  %v7810_v27 = vld [vmem:[%s8018_s21 + $0x58] sm:$0xff]   ;;  %v11088_v35 = vld [vmem:[#allocation17_spill] sm:$0xff] }
 0x9a1   : > { %7289 = vmatpush3.bf16.msra.mxu0 %v7787_v23  ;;  %7296 = vmatprep.mubr.msk.bf16.mxu0 %vm11049_vm0, %v7799_v14  ;;  %vm11053_vm0 = vmpackc.low %vm9695_vm13, %vm9691_vm12  ;;  %vm11057_vm12 = vnez %v11009_v22  ;;  %v7809_v22 = vld [vmem:[%s8018_s21 + $0x50] sm:$0xff]  }
 0x9a2   : > { %7290 = vmatprep.subr.bf16.mxu0 %v7788_v32  ;;  %vm11055_vm9 = vmpackc.low %vm9720_vm10, %vm9716_vm6  ;;  %vm11061_vm6 = vnez %v11015_v8  ;;  %vm11062_vm10 = vnez %v11013_v62  ;;  %v7811_v62 = vld [vmem:[%s8018_s21 + $0x60] sm:$0xff]   ;;  %v7812_v8 = vld [vmem:[%s8018_s21 + $0x68] sm:$0xff]  }
 0x9a3   : > { %vm11058_vm13 = vmpackc.low %vm11056_vm14, %vm11057_vm12 }
 0x9a5   : > { %7291 = vmatpush3.bf16.msra.mxu0 %v7788_v32 }
 0x9a6   : > { %7292 = vmatprep.subr.bf16.mxu0 %v7789_v39 }
 0x9a9   : > { %7293 = vmatpush3.bf16.msra.mxu0 %v7789_v39  ;;  %v11089_v39 = vld [vmem:[#allocation14_spill] sm:$0xff] }
 0x9aa   : > { %7294 = vmatprep.subr.bf16.mxu0 %v7790_v54 }
 0x9ad   : > { %7295 = vmatpush3.bf16.msra.mxu0 %v7790_v54 }
 0x9ae   : > { %7415 = vmatprep.subr.bf16.mxu0 %v10986_v1 }
 0x9b0   : > { %7297 = vmatmul.mubr.msk.bf16.vlgmr.msra.gmra.mrb[108].mxu0 %vm11050_vm11, %v7800_v21  ;;  %vm11054_vm11 = vmmov %vm11051_vm7  ;;  %v11090_v21 = vld [vmem:[#allocation16_spill] sm:$0xff] }
 0x9b1   : > { %7300 = vmatprep.mubr.msk.bf16.mxu0 %vm11051_vm7, %v7801_v40  ;;  %7417 = vmatpush3.bf16.msk.msra.mxu0 %vm11052_vm2, %v10987_v30  ;;  %vm11059_vm2 = vmmov %vm11051_vm7 }
 0x9b2   : > { %7418 = vmatprep.subr.bf16.mxu0 %v10986_v1 }
 0x9b5   : > { %7420 = vmatpush3.bf16.msk.msra.mxu0 %vm11053_vm0, %v10987_v30  ;;  %vm11060_vm0 = vmmov %vm11059_vm2 }
 0x9b6   : > { %7421 = vmatprep.subr.bf16.mxu0 %v10986_v1  ;;  %vm11067_vm12 = vmmov %vm11060_vm0 }
 0x9b8   : > { %7301 = vmatmul.mubr.msk.bf16.gmra.mrb[112].mxu0 %vm11054_vm11, %v7802_v53  ;;  %vm11063_vm11 = vmpackc.low %vm11061_vm6, %vm11062_vm10  ;;  %v11091_v53 = vld [vmem:[#allocation18_spill] sm:$0xff] }
 0x9b9   : > { %7304 = vmatprep.mubr.msk.bf16.mxu0 %vm11051_vm7, %v7803_v16  ;;  %7423 = vmatpush3.bf16.msk.msra.mxu0 %vm11055_vm9, %v10987_v30  ;;  %vm11064_vm7 = vnez %v11019_v19  ;;  %vm11065_vm9 = vnez %v11017_v29  ;;  %vm11072_vm10 = vmmov %vm11067_vm12  ;;  %v7813_v29 = vld [vmem:[%s8018_s21 + $0x70] sm:$0xff]   ;;  %v7814_v19 = vld [vmem:[%s8018_s21 + $0x78] sm:$0xff]   ;;  %s6170_s21 = sshll.u32 %s431_s23, 8 }
 0x9ba   : > { %7424 = vmatprep.subr.bf16.mxu0 %v10986_v1  ;;  %vm11066_vm14 = vmpackc.low %vm11064_vm7, %vm11065_vm9  ;;  %s10766_s17 = scalar_lea.vmem [#allocation3], %s6170_s21  ;;  %s7883_s21 = smov [#allocation3]  }
 0x9bb   : > { %s6104_s30 = sshll.u32 %s10766_s17, 4  ;;  %s7819_s24 = sshll.u32 %s7883_s21, 4  ;;  %s10807_s30 = int_to_ptr.vmem [resolvable:$true] %s6104_s30  ;;  %s7820_s24 = int_to_ptr.vmem [resolvable:$false] %s7819_s24 }
 0x9bc   : > { %s7815_s22 = scalar_lea.vmem %s10807_s30, 4096  ;;  %s7821_s29 = scalar_lea.vmem %s7820_s24, 8192 }
 0x9bd   : > { %7426 = vmatpush3.bf16.msk.msra.mxu0 %vm11058_vm13, %v10987_v30  ;;  %vm11068_vm13 = vmmov %vm11060_vm0  ;;  %p7816_p11 = scmp.ne.s32.totalorder %s10807_s30, %s7815_s22  ;;  %p7822_p0 = scmp.lt.s32.totalorder %s10807_s30, %s7820_s24 }
 0x9be   : > { %7427 = vmatprep.subr.bf16.mxu0 %v10986_v1  ;;  %p7823_p1 = scmp.lt.s32.totalorder %s7821_s29, %s7815_s22 }
 0x9bf   : > { %p7817_p12 = pnand %p7816_p11, %p7994_p5 }
 0x9c0   : > { %7305 = vmatmul.mubr.msk.bf16.gmra.mrb[116].mxu0 %vm11059_vm2, %v7804_v33  ;;  %vm11069_vm2 = vmpackc.low %vm9824_vm3, %vm9818_vm4  ;;  %v11092_v33 = vld [vmem:[#allocation19_spill] sm:$0xff]  ;;  %p7824_p2 = por %p7823_p1, %p7822_p0 }
 0x9c1   : > { %7308 = vmatprep.mubr.msk.bf16.mxu0 %vm11060_vm0, %v7805_v57  ;;  %7429 = vmatpush3.bf16.msk.msra.mxu0 %vm11063_vm11, %v10987_v30  ;;  %vm11070_vm0 = vnez %v11025_v43  ;;  %vm11073_vm11 = vmmov %vm11072_vm10  ;;  %p7818_p13 = pneg %p7817_p12 }
 0x9c2   : > { %7430 = vmatprep.subr.bf16.mxu0 %v10986_v1  ;;  %vm11071_vm6 = vmpackc.low %vm9845_vm1, %vm11070_vm0 }
 0x9c3   : > { %vm11074_vm3 = vmmov %vm11072_vm10  ;;  %p7825_p3 = pnand %p7824_p2, %p7818_p13 }
 0x9c4   : > { %vm11075_vm4 = vmmov %vm11074_vm3 }
 0x9c5   : > { %7432 = vmatpush3.bf16.msk.msra.mxu0 %vm11066_vm14, %v10987_v30  ;;  %vm11076_vm7 = vmmov %vm11074_vm3  ;;  %vm11079_vm14 = vmmov 0  }
 0x9c6   : > { %7433 = vmatprep.subr.bf16.mxu0 %v10986_v1  ;;  %vm11077_vm1 = vmmov %vm11074_vm3 }
 0x9c7   : > { %vm11078_vm9 = vmmov %vm11077_vm1 }
 0x9c8   : > { %7309 = vmatmul.mubr.msk.bf16.gmra.mrb[120].mxu0 %vm11067_vm12, %v7806_v63  ;;  %vm11120_vm12 = vcmask 1040384  }
 0x9c9   : > { %7312 = vmatprep.mubr.msk.bf16.mxu0 %vm11068_vm13, %v7807_v42  ;;  %7435 = vmatpush3.bf16.msk.msra.mxu0 %vm11069_vm2, %v10987_v30  ;;  %vm11121_vm13 = vmmov %vm11120_vm12  ;;  %vm11122_vm2 = vcmask 130048  }
 0x9ca   : > { %7436 = vmatprep.subr.bf16.mxu0 %v10986_v1 }
 0x9cd   : > { %7438 = vmatpush3.bf16.msk.msra.mxu0 %vm11071_vm6, %v10987_v30 }
 0x9ce   : > { %7439 = vmatprep.subr.bf16.mxu0 %v10986_v1 }
 0x9d0   : > { %7313 = vmatmul.mubr.msk.bf16.gmra.mrb[124].mxu0 %vm11072_vm10, %v7808_v31 }
 0x9d1   : > { %7316 = vmatprep.mubr.msk.bf16.mxu0 %vm11073_vm11, %v7809_v22 }
 0x9d8   : > { %7317 = vmatmul.mubr.msk.bf16.gmra.mrb[128].mxu0 %vm11074_vm3, %v7810_v27 }
 0x9d9   : > { %7320 = vmatprep.mubr.msk.bf16.mxu0 %vm11075_vm4, %v7811_v62 }
 0x9e0   : > { %7321 = vmatmul.mubr.msk.bf16.gmra.mrb[132].mxu0 %vm11076_vm7, %v7812_v8 }
 0x9e1   : > { %7324 = vmatprep.mubr.msk.bf16.mxu0 %vm11077_vm1, %v7813_v29 }
 0x9e8   : > { %7325 = vmatmul.mubr.msk.bf16.gmra.mrb[136].mxu0 %vm11078_vm9, %v7814_v19 }
 0x9e9   : > { %7360 = vmatprep.mubr.msk.f32.mxu0 %vm11079_vm14, %v10988_v41 }
 0xa73   : > { %v5240_v1 = vpop.f32.mrb[104].mxu0 }
 0xa74   : > { %v10153_v45 = vrot.slane %v5240_v1, %v10989_v17  ;;  %v7287_v24 = vpop.f32.mrb[105].mxu0  ;;  %v10156_v43 = vrot.slane %v5240_v1, %v10990_v38 }
 0xa76   : > { %v5248_v4 = vsub.f32 %v9862_v50, %v10153_v45  ;;  %v5249_v46 = vsub.f32 %v9866_v44, %v10153_v45  ;;  %v5250_v25 = vsub.f32 %v9860_v15, %v10153_v45  ;;  %v5251_v6 = vsub.f32 %v9864_v61, %v10153_v45 }
 0xa77   : > { %v5252_v0 = vsub.f32 %v9882_v56, %v10153_v45  ;;  %v5253_v20 = vsub.f32 %v9889_v59, %v10153_v45  ;;  %v5254_v23 = vsub.f32 %v9879_v18, %v10153_v45  ;;  %v5255_v50 = vsub.f32 %v9887_v2, %v10153_v45 }
 0xa78   : > { %v5256_v44 = vsub.f32 %v9902_v28, %v10153_v45  ;;  %v5257_v15 = vsub.f32 %v9909_v51, %v10153_v45  ;;  %v5258_v61 = vsub.f32 %v9899_v55, %v10153_v45  ;;  %v5259_v56 = vsub.f32 %v9907_v60, %v10153_v45  ;;  %v11080_v55 = vld [vmem:[#allocation8_spill] sm:$0xff] }
 0xa79   : > { %v5260_v59 = vsub.f32 %v9922_v11, %v10153_v45  ;;  %v5261_v18 = vsub.f32 %v9929_v36, %v10153_v45  ;;  %v5262_v2 = vsub.f32 %v9919_v12, %v10153_v45  ;;  %v5263_v28 = vsub.f32 %v9927_v10, %v10153_v45  ;;  %v11081_v60 = vld [vmem:[#allocation12_spill] sm:$0xff]  ;;  %v11082_v11 = vld [vmem:[#allocation13_spill] sm:$0xff]  ;;  %v11084_v12 = vld [vmem:[#allocation11_spill] sm:$0xff] }
 0xa7a   : > { %v5264_v51 = vsub.f32 %v9942_v13, %v10153_v45  ;;  %v5265_v47 = vsub.f32 %v11080_v55, %v10153_v45  ;;  %v5266_v49 = vsub.f32 %v11081_v60, %v10153_v45  ;;  %v5267_v52 = vsub.f32 %v11082_v11, %v10153_v45  ;;  %v11083_v36 = vld [vmem:[#allocation9_spill] sm:$0xff]  ;;  %v11085_v10 = vld [vmem:[#allocation7_spill] sm:$0xff]  ;;  %v11086_v13 = vld [vmem:[#allocation10_spill] sm:$0xff] }
 0xa7b   : > { %v5268_v58 = vsub.f32 %v11083_v36, %v10153_v45  ;;  %v5269_v34 = vsub.f32 %v11084_v12, %v10153_v45  ;;  %v5270_v26 = vsub.f32 %v11085_v10, %v10153_v45  ;;  %v5271_v37 = vsub.f32 %v11086_v13, %v10153_v45 }
 0xa7c   : > { %v5272_v32 = vsub.f32 %v11087_v48, %v10153_v45  ;;  %v5273_v14 = vsub.f32 %v11088_v35, %v10153_v45  ;;  %v5274_v54 = vsub.f32 %v11089_v39, %v10153_v45  ;;  %v5275_v40 = vsub.f32 %v11090_v21, %v10153_v45 }
 0xa7d   : > { %v5276_v16 = vsub.f32 %v11091_v53, %v10153_v45  ;;  %v5277_v57 = vsub.f32 %v11092_v33, %v10153_v45  ;;  %v5278_v63 = vsub.f32 %v9999_v9, %v10153_v45  ;;  %v5279_v42 = vsub.f32 %v10007_v5, %v10153_v45 }
 0xa7e   : > { %v10223_v31 = vmul.f32 %v10156_v43, %v5248_v4  ;;  %v10226_v22 = vmul.f32 %v10156_v43, %v5249_v46  ;;  %v10229_v27 = vmul.f32 %v10156_v43, %v5250_v25  ;;  %v10232_v62 = vmul.f32 %v10156_v43, %v5251_v6 }
 0xa7f   : > { %v10235_v8 = vmul.f32 %v10156_v43, %v5252_v0  ;;  %v10238_v9 = vmul.f32 %v10156_v43, %v5253_v20  ;;  %v10241_v5 = vmul.f32 %v10156_v43, %v5254_v23  ;;  %v10244_v29 = vmul.f32 %v10156_v43, %v5255_v50 }
 0xa80   : > { %v10247_v19 = vmul.f32 %v10156_v43, %v5256_v44  ;;  %v10250_v1 = vmul.f32 %v10156_v43, %v5257_v15  ;;  %v10253_v45 = vmul.f32 %v10156_v43, %v5258_v61  ;;  %v10256_v24 = vmul.f32 %v10156_v43, %v5259_v56 }
 0xa81   : > { %v10259_v4 = vmul.f32 %v10156_v43, %v5260_v59  ;;  %v10262_v46 = vmul.f32 %v10156_v43, %v5261_v18  ;;  %v10265_v25 = vmul.f32 %v10156_v43, %v5262_v2  ;;  %v10268_v6 = vmul.f32 %v10156_v43, %v5263_v28 }
 0xa82   : > { %v10271_v0 = vmul.f32 %v10156_v43, %v5264_v51  ;;  %v10274_v20 = vmul.f32 %v10156_v43, %v5265_v47  ;;  %v10277_v23 = vmul.f32 %v10156_v43, %v5266_v49  ;;  %v10280_v50 = vmul.f32 %v10156_v43, %v5267_v52 }
 0xa83   : > { %v10283_v44 = vmul.f32 %v10156_v43, %v5268_v58  ;;  %v10286_v15 = vmul.f32 %v10156_v43, %v5269_v34  ;;  %v10289_v61 = vmul.f32 %v10156_v43, %v5270_v26  ;;  %v10292_v56 = vmul.f32 %v10156_v43, %v5271_v37  ;;  %v10294_v59 = vpop.f32.mrb[108].mxu0 }
 0xa84   : > { %11093 = vst [vmem:[#allocation8_spill] sm:$0xff] %v10294_v59  ;;  %v10297_v18 = vmul.f32 %v10156_v43, %v5272_v32  ;;  %v10300_v2 = vmul.f32 %v10156_v43, %v5273_v14  ;;  %v10303_v28 = vmul.f32 %v10156_v43, %v5274_v54  ;;  %v10306_v51 = vmul.f32 %v10156_v43, %v5275_v40  ;;  %v10308_v55 = vpop.f32.mrb[109].mxu0 }
 0xa85   : > { %v10311_v47 = vmul.f32 %v10156_v43, %v5276_v16  ;;  %v10314_v60 = vmul.f32 %v10156_v43, %v5277_v57  ;;  %v10317_v49 = vmul.f32 %v10156_v43, %v5278_v63  ;;  %v10320_v11 = vmul.f32 %v10156_v43, %v5279_v42  ;;  %v10322_v52 = vpop.f32.mrb[110].mxu0 }
 0xa86   : > { %11094 = vst [vmem:[#allocation12_spill] sm:$0xff] %v10322_v52  ;;  %v10324_v36 = vpop.f32.mrb[111].mxu0  ;;  %v5624_v32 = vmul.f32 %v10308_v55, %v10308_v55  ;;  %v5626_v39 = vmul.f32 %v10294_v59, %v10294_v59  ;;  %v5627_v40 = vmul.f32 %v10322_v52, %v10322_v52 }
 0xa87   : > { %11095 = vst [vmem:[#allocation13_spill] sm:$0xff] %v10324_v36  ;;  %v5587_v43 = vadd.f32 %v10324_v36, %v10308_v55  ;;  %v5625_v35 = vmul.f32 %v10324_v36, %v10324_v36 }
 0xa89   : > { %v5588_v14 = vadd.f32 %v10294_v59, %v5587_v43  ;;  %v5656_v54 = vadd.f32 %v5625_v35, %v5624_v32 }
 0xa8b   : > { %v10326_v58 = vpop.f32.mrb[112].mxu0  ;;  %v5589_v21 = vadd.f32 %v10322_v52, %v5588_v14  ;;  %v5657_v53 = vadd.f32 %v5656_v54, %v5626_v39 }
 0xa8c   : > { %11096 = vst [vmem:[#allocation9_spill] sm:$0xff] %v10326_v58  ;;  %v10328_v12 = vpop.f32.mrb[113].mxu0  ;;  %v5630_v52 = vmul.f32 %v10326_v58, %v10326_v58 }
 0xa8d   : > { %11097 = vst [vmem:[#allocation11_spill] sm:$0xff] %v10328_v12  ;;  %v10330_v34 = vpop.f32.mrb[114].mxu0  ;;  %v5628_v16 = vmul.f32 %v10328_v12, %v10328_v12  ;;  %v5590_v57 = vadd.f32 %v5589_v21, %v10328_v12  ;;  %v5658_v42 = vadd.f32 %v5657_v53, %v5627_v40 }
 0xa8e   : > { %11098 = vst [vmem:[#allocation7_spill] sm:$0xff] %v10330_v34  ;;  %v10332_v10 = vpop.f32.mrb[115].mxu0  ;;  %v5631_v40 = vmul.f32 %v10330_v34, %v10330_v34 }
 0xa8f   : > { %11099 = vst [vmem:[#allocation10_spill] sm:$0xff] %v10332_v10  ;;  %v5629_v43 = vmul.f32 %v10332_v10, %v10332_v10  ;;  %v5591_v35 = vadd.f32 %v5590_v57, %v10332_v10  ;;  %v5659_v39 = vadd.f32 %v5658_v42, %v5628_v16 }
 0xa91   : > { %v5592_v54 = vadd.f32 %v10326_v58, %v5591_v35  ;;  %v5660_v59 = vadd.f32 %v5659_v39, %v5629_v43 }
 0xa93   : > { %v10334_v26 = vpop.f32.mrb[116].mxu0  ;;  %v5593_v21 = vadd.f32 %v10330_v34, %v5592_v54  ;;  %v5661_v53 = vadd.f32 %v5660_v59, %v5630_v52 }
 0xa94   : > { %11100 = vst [vmem:[#allocation15_spill] sm:$0xff] %v10334_v26  ;;  %v10336_v13 = vpop.f32.mrb[117].mxu0  ;;  %v5634_v34 = vmul.f32 %v10334_v26, %v10334_v26 }
 0xa95   : > { %11101 = vst [vmem:[#allocation17_spill] sm:$0xff] %v10336_v13  ;;  %v10338_v37 = vpop.f32.mrb[118].mxu0  ;;  %v5632_v12 = vmul.f32 %v10336_v13, %v10336_v13  ;;  %v5594_v57 = vadd.f32 %v5593_v21, %v10336_v13  ;;  %v5662_v42 = vadd.f32 %v5661_v53, %v5631_v40 }
 0xa96   : > { %11102 = vst [vmem:[#allocation14_spill] sm:$0xff] %v10338_v37  ;;  %v10342_v48 = vpop.f32.mrb[119].mxu0  ;;  %v5635_v40 = vmul.f32 %v10338_v37, %v10338_v37 }
 0xa97   : > { %11103 = vst [vmem:[#allocation16_spill] sm:$0xff] %v10342_v48  ;;  %v5633_v35 = vmul.f32 %v10342_v48, %v10342_v48  ;;  %v5595_v39 = vadd.f32 %v5594_v57, %v10342_v48  ;;  %v5663_v59 = vadd.f32 %v5662_v42, %v5632_v12 }
 0xa99   : > { %v5596_v52 = vadd.f32 %v10334_v26, %v5595_v39  ;;  %v5664_v58 = vadd.f32 %v5663_v59, %v5633_v35 }
 0xa9b   : > { %v10356_v33 = vpop.f32.mrb[120].mxu0  ;;  %v5597_v21 = vadd.f32 %v10338_v37, %v5596_v52  ;;  %v5665_v53 = vadd.f32 %v5664_v58, %v5634_v34 }
 0xa9c   : > { %11104 = vst [vmem:[#allocation18_spill] sm:$0xff] %v10356_v33  ;;  %v10359_v63 = vpop.f32.mrb[121].mxu0  ;;  %v5638_v37 = vmul.f32 %v10356_v33, %v10356_v33 }
 0xa9d   : > { %11105 = vst [vmem:[#allocation19_spill] sm:$0xff] %v10359_v63  ;;  %v10363_v32 = vpop.f32.mrb[122].mxu0  ;;  %v5636_v13 = vmul.f32 %v10359_v63, %v10359_v63  ;;  %v5598_v57 = vadd.f32 %v5597_v21, %v10359_v63  ;;  %v5666_v42 = vadd.f32 %v5665_v53, %v5635_v40 }
 0xa9e   : > { %11106 = vst [vmem:[#allocation20_spill] sm:$0xff] %v10363_v32  ;;  %v10366_v14 = vpop.f32.mrb[123].mxu0  ;;  %v5639_v40 = vmul.f32 %v10363_v32, %v10363_v32 }
 0xa9f   : > { %11107 = vst [vmem:[#allocation21_spill] sm:$0xff] %v10366_v14  ;;  %v5637_v39 = vmul.f32 %v10366_v14, %v10366_v14  ;;  %v5599_v59 = vadd.f32 %v5598_v57, %v10366_v14  ;;  %v5667_v58 = vadd.f32 %v5666_v42, %v5636_v13 }
 0xaa1   : > { %v5600_v34 = vadd.f32 %v10356_v33, %v5599_v59  ;;  %v5668_v26 = vadd.f32 %v5667_v58, %v5637_v39 }
 0xaa3   : > { %v10376_v36 = vpop.f32.mrb[124].mxu0  ;;  %v5601_v21 = vadd.f32 %v10363_v32, %v5600_v34  ;;  %v5669_v53 = vadd.f32 %v5668_v26, %v5638_v37 }
 0xaa4   : > { %11108 = vst [vmem:[#allocation22_spill] sm:$0xff] %v10376_v36  ;;  %v10379_v16 = vpop.f32.mrb[125].mxu0  ;;  %v5642_v32 = vmul.f32 %v10376_v36, %v10376_v36 }
 0xaa5   : > { %11109 = vst [vmem:[#allocation23_spill] sm:$0xff] %v10379_v16  ;;  %v10383_v43 = vpop.f32.mrb[126].mxu0  ;;  %v5640_v63 = vmul.f32 %v10379_v16, %v10379_v16  ;;  %v5602_v57 = vadd.f32 %v5601_v21, %v10379_v16  ;;  %v5670_v42 = vadd.f32 %v5669_v53, %v5639_v40 }
 0xaa6   : > { %11110 = vst [vmem:[#allocation24_spill] sm:$0xff] %v10383_v43  ;;  %v10386_v54 = vpop.f32.mrb[127].mxu0  ;;  %v5643_v40 = vmul.f32 %v10383_v43, %v10383_v43 }
 0xaa7   : > { %v5641_v59 = vmul.f32 %v10386_v54, %v10386_v54  ;;  %v5603_v58 = vadd.f32 %v5602_v57, %v10386_v54  ;;  %v5671_v26 = vadd.f32 %v5670_v42, %v5640_v63 }
 0xaa9   : > { %v5604_v37 = vadd.f32 %v10376_v36, %v5603_v58  ;;  %v5672_v33 = vadd.f32 %v5671_v26, %v5641_v59 }
 0xaab   : > { %v10396_v10 = vpop.f32.mrb[128].mxu0  ;;  %v5605_v21 = vadd.f32 %v10383_v43, %v5604_v37  ;;  %v5673_v53 = vadd.f32 %v5672_v33, %v5642_v32 }
 0xaac   : > { %v10399_v12 = vpop.f32.mrb[129].mxu0  ;;  %v5646_v43 = vmul.f32 %v10396_v10, %v10396_v10 }
 0xaad   : > { %11111 = vst [vmem:[#allocation25_spill] sm:$0xff] %v10399_v12  ;;  %v10403_v35 = vpop.f32.mrb[130].mxu0  ;;  %v5644_v16 = vmul.f32 %v10399_v12, %v10399_v12  ;;  %v5606_v57 = vadd.f32 %v5605_v21, %v10399_v12  ;;  %v5674_v42 = vadd.f32 %v5673_v53, %v5643_v40 }
 0xaae   : > { %11112 = vst [vmem:[#allocation26_spill] sm:$0xff] %v10403_v35  ;;  %v10406_v52 = vpop.f32.mrb[131].mxu0  ;;  %v5647_v40 = vmul.f32 %v10403_v35, %v10403_v35 }
 0xaaf   : > { %11113 = vst [vmem:[#allocation27_spill] sm:$0xff] %v10406_v52  ;;  %v5645_v58 = vmul.f32 %v10406_v52, %v10406_v52  ;;  %v5607_v26 = vadd.f32 %v5606_v57, %v10406_v52  ;;  %v5675_v33 = vadd.f32 %v5674_v42, %v5644_v16 }
 0xab1   : > { %v5608_v32 = vadd.f32 %v10396_v10, %v5607_v26  ;;  %v5676_v36 = vadd.f32 %v5675_v33, %v5645_v58 }
 0xab3   : > { %v10416_v48 = vpop.f32.mrb[132].mxu0  ;;  %v5609_v21 = vadd.f32 %v10403_v35, %v5608_v32  ;;  %v5677_v53 = vadd.f32 %v5676_v36, %v5646_v43 }
 0xab4   : > { %11114 = vst [vmem:[#allocation28_spill] sm:$0xff] %v10416_v48  ;;  %v10419_v13 = vpop.f32.mrb[133].mxu0  ;;  %v5650_v33 = vmul.f32 %v10416_v48, %v10416_v48 }
 0xab5   : > { %v10423_v39 = vpop.f32.mrb[134].mxu0  ;;  %v5648_v12 = vmul.f32 %v10419_v13, %v10419_v13  ;;  %v5610_v57 = vadd.f32 %v5609_v21, %v10419_v13  ;;  %v5678_v52 = vadd.f32 %v5677_v53, %v5647_v40 }
 0xab6   : > { %11115 = vst [vmem:[#allocation29_spill] sm:$0xff] %v10423_v39  ;;  %v10426_v34 = vpop.f32.mrb[135].mxu0  ;;  %v5651_v43 = vmul.f32 %v10423_v39, %v10423_v39 }
 0xab7   : > { %11116 = vst [vmem:[#allocation30_spill] sm:$0xff] %v10426_v34  ;;  %v5649_v16 = vmul.f32 %v10426_v34, %v10426_v34  ;;  %v5611_v42 = vadd.f32 %v5610_v57, %v10426_v34  ;;  %v5679_v26 = vadd.f32 %v5678_v52, %v5648_v12 }
 0xab9   : > { %v5612_v58 = vadd.f32 %v10416_v48, %v5611_v42  ;;  %v5680_v32 = vadd.f32 %v5679_v26, %v5649_v16 }
 0xabb   : > { %v10436_v14 = vpop.f32.mrb[136].mxu0  ;;  %v5613_v36 = vadd.f32 %v10423_v39, %v5612_v58  ;;  %v5681_v35 = vadd.f32 %v5680_v32, %v5650_v33 }
 0xabc   : > { %11117 = vst [vmem:[#allocation31_spill] sm:$0xff] %v10436_v14  ;;  %v10439_v63 = vpop.f32.mrb[137].mxu0  ;;  %v5654_v42 = vmul.f32 %v10436_v14, %v10436_v14 }
 0xabd   : > { %11118 = vst [vmem:[#allocation32_spill] sm:$0xff] %v10439_v63  ;;  %v10443_v59 = vpop.f32.mrb[138].mxu0  ;;  %v5652_v21 = vmul.f32 %v10439_v63, %v10439_v63  ;;  %v5614_v40 = vadd.f32 %v5613_v36, %v10439_v63  ;;  %v5682_v53 = vadd.f32 %v5681_v35, %v5651_v43 }
 0xabe   : > { %v10446_v37 = vpop.f32.mrb[139].mxu0  ;;  %v5655_v33 = vmul.f32 %v10443_v59, %v10443_v59 }
 0xabf   : > { %11119 = vst [vmem:[#allocation33_spill] sm:$0xff] %v10446_v37  ;;  %v5653_v12 = vmul.f32 %v10446_v37, %v10446_v37  ;;  %v5615_v52 = vadd.f32 %v5614_v40, %v10446_v37  ;;  %v5683_v57 = vadd.f32 %v5682_v53, %v5652_v21 }
 0xac1   : > { %v5616_v16 = vadd.f32 %v10436_v14, %v5615_v52  ;;  %v5684_v26 = vadd.f32 %v5683_v57, %v5653_v12 }
 0xac3   : > { %v5617_v58 = vadd.f32 %v10443_v59, %v5616_v16  ;;  %v5685_v32 = vadd.f32 %v5684_v26, %v5654_v42 }
 0xac5   : > { %v5618_v36 = vrot.slane %v5617_v58, 4  ;;  %v5686_v35 = vadd.f32 %v5685_v32, %v5655_v33 }
 0xac7   : > { %v5619_v43 = vadd.f32 %v5618_v36, %v5617_v58  ;;  %v5687_v63 = vrot.slane %v5686_v35, 4 }
 0xac9   : > { %v5620_v39 = vrot.slane %v5619_v43, 2  ;;  %v5688_v48 = vadd.f32 %v5687_v63, %v5686_v35 }
 0xacb   : > { %v5621_v40 = vadd.f32 %v5620_v39, %v5619_v43  ;;  %v5689_v21 = vrot.slane %v5688_v48, 2 }
 0xacd   : > { %v5622_v53 = vrot.slane %v5621_v40, 1  ;;  %v5690_v52 = vadd.f32 %v5689_v21, %v5688_v48 }
 0xacf   : > { %v5691_v37 = vrot.slane %v5690_v52, 1  ;;  %v5623_v34 = vadd.f32 %v5622_v53, %v5621_v40 }
 0xad1   : > { %v5692_v14 = vadd.f32 %v5691_v37, %v5690_v52 }
 0xad3   : > { %v5693_v12 = vsel %vm11120_vm12, %v5623_v34, %v5692_v14 }
 0xad4   : > { %7361 = vmatmul.mubr.f32.vlgmr.msra.gmra.mrb[106].mxu0 %v5693_v12 }
 0xad5   : > { %7441 = vmatpush3.bf16.msk.msra.mxu0 %vm7413_vm15, %v10987_v30  ;;  %7367 = vmatprep.mubr.msk.f32.mxu0 %vm11079_vm14, %v10988_v41  ;;  %v6484_v30 = vld [vmem:[%s10877_s9] ss:$0 sm:$0xff] }
 0xad6   : > { %v5322_v7 = vmul.f32 %v6484_v30, %v10223_v31  ;;  %v5323_v41 = vmul.f32 %v6484_v30, %v10226_v22  ;;  %v5324_v3 = vmul.f32 %v6484_v30, %v10229_v27  ;;  %v5325_v26 = vmul.f32 %v6484_v30, %v10232_v62 }
 0xad7   : > { %v5326_v58 = vmul.f32 %v6484_v30, %v10235_v8  ;;  %v5327_v33 = vmul.f32 %v6484_v30, %v10238_v9  ;;  %v5328_v32 = vmul.f32 %v6484_v30, %v10241_v5  ;;  %v5329_v36 = vmul.f32 %v6484_v30, %v10244_v29 }
 0xad8   : > { %v5330_v35 = vmul.f32 %v6484_v30, %v10247_v19  ;;  %v5331_v43 = vmul.f32 %v6484_v30, %v10250_v1  ;;  %v5332_v31 = vmul.f32 %v6484_v30, %v10253_v45  ;;  %v5333_v22 = vmul.f32 %v6484_v30, %v10256_v24  ;;  %v6485_v19 = vld [vmem:[%s10878_s10] ss:$0 sm:$0xff] }
 0xad9   : > { %v5334_v27 = vmul.f32 %v6484_v30, %v10259_v4  ;;  %v5335_v62 = vmul.f32 %v6484_v30, %v10262_v46  ;;  %v5336_v8 = vmul.f32 %v6484_v30, %v10265_v25  ;;  %v5337_v9 = vmul.f32 %v6484_v30, %v10268_v6 }
 0xada   : > { %v5338_v5 = vmul.f32 %v6484_v30, %v10271_v0  ;;  %v5339_v29 = vmul.f32 %v6484_v30, %v10274_v20  ;;  %v5340_v1 = vmul.f32 %v6484_v30, %v10277_v23  ;;  %v5341_v45 = vmul.f32 %v6484_v30, %v10280_v50 }
 0xadb   : > { %v5342_v24 = vmul.f32 %v6484_v30, %v10283_v44  ;;  %v5343_v4 = vmul.f32 %v6484_v30, %v10286_v15  ;;  %v5344_v46 = vmul.f32 %v6484_v30, %v10289_v61  ;;  %v5345_v25 = vmul.f32 %v6484_v30, %v10292_v56 }
 0xadc   : > { %v5346_v6 = vmul.f32 %v6484_v30, %v10297_v18  ;;  %v5347_v0 = vmul.f32 %v6484_v30, %v10300_v2  ;;  %v5348_v20 = vmul.f32 %v6484_v30, %v10303_v28  ;;  %v5349_v40 = vmul.f32 %v6484_v30, %v10306_v51 }
 0xadd   : > { %v5350_v23 = vmul.f32 %v6484_v30, %v10311_v47  ;;  %v5351_v50 = vmul.f32 %v6484_v30, %v10314_v60  ;;  %v5352_v44 = vmul.f32 %v6484_v30, %v10317_v49  ;;  %v5353_v15 = vmul.f32 %v6484_v30, %v10320_v11 }
 0xade   : > { %v10527_v21 = vadd.f32 %v6485_v19, %v5322_v7  ;;  %v10529_v61 = vadd.f32 %v6485_v19, %v5323_v41  ;;  %v10531_v56 = vadd.f32 %v6485_v19, %v5324_v3  ;;  %v10533_v18 = vadd.f32 %v6485_v19, %v5325_v26 }
 0xadf   : > { %v10535_v2 = vadd.f32 %v6485_v19, %v5326_v58  ;;  %v10537_v28 = vadd.f32 %v6485_v19, %v5327_v33  ;;  %v10539_v51 = vadd.f32 %v6485_v19, %v5328_v32  ;;  %v10541_v47 = vadd.f32 %v6485_v19, %v5329_v36 }
 0xae0   : > { %v10543_v60 = vadd.f32 %v6485_v19, %v5330_v35  ;;  %v10545_v49 = vadd.f32 %v6485_v19, %v5331_v43  ;;  %v10547_v11 = vadd.f32 %v6485_v19, %v5332_v31  ;;  %v10549_v53 = vadd.f32 %v6485_v19, %v5333_v22 }
 0xae1   : > { %v10551_v52 = vadd.f32 %v6485_v19, %v5334_v27  ;;  %v10553_v12 = vadd.f32 %v6485_v19, %v5335_v62  ;;  %v10573_v30 = vadd.f32 %v6485_v19, %v5345_v25  ;;  %v10575_v7 = vadd.f32 %v6485_v19, %v5346_v6  ;;  %v11145_v62 = vld [vmem:[#allocation13_spill] sm:$0xff] }
 0xae2   : > { %11123 = vst [vmem:[#allocation34_spill] sm:$0xff] %v10547_v11  ;;  %11124 = vst [vmem:[#allocation35_spill] sm:$0xff] %v10549_v53  ;;  %v10577_v41 = vadd.f32 %v6485_v19, %v5347_v0  ;;  %v10579_v26 = vadd.f32 %v6485_v19, %v5348_v20  ;;  %v10581_v58 = vadd.f32 %v6485_v19, %v5349_v40  ;;  %v11152_v25 = vld [vmem:[#allocation17_spill] sm:$0xff]  ;;  %v11153_v0 = vld [vmem:[#allocation16_spill] sm:$0xff] }
 0xae3   : > { %11125 = vst [vmem:[#allocation36_spill] sm:$0xff] %v10551_v52  ;;  %11126 = vst [vmem:[#allocation37_spill] sm:$0xff] %v10553_v12  ;;  %v10583_v33 = vadd.f32 %v6485_v19, %v5350_v23  ;;  %v10588_v35 = vadd.f32 %v6485_v19, %v5351_v50  ;;  %v10590_v43 = vadd.f32 %v6485_v19, %v5352_v44  ;;  %v11154_v40 = vld [vmem:[#allocation15_spill] sm:$0xff]  ;;  %v11155_v50 = vld [vmem:[#allocation14_spill] sm:$0xff] }
 0xae4   : > { %11136 = vst [vmem:[#allocation47_spill] sm:$0xff] %v10573_v30  ;;  %11137 = vst [vmem:[#allocation48_spill] sm:$0xff] %v10575_v7  ;;  %v10592_v31 = vadd.f32 %v6485_v19, %v5353_v15  ;;  %v11156_v15 = vld [vmem:[#allocation19_spill] sm:$0xff] }
 0xae5   : > { %11138 = vst [vmem:[#allocation49_spill] sm:$0xff] %v10577_v41  ;;  %11139 = vst [vmem:[#allocation50_spill] sm:$0xff] %v10579_v26 }
 0xae6   : > { %11140 = vst [vmem:[#allocation51_spill] sm:$0xff] %v10581_v58  ;;  %11141 = vst [vmem:[#allocation52_spill] sm:$0xff] %v10583_v33 }
 0xae7   : > { %11142 = vst [vmem:[#allocation53_spill] sm:$0xff] %v10588_v35  ;;  %11143 = vst [vmem:[#allocation54_spill] sm:$0xff] %v10590_v43 }
 0xae8   : > { %11144 = vst [vmem:[#allocation55_spill] sm:$0xff] %v10592_v31 }
 0xba7   : > { %v5760_v39 = vpop.f32.mrb[106].mxu0 }
 0xba8   : > { %v5764_v63 = vmul.f32 0.00048828125, %v5760_v39  ;;  %v7362_v57 = vpop.f32.mrb[107].mxu0  ;;  %v10555_v39 = vadd.f32 %v6485_v19, %v5336_v8 }
 0xba9   : > { %v10559_v57 = vadd.f32 %v6485_v19, %v5338_v5  ;;  %v11147_v5 = vld [vmem:[#allocation12_spill] sm:$0xff] }
 0xbaa   : > { %v5765_v48 = vmul.f32 %v5764_v63, %v5764_v63  ;;  %11127 = vst [vmem:[#allocation38_spill] sm:$0xff] %v10555_v39 }
 0xbab   : > { %11129 = vst [vmem:[#allocation40_spill] sm:$0xff] %v10559_v57 }
 0xbac   : > { %v5767_v16 = vrot.slane %v5765_v48, 7  ;;  %v10561_v48 = vadd.f32 %v6485_v19, %v5339_v29 }
 0xbae   : > { %v5769_v42 = vsub.f32 %v5764_v63, %v5767_v16  ;;  %11130 = vst [vmem:[#allocation41_spill] sm:$0xff] %v10561_v48  ;;  %v10563_v16 = vadd.f32 %v6485_v19, %v5340_v1  ;;  %v11148_v1 = vld [vmem:[#allocation11_spill] sm:$0xff] }
 0xbb0   : > { %v5770_v37 = vadd.f32 1e-05, %v5769_v42  ;;  %11131 = vst [vmem:[#allocation42_spill] sm:$0xff] %v10563_v16  ;;  %v10565_v42 = vadd.f32 %v6485_v19, %v5341_v45 }
 0xbb2   : > { %7797 = vrsqrt.f32 %v5770_v37  ;;  %11132 = vst [vmem:[#allocation43_spill] sm:$0xff] %v10565_v42  ;;  %v10567_v37 = vadd.f32 %v6485_v19, %v5342_v24 }
 0xbb4   : > { %11133 = vst [vmem:[#allocation44_spill] sm:$0xff] %v10567_v37 }
 0xbbc   : > { %v7798_v14 = vpop.eup %7797 }
 0xbbd   : > { %v5772_v34 = vsel %vm11121_vm13, %v5764_v63, %v7798_v14  ;;  %v10557_v63 = vadd.f32 %v6485_v19, %v5337_v9  ;;  %v10569_v14 = vadd.f32 %v6485_v19, %v5343_v4  ;;  %v11146_v9 = vld [vmem:[#allocation8_spill] sm:$0xff] }
 0xbbe   : > { %7368 = vmatmul.mubr.msk.f32.vlgmr.msra.gmra.mrb[140].mxu0 %vm11122_vm2, %v5772_v34  ;;  %v10571_v34 = vadd.f32 %v6485_v19, %v5344_v46  ;;  %v11149_v19 = vld [vmem:[#allocation10_spill] sm:$0xff] }
 0xbbf   : > { %11128 = vst [vmem:[#allocation39_spill] sm:$0xff] %v10557_v63  ;;  %11134 = vst [vmem:[#allocation45_spill] sm:$0xff] %v10569_v14 }
 0xbc0   : > { %11135 = vst [vmem:[#allocation46_spill] sm:$0xff] %v10571_v34 }
 0xc91   : > { %v5842_v3 = vpop.f32.mrb[140].mxu0 }
 0xc92   : > { %v10586_v32 = vrot.slane %v5842_v3, %v10989_v17  ;;  %v7369_v36 = vpop.f32.mrb[141].mxu0  ;;  %v10595_v22 = vrot.slane %v5842_v3, %v10990_v38  ;;  %v11150_v38 = vld [vmem:[#allocation9_spill] sm:$0xff] }
 0xc93   : > { %v11157_v36 = vld [vmem:[#allocation21_spill] sm:$0xff] }
 0xc94   : > { %v5850_v27 = vsub.f32 %v10308_v55, %v10586_v32  ;;  %v5851_v8 = vsub.f32 %v11145_v62, %v10586_v32  ;;  %v5852_v17 = vsub.f32 %v11146_v9, %v10586_v32  ;;  %v5853_v29 = vsub.f32 %v11147_v5, %v10586_v32  ;;  %v11151_v55 = vld [vmem:[#allocation7_spill] sm:$0xff]  ;;  %v11158_v9 = vld [vmem:[#allocation18_spill] sm:$0xff] }
 0xc95   : > { %v5854_v45 = vsub.f32 %v11148_v1, %v10586_v32  ;;  %v5855_v24 = vsub.f32 %v11149_v19, %v10586_v32  ;;  %v5856_v4 = vsub.f32 %v11150_v38, %v10586_v32  ;;  %v5857_v46 = vsub.f32 %v11151_v55, %v10586_v32  ;;  %v11159_v1 = vld [vmem:[#allocation20_spill] sm:$0xff]  ;;  %v11160_v38 = vld [vmem:[#allocation23_spill] sm:$0xff] }
 0xc96   : > { %v5858_v6 = vsub.f32 %v11152_v25, %v10586_v32  ;;  %v5859_v20 = vsub.f32 %v11153_v0, %v10586_v32  ;;  %v5860_v23 = vsub.f32 %v11154_v40, %v10586_v32  ;;  %v5861_v44 = vsub.f32 %v11155_v50, %v10586_v32  ;;  %v11161_v0 = vld [vmem:[#allocation22_spill] sm:$0xff]  ;;  %v11162_v50 = vld [vmem:[#allocation24_spill] sm:$0xff] }
 0xc97   : > { %v5862_v3 = vsub.f32 %v11156_v15, %v10586_v32  ;;  %v5863_v62 = vsub.f32 %v11157_v36, %v10586_v32  ;;  %v5864_v5 = vsub.f32 %v11158_v9, %v10586_v32  ;;  %v5865_v19 = vsub.f32 %v11159_v1, %v10586_v32  ;;  %v11163_v36 = vld [vmem:[#allocation25_spill] sm:$0xff]  ;;  %v11164_v9 = vld [vmem:[#allocation27_spill] sm:$0xff] }
 0xc98   : > { %v5866_v55 = vsub.f32 %v11160_v38, %v10586_v32  ;;  %v5867_v25 = vsub.f32 %v10386_v54, %v10586_v32  ;;  %v5868_v40 = vsub.f32 %v11161_v0, %v10586_v32  ;;  %v5869_v15 = vsub.f32 %v11162_v50, %v10586_v32  ;;  %v11165_v38 = vld [vmem:[#allocation26_spill] sm:$0xff]  ;;  %v11167_v50 = vld [vmem:[#allocation28_spill] sm:$0xff] }
 0xc99   : > { %v5870_v31 = vsub.f32 %v11163_v36, %v10586_v32  ;;  %v5871_v43 = vsub.f32 %v11164_v9, %v10586_v32  ;;  %v5872_v1 = vsub.f32 %v10396_v10, %v10586_v32  ;;  %v5873_v35 = vsub.f32 %v11165_v38, %v10586_v32  ;;  %v11166_v0 = vld [vmem:[#allocation30_spill] sm:$0xff]  ;;  %v11168_v36 = vld [vmem:[#allocation29_spill] sm:$0xff]  ;;  %v11169_v9 = vld [vmem:[#allocation32_spill] sm:$0xff] }
 0xc9a   : > { %v5874_v54 = vsub.f32 %v10419_v13, %v10586_v32  ;;  %v5875_v33 = vsub.f32 %v11166_v0, %v10586_v32  ;;  %v5876_v58 = vsub.f32 %v11167_v50, %v10586_v32  ;;  %v5877_v26 = vsub.f32 %v11168_v36, %v10586_v32  ;;  %v11170_v10 = vld [vmem:[#allocation33_spill] sm:$0xff]  ;;  %v11171_v38 = vld [vmem:[#allocation31_spill] sm:$0xff] }
 0xc9b   : > { %v5878_v41 = vsub.f32 %v11169_v9, %v10586_v32  ;;  %v5879_v7 = vsub.f32 %v11170_v10, %v10586_v32  ;;  %v5880_v30 = vsub.f32 %v11171_v38, %v10586_v32  ;;  %v5881_v13 = vsub.f32 %v10443_v59, %v10586_v32 }
 0xc9c   : > { %v5886_v0 = vmul.f32 %v10595_v22, %v5850_v27  ;;  %v5887_v34 = vmul.f32 %v10595_v22, %v5851_v8  ;;  %v5888_v50 = vmul.f32 %v10595_v22, %v5852_v17  ;;  %v5889_v36 = vmul.f32 %v10595_v22, %v5853_v29 }
 0xc9d   : > { %v5890_v14 = vmul.f32 %v10595_v22, %v5854_v45  ;;  %v5891_v9 = vmul.f32 %v10595_v22, %v5855_v24  ;;  %v5892_v10 = vmul.f32 %v10595_v22, %v5856_v4  ;;  %v5893_v37 = vmul.f32 %v10595_v22, %v5857_v46 }
 0xc9e   : > { %v5894_v38 = vmul.f32 %v10595_v22, %v5858_v6  ;;  %v5895_v59 = vmul.f32 %v10595_v22, %v5859_v20  ;;  %v5896_v32 = vmul.f32 %v10595_v22, %v5860_v23  ;;  %v5897_v27 = vmul.f32 %v10595_v22, %v5861_v44  ;;  %v6525_v20 = vld [vmem:[%s10879_s11] ss:$0 sm:$0xff] }
 0xc9f   : > { %v5898_v8 = vmul.f32 %v10595_v22, %v5862_v3  ;;  %v5899_v17 = vmul.f32 %v10595_v22, %v5863_v62  ;;  %v5900_v29 = vmul.f32 %v10595_v22, %v5864_v5  ;;  %v5901_v45 = vmul.f32 %v10595_v22, %v5865_v19 }
 0xca0   : > { %v5902_v24 = vmul.f32 %v10595_v22, %v5866_v55  ;;  %v5903_v4 = vmul.f32 %v10595_v22, %v5867_v25  ;;  %v5904_v46 = vmul.f32 %v10595_v22, %v5868_v40  ;;  %v5905_v6 = vmul.f32 %v10595_v22, %v5869_v15 }
 0xca1   : > { %v5906_v23 = vmul.f32 %v10595_v22, %v5870_v31  ;;  %v5907_v44 = vmul.f32 %v10595_v22, %v5871_v43  ;;  %v5908_v3 = vmul.f32 %v10595_v22, %v5872_v1  ;;  %v5909_v62 = vmul.f32 %v10595_v22, %v5873_v35 }
 0xca2   : > { %v5910_v5 = vmul.f32 %v10595_v22, %v5874_v54  ;;  %v5911_v19 = vmul.f32 %v10595_v22, %v5875_v33  ;;  %v5912_v55 = vmul.f32 %v10595_v22, %v5876_v58  ;;  %v5913_v25 = vmul.f32 %v10595_v22, %v5877_v26 }
 0xca3   : > { %v5914_v40 = vmul.f32 %v10595_v22, %v5878_v41  ;;  %v5915_v15 = vmul.f32 %v10595_v22, %v5879_v7  ;;  %v5916_v31 = vmul.f32 %v10595_v22, %v5880_v30  ;;  %v5917_v43 = vmul.f32 %v10595_v22, %v5881_v13 }
 0xca4   : > { %v5924_v42 = vmul.f32 %v6525_v20, %v5886_v0  ;;  %v5925_v1 = vmul.f32 %v6525_v20, %v5887_v34  ;;  %v5926_v16 = vmul.f32 %v6525_v20, %v5888_v50  ;;  %v5927_v35 = vmul.f32 %v6525_v20, %v5889_v36  ;;  %v6526_v34 = vld [vmem:[%s10880_s12] ss:$0 sm:$0xff] }
 0xca5   : > { %v5928_v48 = vmul.f32 %v6525_v20, %v5890_v14  ;;  %v5929_v54 = vmul.f32 %v6525_v20, %v5891_v9  ;;  %v5930_v57 = vmul.f32 %v6525_v20, %v5892_v10  ;;  %v5931_v33 = vmul.f32 %v6525_v20, %v5893_v37 }
 0xca6   : > { %v5932_v63 = vmul.f32 %v6525_v20, %v5894_v38  ;;  %v5933_v58 = vmul.f32 %v6525_v20, %v5895_v59  ;;  %v5934_v39 = vmul.f32 %v6525_v20, %v5896_v32  ;;  %v5935_v26 = vmul.f32 %v6525_v20, %v5897_v27 }
 0xca7   : > { %v5936_v12 = vmul.f32 %v6525_v20, %v5898_v8  ;;  %v5937_v41 = vmul.f32 %v6525_v20, %v5899_v17  ;;  %v5938_v52 = vmul.f32 %v6525_v20, %v5900_v29  ;;  %v5939_v7 = vmul.f32 %v6525_v20, %v5901_v45 }
 0xca8   : > { %v5940_v53 = vmul.f32 %v6525_v20, %v5902_v24  ;;  %v5941_v30 = vmul.f32 %v6525_v20, %v5903_v4  ;;  %v5942_v11 = vmul.f32 %v6525_v20, %v5904_v46  ;;  %v5943_v22 = vmul.f32 %v6525_v20, %v5905_v6 }
 0xca9   : > { %v5944_v14 = vmul.f32 %v6525_v20, %v5906_v23  ;;  %v5945_v13 = vmul.f32 %v6525_v20, %v5907_v44  ;;  %v5946_v0 = vmul.f32 %v6525_v20, %v5908_v3  ;;  %v5947_v37 = vmul.f32 %v6525_v20, %v5909_v62 }
 0xcaa   : > { %v5948_v50 = vmul.f32 %v6525_v20, %v5910_v5  ;;  %v5949_v36 = vmul.f32 %v6525_v20, %v5911_v19  ;;  %v5950_v9 = vmul.f32 %v6525_v20, %v5912_v55  ;;  %v5951_v10 = vmul.f32 %v6525_v20, %v5913_v25 }
 0xcab   : > { %v5952_v38 = vmul.f32 %v6525_v20, %v5914_v40  ;;  %v5953_v59 = vmul.f32 %v6525_v20, %v5915_v15  ;;  %v5954_v32 = vmul.f32 %v6525_v20, %v5916_v31  ;;  %v5955_v27 = vmul.f32 %v6525_v20, %v5917_v43 }
 0xcac   : > { %v5962_v8 = vadd.f32 %v6526_v34, %v5924_v42  ;;  %v5963_v17 = vadd.f32 %v6526_v34, %v5925_v1  ;;  %v5964_v29 = vadd.f32 %v6526_v34, %v5926_v16  ;;  %v5965_v45 = vadd.f32 %v6526_v34, %v5927_v35 }
 0xcad   : > { %v5966_v24 = vadd.f32 %v6526_v34, %v5928_v48  ;;  %v5967_v4 = vadd.f32 %v6526_v34, %v5929_v54  ;;  %v5968_v46 = vadd.f32 %v6526_v34, %v5930_v57  ;;  %v5969_v6 = vadd.f32 %v6526_v34, %v5931_v33 }
 0xcae   : > { %v5970_v23 = vadd.f32 %v6526_v34, %v5932_v63  ;;  %v5971_v44 = vadd.f32 %v6526_v34, %v5933_v58  ;;  %v5972_v3 = vadd.f32 %v6526_v34, %v5934_v39  ;;  %v5973_v62 = vadd.f32 %v6526_v34, %v5935_v26 }
 0xcaf   : > { %v5974_v5 = vadd.f32 %v6526_v34, %v5936_v12  ;;  %v5975_v19 = vadd.f32 %v6526_v34, %v5937_v41  ;;  %v5976_v55 = vadd.f32 %v6526_v34, %v5938_v52  ;;  %v5977_v25 = vadd.f32 %v6526_v34, %v5939_v7 }
 0xcb0   : > { %v5978_v40 = vadd.f32 %v6526_v34, %v5940_v53  ;;  %v5979_v15 = vadd.f32 %v6526_v34, %v5941_v30  ;;  %v5980_v31 = vadd.f32 %v6526_v34, %v5942_v11  ;;  %v5981_v20 = vadd.f32 %v6526_v34, %v5943_v22 }
 0xcb1   : > { %v5982_v42 = vadd.f32 %v6526_v34, %v5944_v14  ;;  %v5983_v16 = vadd.f32 %v6526_v34, %v5945_v13  ;;  %v5984_v43 = vadd.f32 %v6526_v34, %v5946_v0  ;;  %v5985_v48 = vadd.f32 %v6526_v34, %v5947_v37  ;;  %v11173_v14 = vld [vmem:[#allocation35_spill] sm:$0xff] }
 0xcb2   : > { %v5986_v1 = vadd.f32 %v6526_v34, %v5948_v50  ;;  %v5987_v57 = vadd.f32 %v6526_v34, %v5949_v36  ;;  %v5988_v35 = vadd.f32 %v6526_v34, %v5950_v9  ;;  %v5989_v63 = vadd.f32 %v6526_v34, %v5951_v10  ;;  %v11176_v50 = vld [vmem:[#allocation38_spill] sm:$0xff]  ;;  %v11177_v36 = vld [vmem:[#allocation39_spill] sm:$0xff] }
 0xcb3   : > { %v5990_v54 = vadd.f32 %v6526_v34, %v5952_v38  ;;  %v5991_v39 = vadd.f32 %v6526_v34, %v5953_v59  ;;  %v5992_v33 = vadd.f32 %v6526_v34, %v5954_v32  ;;  %v5993_v12 = vadd.f32 %v6526_v34, %v5955_v27  ;;  %v11172_v34 = vld [vmem:[#allocation34_spill] sm:$0xff]  ;;  %v11181_v38 = vld [vmem:[#allocation43_spill] sm:$0xff]  ;;  %v11182_v32 = vld [vmem:[#allocation44_spill] sm:$0xff] }
 0xcb4   : > { %v5994_v52 = vadd.f32 %v5962_v8, %v10527_v21  ;;  %v5995_v53 = vadd.f32 %v5963_v17, %v10529_v61  ;;  %v5996_v11 = vadd.f32 %v5964_v29, %v10531_v56  ;;  %v5997_v58 = vadd.f32 %v5965_v45, %v10533_v18  ;;  %v11174_v56 = vld [vmem:[#allocation36_spill] sm:$0xff]  ;;  %v11175_v18 = vld [vmem:[#allocation37_spill] sm:$0xff]  ;;  %v11184_v29 = vld [vmem:[#allocation46_spill] sm:$0xff] }
 0xcb5   : > { %v5998_v26 = vadd.f32 %v5966_v24, %v10535_v2  ;;  %v5999_v41 = vadd.f32 %v5967_v4, %v10537_v28  ;;  %v6000_v7 = vadd.f32 %v5968_v46, %v10539_v51  ;;  %v6001_v30 = vadd.f32 %v5969_v6, %v10541_v47  ;;  %v11178_v51 = vld [vmem:[#allocation40_spill] sm:$0xff]  ;;  %v11183_v8 = vld [vmem:[#allocation45_spill] sm:$0xff]  ;;  %v11185_v24 = vld [vmem:[#allocation47_spill] sm:$0xff] }
 0xcb6   : > { %v6002_v22 = vadd.f32 %v5970_v23, %v10543_v60  ;;  %v6003_v21 = vadd.f32 %v5971_v44, %v10545_v49  ;;  %v6004_v61 = vadd.f32 %v5972_v3, %v11172_v34  ;;  %v6005_v13 = vadd.f32 %v5973_v62, %v11173_v14  ;;  %v11179_v60 = vld [vmem:[#allocation41_spill] sm:$0xff]  ;;  %v11180_v49 = vld [vmem:[#allocation42_spill] sm:$0xff]  ;;  %v11186_v46 = vld [vmem:[#allocation48_spill] sm:$0xff] }
 0xcb7   : > { %v6006_v0 = vadd.f32 %v5974_v5, %v11174_v56  ;;  %v6007_v37 = vadd.f32 %v5975_v19, %v11175_v18  ;;  %v6008_v2 = vadd.f32 %v5976_v55, %v11176_v50  ;;  %v6009_v28 = vadd.f32 %v5977_v25, %v11177_v36  ;;  %v11187_v23 = vld [vmem:[#allocation49_spill] sm:$0xff]  ;;  %v11188_v3 = vld [vmem:[#allocation50_spill] sm:$0xff]  ;;  %v11189_v5 = vld [vmem:[#allocation51_spill] sm:$0xff] }
 0xcb8   : > { %v10719_v47 = vadd.f32 %v5978_v40, %v11178_v51  ;;  %v10722_v9 = vadd.f32 %v5979_v15, %v11179_v60  ;;  %v10725_v10 = vadd.f32 %v5980_v31, %v11180_v49  ;;  %v10728_v59 = vadd.f32 %v5981_v20, %v11181_v38  ;;  %v11190_v55 = vld [vmem:[#allocation52_spill] sm:$0xff]  ;;  %v11191_v40 = vld [vmem:[#allocation53_spill] sm:$0xff]  ;;  %v11192_v31 = vld [vmem:[#allocation54_spill] sm:$0xff] }
 0xcb9   : > { %v10731_v27 = vadd.f32 %v5982_v42, %v11182_v32  ;;  %v10734_v17 = vadd.f32 %v5983_v16, %v11183_v8  ;;  %v10737_v45 = vadd.f32 %v5984_v43, %v11184_v29  ;;  %v10740_v4 = vadd.f32 %v5985_v48, %v11185_v24  ;;  %v11193_v42 = vld [vmem:[#allocation55_spill] sm:$0xff] }
 0xcba   : > { %v10743_v6 = vadd.f32 %v5986_v1, %v11186_v46  ;;  %v10746_v44 = vadd.f32 %v5987_v57, %v11187_v23  ;;  %v10749_v62 = vadd.f32 %v5988_v35, %v11188_v3  ;;  %v10752_v19 = vadd.f32 %v5989_v63, %v11189_v5 }
 0xcbb   : > { %v10755_v25 = vadd.f32 %v5990_v54, %v11190_v55  ;;  %v10758_v15 = vadd.f32 %v5991_v39, %v11191_v40  ;;  %v10761_v20 = vadd.f32 %v5992_v33, %v11192_v31  ;;  %v10764_v16 = vadd.f32 %v5993_v12, %v11193_v42 }
 0xcbc   : > { %v6026_v43 = vmax.f32 %v5994_v52, 0.0  ;;  %v6027_v48 = vmax.f32 %v5995_v53, 0.0  ;;  %v6028_v1 = vmax.f32 %v5996_v11, 0.0  ;;  %v6029_v57 = vmax.f32 %v5997_v58, 0.0 }
 0xcbd   : > { %v6030_v35 = vmax.f32 %v5998_v26, 0.0  ;;  %v6031_v34 = vmax.f32 %v5999_v41, 0.0  ;;  %v6032_v63 = vmax.f32 %v6000_v7, 0.0  ;;  %v6033_v14 = vmax.f32 %v6001_v30, 0.0 }
 0xcbe   : > { %v6034_v56 = vmax.f32 %v6002_v22, 0.0  ;;  %v6035_v54 = vmax.f32 %v6003_v21, 0.0  ;;  %v6036_v18 = vmax.f32 %v6004_v61, 0.0  ;;  %v6037_v39 = vmax.f32 %v6005_v13, 0.0  ;;  %6058 = vst [vmem:[%s10766_s17] sm:$0xff] %v6026_v43  ;;  %6059 = vst [vmem:[%s10766_s17 + $0x8] sm:$0xff] %v6027_v48 }
 0xcbf   : > { %6060 = vst [vmem:[%s10766_s17 + $0x10] sm:$0xff] %v6028_v1  ;;  %6061 = vst [vmem:[%s10766_s17 + $0x18] sm:$0xff] %v6029_v57  ;;  %v6038_v33 = vmax.f32 %v6006_v0, 0.0  ;;  %v6039_v12 = vmax.f32 %v6007_v37, 0.0  ;;  %v6040_v52 = vmax.f32 %v6008_v2, 0.0  ;;  %v6041_v53 = vmax.f32 %v6009_v28, 0.0 }
 0xcc0   : > { %6062 = vst [vmem:[%s10766_s17 + $0x20] sm:$0xff] %v6030_v35  ;;  %6063 = vst [vmem:[%s10766_s17 + $0x28] sm:$0xff] %v6031_v34  ;;  %v6042_v11 = vmax.f32 %v10719_v47, 0.0  ;;  %v6043_v58 = vmax.f32 %v10722_v9, 0.0  ;;  %v6044_v26 = vmax.f32 %v10725_v10, 0.0  ;;  %v6045_v41 = vmax.f32 %v10728_v59, 0.0 }
 0xcc1   : > { %6064 = vst [vmem:[%s10766_s17 + $0x30] sm:$0xff] %v6032_v63  ;;  %6065 = vst [vmem:[%s10766_s17 + $0x38] sm:$0xff] %v6033_v14  ;;  %v6046_v7 = vmax.f32 %v10731_v27, 0.0  ;;  %v6047_v30 = vmax.f32 %v10734_v17, 0.0  ;;  %v6048_v22 = vmax.f32 %v10737_v45, 0.0  ;;  %v6049_v21 = vmax.f32 %v10740_v4, 0.0 }
 0xcc2   : > { %6066 = vst [vmem:[%s10766_s17 + $0x40] sm:$0xff] %v6034_v56  ;;  %6067 = vst [vmem:[%s10766_s17 + $0x48] sm:$0xff] %v6035_v54  ;;  %v6050_v61 = vmax.f32 %v10743_v6, 0.0  ;;  %v6051_v13 = vmax.f32 %v10746_v44, 0.0  ;;  %v6052_v0 = vmax.f32 %v10749_v62, 0.0  ;;  %v6053_v37 = vmax.f32 %v10752_v19, 0.0 }
 0xcc3   : > { %6068 = vst [vmem:[%s10766_s17 + $0x50] sm:$0xff] %v6036_v18  ;;  %6069 = vst [vmem:[%s10766_s17 + $0x58] sm:$0xff] %v6037_v39  ;;  %v6054_v50 = vmax.f32 %v10755_v25, 0.0  ;;  %v6055_v2 = vmax.f32 %v10758_v15, 0.0  ;;  %v6056_v36 = vmax.f32 %v10761_v20, 0.0  ;;  %v6057_v28 = vmax.f32 %v10764_v16, 0.0 }
 0xcc4   : > { %6070 = vst [vmem:[%s10766_s17 + $0x60] sm:$0xff] %v6038_v33  ;;  %6071 = vst [vmem:[%s10766_s17 + $0x68] sm:$0xff] %v6039_v12 }
 0xcc5   : > { %6072 = vst [vmem:[%s10766_s17 + $0x70] sm:$0xff] %v6040_v52  ;;  %6073 = vst [vmem:[%s10766_s17 + $0x78] sm:$0xff] %v6041_v53 }
 0xcc6   : > { %6074 = vst [vmem:[%s10766_s17 + $0x80] sm:$0xff] %v6042_v11  ;;  %6075 = vst [vmem:[%s10766_s17 + $0x88] sm:$0xff] %v6043_v58 }
 0xcc7   : > { %6076 = vst [vmem:[%s10766_s17 + $0x90] sm:$0xff] %v6044_v26  ;;  %6077 = vst [vmem:[%s10766_s17 + $0x98] sm:$0xff] %v6045_v41 }
 0xcc8   : > { %6078 = vst [vmem:[%s10766_s17 + $0xa0] sm:$0xff] %v6046_v7  ;;  %6079 = vst [vmem:[%s10766_s17 + $0xa8] sm:$0xff] %v6047_v30 }
 0xcc9   : > { %6080 = vst [vmem:[%s10766_s17 + $0xb0] sm:$0xff] %v6048_v22  ;;  %6081 = vst [vmem:[%s10766_s17 + $0xb8] sm:$0xff] %v6049_v21 }
 0xcca   : > { %6082 = vst [vmem:[%s10766_s17 + $0xc0] sm:$0xff] %v6050_v61  ;;  %6083 = vst [vmem:[%s10766_s17 + $0xc8] sm:$0xff] %v6051_v13 }
 0xccb   : > { %6084 = vst [vmem:[%s10766_s17 + $0xd0] sm:$0xff] %v6052_v0  ;;  %6085 = vst [vmem:[%s10766_s17 + $0xd8] sm:$0xff] %v6053_v37 }
 0xccc   : > { %6086 = vst [vmem:[%s10766_s17 + $0xe0] sm:$0xff] %v6054_v50  ;;  %6087 = vst [vmem:[%s10766_s17 + $0xe8] sm:$0xff] %v6055_v2 }
 0xccd   : > { %6088 = vst [vmem:[%s10766_s17 + $0xf0] sm:$0xff] %v6056_v36  ;;  %6089 = vst [vmem:[%s10766_s17 + $0xf8] sm:$0xff] %v6057_v28 }
 0xcce   : > { %7828 = shalt.err (!%p7825_p3)
}
 0xccf   : > { %s7829_s23 = scalar_lea.hbm %s10805_s16, 4096  ;;  %s7833_s21 = scalar_lea.hbm %s10881_s13, 8192 }
 0xcd0   : > { %p7830_p4 = scmp.ne.s32.totalorder %s10805_s16, %s7829_s23  ;;  %p7834_p9 = scmp.lt.u32.totalorder %s10805_s16, %s10881_s13 }
 0xcd1   : > { %p7835_p10 = scmp.lt.u32.totalorder %s7833_s21, %s7829_s23  ;;  %p7837_p12 = scmp.lt.u32.totalorder %s7829_s23, %s10805_s16 }
 0xcd2   : > { %p7831_p7 = pnand %p7830_p4, %p7994_p5 }
 0xcd3   : > { %p7836_p11 = por %p7835_p10, %p7834_p9 }
 0xcd4   : > { %p7832_p8 = pneg %p7831_p7 }
 0xcd5   : > { %p7838_p13 = por %p7837_p12, %p7836_p11 }
 0xcd7   : > { %p7839_p0 = pnand %p7838_p13, %p7832_p8 }
 0xcd9   : > { %7842 = shalt.err (!%p7839_p0)
}
 0xcda   : > { %s7884_s22 = smov 128   ;;  %s7885_s29 = smov 8  }
 0xcdb   : > { %7702 = dma.vmem_to_hbm [thread:$0]  (%p7994_p5), %s10807_s30, 4096, %s10805_s16, %s10827_s20, %s7884_s22, %s7884_s22, %s7885_s29  }
 0xcdc PF: > { %p7708_p1 = scmp.ge.s32.totalorder %s7877_s28, 2  ;;  %s6119_s0 = sand.u32 1, %s7865_s25  }
 0xcdd   : > { %s6120_s23 = scalar_lea.sflag [#allocation4], %s6119_s0 }
 0xcde   : > { %p7705_p2 = pnand %p7708_p1, %p7998_p6 }
 0xce0   : > { %7860 = dma.done.wait (!%p7705_p2), %s6120_s23, 4096  }
 0xce1   : > { %7862 = vsyncadd (!%p7705_p2), %s6120_s23, 4294963200  ;;  %s11194_s17 = sld [smem:[#allocation6_spill]]  ;;  %p23_p3 = scmp.ge.s32.totalorder %s7981_s14, 4  }
 0xce2   : > { %s11195_s25 = smov %s7869_s26  ;;  %s11196_s26 = smov %s7873_s27 }
 0xce3   : > { %s11198_s28 = smov %s7981_s14  ;;  %25 = sbr.rel (!%p23_p3) target bundleno = 5 (0x5), region = 117 }
 0xce7   : > { %s11197_s27 = smov %s11194_s17 }
 0xcea   :  { %6125 = vsyncpa [#allocation4], 1 }
 0xceb   :  { %6127 = vsyncpa [#allocation4 + $0x1], 1 }

</bundles_post_ra>
